<compile_context>
chip_gen: v7x
topology: tpu7x:2x2x1
jax: 0.10.0
libtpu: 0.0.40
codegen_flags: <defaults>
</compile_context>

<pallas_src>
import functools

import jax
import jax.numpy as jnp
from jax.experimental import pallas as pl
from jax.experimental.pallas import tpu as pltpu

LATENT = 100          # noise dim
N_CLASSES = 10        # label embedding rows
EMB_DIM = 10          # label embedding dim
IN_DIM = LATENT + EMB_DIM   # 110
IN_PAD = 128          # pad 110 -> 128 (zero cols / zero weight rows)
IMG_FLAT = 1 * 32 * 32
BN_EPS = 0.8          # torch.nn.BatchNorm1d(C, 0.8) -> eps = 0.8
LRELU_SLOPE = 0.2

LAYER_DIMS = ((IN_PAD, 128), (128, 256), (256, 512), (512, 1024), (1024, IMG_FLAT))


def _bf16_elementwise_ok():
    """bf16 VALU/EUP exist on v6e/v7x; keep f32 elementwise on v5e and older."""
    try:
        kind = jax.devices()[0].device_kind.lower()
    except Exception:
        return False
    return ("v6" in kind) or ("v7" in kind) or ("7x" in kind)


def _leaky(x):
    return jnp.where(x > 0, x, LRELU_SLOPE * x)


def generator_kernel(x_ref,
                     w1_ref, b1_ref,
                     w2_ref, g2_ref, be2_ref,
                     w3_ref, g3_ref, be3_ref,
                     w4_hbm, g4_ref, be4_ref,
                     w5_hbm, b5_ref,
                     out_ref,
                     w4_vmem, w5_vmem, dma_sems,
                     *, batch, bf16_elementwise):
    # Kick off the two largest weight DMAs immediately; they overlap the
    # layer-1..3 matmuls and are waited on just before use (manual P4 overlap).
    cp4 = pltpu.make_async_copy(w4_hbm, w4_vmem, dma_sems.at[0])
    cp5 = pltpu.make_async_copy(w5_hbm, w5_vmem, dma_sems.at[1])
    cp4.start()
    cp5.start()

    bp = x_ref.shape[0]
    inv_b = 1.0 / float(batch)
    needs_mask = (bp != batch)                    # static Python bool
    ew = jnp.bfloat16 if bf16_elementwise else jnp.float32

    if needs_mask:
        row = jax.lax.broadcasted_iota(jnp.int32, (bp, 1), 0)
        mask = (row < batch).astype(jnp.float32)  # 1 for real rows, 0 for padding

    def bn_lrelu(h, gamma_ref, beta_ref):
        # Training-mode BatchNorm1d folded to one scale/shift FMA.
        # Stats use one-pass E[x^2]-E[x]^2 in f32 (eps=0.8 keeps it safe; the
        # redundant pre-BN biases are gone, which also improves conditioning).
        hm = h * mask if needs_mask else h
        mean = jnp.sum(hm, axis=0, keepdims=True) * inv_b
        ex2 = jnp.sum(hm * hm, axis=0, keepdims=True) * inv_b
        var = ex2 - mean * mean
        scale = gamma_ref[...] * jax.lax.rsqrt(var + BN_EPS)     # f32 EUP
        shift = beta_ref[...] - mean * scale
        y = h.astype(ew) * scale.astype(ew) + shift.astype(ew)
        return _leaky(y)                  # bf16 VALU on v6e/v7x, f32 on v5e

    def dot_f32acc(h, w, b=None):
        # bf16 operands feed the MXU natively; accumulate in f32.
        acc = jnp.dot(h.astype(jnp.bfloat16), w, preferred_element_type=jnp.float32)
        return acc if b is None else acc + b

    x = x_ref[...]                                               # (bp, 128) bf16

    # Linear(110->128) + LeakyReLU (f32)
    h = _leaky(dot_f32acc(x, w1_ref[...], b1_ref[...]))

    # Linear(128->256) / (256->512): biases dropped (cancel under training BN)
    h = bn_lrelu(dot_f32acc(h, w2_ref[...]), g2_ref, be2_ref)
    h = bn_lrelu(dot_f32acc(h, w3_ref[...]), g3_ref, be3_ref)

    # Linear(512->1024): weight arrives via the overlapped DMA
    cp4.wait()
    h = bn_lrelu(dot_f32acc(h, w4_vmem[...]), g4_ref, be4_ref)

    # Linear(1024->1024) + Tanh (tanh + output stay f32: no caller-visible change)
    cp5.wait()
    h = dot_f32acc(h, w5_vmem[...], b5_ref[...])
    out_ref[...] = jnp.tanh(h)
    # TODO(synk): for large batches, tile the batch over a grid (two-pass BN or
    # cross-tile stat accumulators, inv_b must stay 1/true-batch) and on v7x split
    # across both TensorCores with a shared-VMEM reduction of the BN partial sums.


def init_params(key):
    """Deterministic f32 init matching the PyTorch module's shapes."""
    ks = jax.random.split(key, 16)
    params = {}
    # Embedding(10, 10) default init: N(0, 1)
    params["emb"] = jax.random.normal(ks[0], (N_CLASSES, EMB_DIM), jnp.float32)

    def linear(kw, kb, fan_in, fan_out):
        # PyTorch Linear default: U(-1/sqrt(fan_in), 1/sqrt(fan_in)); stored as (in, out)
        bound = 1.0 / jnp.sqrt(float(fan_in))
        w = jax.random.uniform(kw, (fan_in, fan_out), jnp.float32, -bound, bound)
        b = jax.random.uniform(kb, (1, fan_out), jnp.float32, -bound, bound)
        return w, b

    params["w1"], params["b1"] = linear(ks[1], ks[2], IN_DIM, 128)
    params["w2"], params["b2"] = linear(ks[3], ks[4], 128, 256)
    params["w3"], params["b3"] = linear(ks[5], ks[6], 256, 512)
    params["w4"], params["b4"] = linear(ks[7], ks[8], 512, 1024)
    params["w5"], params["b5"] = linear(ks[9], ks[10], 1024, IMG_FLAT)
    # BatchNorm affine params: weight=1, bias=0
    for name, c in (("2", 256), ("3", 512), ("4", 1024)):
        params["g" + name] = jnp.ones((1, c), jnp.float32)
        params["be" + name] = jnp.zeros((1, c), jnp.float32)
    return params


def prepare_params(params):
    """One-time conversion to kernel-ready layout: pre-pad w1, cast weights to bf16."""
    kp = dict(params)
    kp["w1"] = jnp.pad(params["w1"],
                       ((0, IN_PAD - IN_DIM), (0, 0))).astype(jnp.bfloat16)  # (128, 128)
    for i in ("w2", "w3", "w4", "w5"):
        kp[i] = params[i].astype(jnp.bfloat16)
    return kp


_USE_BF16_EW = _bf16_elementwise_ok()


@jax.jit
def generator_forward(kp, noise, labels):
    B = noise.shape[0]
    Bp = ((B + 7) // 8) * 8                                      # sublane-aligned batch

    # --- glue (plain JAX): embedding gather + fused concat/pad into one bf16 slab ---
    lab = kp["emb"][labels]                                      # (B, 10) f32
    x = jnp.zeros((Bp, IN_PAD), jnp.bfloat16)
    x = x.at[:B, :EMB_DIM].set(lab.astype(jnp.bfloat16))
    x = x.at[:B, EMB_DIM:IN_DIM].set(noise.astype(jnp.bfloat16))
    # TODO(synk): fold the gather/concat/pad into the kernel via
    # PrefetchScalarGridSpec (labels scalar-prefetched into SMEM) to drop this
    # extra HBM round-trip of the input slab.

    weight_elems = sum(i * o for i, o in LAYER_DIMS)
    cost = pl.CostEstimate(
        flops=2 * Bp * weight_elems,
        transcendentals=Bp * IMG_FLAT + (256 + 512 + 1024),
        bytes_accessed=(weight_elems * 2                         # bf16 weights
                        + Bp * IN_PAD * 2                        # bf16 input slab
                        + Bp * IMG_FLAT * 4                      # f32 output
                        + 4 * (128 + 1024 + 2 * (256 + 512 + 1024))),
    )

    vmem = pl.BlockSpec(memory_space=pltpu.MemorySpace.VMEM)
    hbm = pl.BlockSpec(memory_space=pl.ANY)
    args = (x,
            kp["w1"], kp["b1"],
            kp["w2"], kp["g2"], kp["be2"],
            kp["w3"], kp["g3"], kp["be3"],
            kp["w4"], kp["g4"], kp["be4"],
            kp["w5"], kp["b5"])
    in_specs = [vmem,
                vmem, vmem,
                vmem, vmem, vmem,
                vmem, vmem, vmem,
                hbm, vmem, vmem,
                hbm, vmem]

    img_flat = pl.pallas_call(
        functools.partial(generator_kernel, batch=B,
                          bf16_elementwise=_USE_BF16_EW),
        out_shape=jax.ShapeDtypeStruct((Bp, IMG_FLAT), jnp.float32),
        in_specs=in_specs,
        out_specs=vmem,
        scratch_shapes=[pltpu.VMEM((512, 1024), jnp.bfloat16),   # w4 landing buffer
                        pltpu.VMEM((1024, 1024), jnp.bfloat16),  # w5 landing buffer
                        pltpu.SemaphoreType.DMA((2,))],
        compiler_params=pltpu.CompilerParams(vmem_limit_bytes=24 << 20),
        cost_estimate=cost,
    )(*args)

    return img_flat[:B].reshape(B, 1, 32, 32)                    # NCHW, like PyTorch


def _bn_train_ref(x, gamma, beta):
    mean = jnp.mean(x, axis=0, keepdims=True)
    var = jnp.mean((x - mean) * (x - mean), axis=0, keepdims=True)
    return (x - mean) * jax.lax.rsqrt(var + BN_EPS) * gamma + beta


def generator_reference(params, noise, labels):
    """Pure-JAX f32 reference of the PyTorch forward pass (training-mode BN)."""
    lab = params["emb"][labels]
    h = jnp.concatenate([lab, noise], axis=-1)
    h = _leaky(h @ params["w1"] + params["b1"])
    h = h @ params["w2"] + params["b2"]
    h = _leaky(_bn_train_ref(h, params["g2"], params["be2"]))
    h = h @ params["w3"] + params["b3"]
    h = _leaky(_bn_train_ref(h, params["g3"], params["be3"]))
    h = h @ params["w4"] + params["b4"]
    h = _leaky(_bn_train_ref(h, params["g4"], params["be4"]))
    h = jnp.tanh(h @ params["w5"] + params["b5"])
    return h.reshape(h.shape[0], 1, 32, 32)


if __name__ == "__main__":
    key = jax.random.PRNGKey(0)
    k_param, k_noise, k_lab = jax.random.split(key, 3)

    params = init_params(k_param)
    kparams = prepare_params(params)

    B = 2
    noise = jax.random.normal(k_noise, (B, LATENT), jnp.float32)
    labels = jax.random.randint(k_lab, (B,), 0, N_CLASSES)

    img = generator_forward(kparams, noise, labels)
    img = jax.block_until_ready(img)
    assert img.shape == (B, 1, 32, 32), img.shape

    # compare against the f32 PyTorch-semantics reference (bf16 MXU operands and
    # optional bf16 elementwise => loosened tolerance; output is post-tanh, in [-1, 1]).
    ref = generator_reference(params, noise, labels)
    err = float(jnp.max(jnp.abs(img - ref)))
    assert err < 1e-1, err

    print("KERNEL_OK")
</pallas_src>

<mosaic_0001>
module attributes {stable_mosaic.version = 11 : i64} {
  func.func @generator_kernel(%arg0: memref<8x128xbf16, #tpu.memory_space<vmem>>, %arg1: memref<128x128xbf16, #tpu.memory_space<vmem>>, %arg2: memref<1x128xf32, #tpu.memory_space<vmem>>, %arg3: memref<128x256xbf16, #tpu.memory_space<vmem>>, %arg4: memref<1x256xf32, #tpu.memory_space<vmem>>, %arg5: memref<1x256xf32, #tpu.memory_space<vmem>>, %arg6: memref<256x512xbf16, #tpu.memory_space<vmem>>, %arg7: memref<1x512xf32, #tpu.memory_space<vmem>>, %arg8: memref<1x512xf32, #tpu.memory_space<vmem>>, %arg9: memref<512x1024xbf16, #tpu.memory_space<any>>, %arg10: memref<1x1024xf32, #tpu.memory_space<vmem>>, %arg11: memref<1x1024xf32, #tpu.memory_space<vmem>>, %arg12: memref<1024x1024xbf16, #tpu.memory_space<any>>, %arg13: memref<1x1024xf32, #tpu.memory_space<vmem>>, %arg14: memref<8x1024xf32, #tpu.memory_space<vmem>>, %arg15: memref<512x1024xbf16, #tpu.memory_space<vmem>>, %arg16: memref<1024x1024xbf16, #tpu.memory_space<vmem>>, %arg17: memref<2x!tpu.dma_semaphore, #tpu.memory_space<semaphore_mem>>) attributes {dimension_semantics = [], scalar_prefetch = 0 : i64, scratch_operands = 3 : i64, tpu.core_type = #tpu.core_type<tc>} {
    %c0_i32 = arith.constant 0 : i32
    %0 = tpu.memref_slice %arg17[%c0_i32] : memref<2x!tpu.dma_semaphore, #tpu.memory_space<semaphore_mem>> -> memref<1x!tpu.dma_semaphore, #tpu.memory_space<semaphore_mem>>
    %1 = tpu.memref_squeeze %0 : memref<1x!tpu.dma_semaphore, #tpu.memory_space<semaphore_mem>> -> memref<!tpu.dma_semaphore, #tpu.memory_space<semaphore_mem>>
    tpu.enqueue_dma source(%arg9 : memref<512x1024xbf16, #tpu.memory_space<any>>) target(%arg15 : memref<512x1024xbf16, #tpu.memory_space<vmem>>) target_semaphore(%1 : memref<!tpu.dma_semaphore, #tpu.memory_space<semaphore_mem>>)
    %c1_i32 = arith.constant 1 : i32
    %2 = tpu.memref_slice %arg17[%c1_i32] : memref<2x!tpu.dma_semaphore, #tpu.memory_space<semaphore_mem>> -> memref<1x!tpu.dma_semaphore, #tpu.memory_space<semaphore_mem>>
    %3 = tpu.memref_squeeze %2 : memref<1x!tpu.dma_semaphore, #tpu.memory_space<semaphore_mem>> -> memref<!tpu.dma_semaphore, #tpu.memory_space<semaphore_mem>>
    tpu.enqueue_dma source(%arg12 : memref<1024x1024xbf16, #tpu.memory_space<any>>) target(%arg16 : memref<1024x1024xbf16, #tpu.memory_space<vmem>>) target_semaphore(%3 : memref<!tpu.dma_semaphore, #tpu.memory_space<semaphore_mem>>)
    %4 = tpu.iota {dimensions = array<i32: 0>} : vector<8x1xi32>
    %c2_i32 = arith.constant 2 : i32
    %5 = vector.broadcast %c2_i32 : i32 to vector<8x1xi32>
    %6 = arith.cmpi slt, %4, %5 : vector<8x1xi32>
    %7 = arith.extui %6 : vector<8x1xi1> to vector<8x1xi32>
    %8 = arith.sitofp %7 : vector<8x1xi32> to vector<8x1xf32>
    %c0 = arith.constant 0 : index
    %c0_0 = arith.constant 0 : index
    %9 = vector.load %arg0[%c0, %c0_0] : memref<8x128xbf16, #tpu.memory_space<vmem>>, vector<8x128xbf16>
    %c0_1 = arith.constant 0 : index
    %c0_2 = arith.constant 0 : index
    %10 = vector.load %arg1[%c0_1, %c0_2] : memref<128x128xbf16, #tpu.memory_space<vmem>>, vector<128x128xbf16>
    %c0_3 = arith.constant 0 : index
    %c0_4 = arith.constant 0 : index
    %11 = vector.load %arg2[%c0_3, %c0_4] : memref<1x128xf32, #tpu.memory_space<vmem>>, vector<1x128xf32>
    %cst = arith.constant dense<0.000000e+00> : vector<8x128xf32>
    %12 = tpu.matmul %9, %10, %cst {dimension_numbers = #tpu.dot_dimension_numbers<[1], [0], [0], [1], [0, 0, 1, 1], [], []>} : vector<8x128xbf16>, vector<128x128xbf16>, vector<8x128xf32> -> vector<8x128xf32>
    %13 = vector.broadcast %11 : vector<1x128xf32> to vector<8x128xf32>
    %14 = arith.addf %12, %13 : vector<8x128xf32>
    %cst_5 = arith.constant 0.000000e+00 : f32
    %15 = vector.broadcast %cst_5 : f32 to vector<8x128xf32>
    %16 = arith.cmpf ogt, %14, %15 : vector<8x128xf32>
    %cst_6 = arith.constant 2.000000e-01 : f32
    %17 = vector.broadcast %cst_6 : f32 to vector<8x128xf32>
    %18 = arith.mulf %17, %14 : vector<8x128xf32>
    %19 = arith.select %16, %14, %18 : vector<8x128xi1>, vector<8x128xf32>
    %c0_7 = arith.constant 0 : index
    %c0_8 = arith.constant 0 : index
    %20 = vector.load %arg3[%c0_7, %c0_8] : memref<128x256xbf16, #tpu.memory_space<vmem>>, vector<128x256xbf16>
    %21 = arith.truncf %19 : vector<8x128xf32> to vector<8x128xbf16>
    %cst_9 = arith.constant dense<0.000000e+00> : vector<8x256xf32>
    %22 = tpu.matmul %21, %20, %cst_9 {dimension_numbers = #tpu.dot_dimension_numbers<[1], [0], [0], [1], [0, 0, 1, 1], [], []>} : vector<8x128xbf16>, vector<128x256xbf16>, vector<8x256xf32> -> vector<8x256xf32>
    %23 = vector.broadcast %8 : vector<8x1xf32> to vector<8x256xf32>
    %24 = arith.mulf %22, %23 : vector<8x256xf32>
    %cst_10 = arith.constant dense<0.000000e+00> : vector<256xf32>
    %25 = vector.multi_reduction <add>, %24, %cst_10 [0] : vector<8x256xf32> to vector<256xf32>
    %26 = vector.shape_cast %25 : vector<256xf32> to vector<1x256xf32>
    %cst_11 = arith.constant 5.000000e-01 : f32
    %27 = vector.broadcast %cst_11 : f32 to vector<1x256xf32>
    %28 = arith.mulf %26, %27 : vector<1x256xf32>
    %29 = arith.mulf %24, %24 : vector<8x256xf32>
    %cst_12 = arith.constant dense<0.000000e+00> : vector<256xf32>
    %30 = vector.multi_reduction <add>, %29, %cst_12 [0] : vector<8x256xf32> to vector<256xf32>
    %31 = vector.shape_cast %30 : vector<256xf32> to vector<1x256xf32>
    %cst_13 = arith.constant 5.000000e-01 : f32
    %32 = vector.broadcast %cst_13 : f32 to vector<1x256xf32>
    %33 = arith.mulf %31, %32 : vector<1x256xf32>
    %34 = arith.mulf %28, %28 : vector<1x256xf32>
    %35 = arith.subf %33, %34 : vector<1x256xf32>
    %c0_14 = arith.constant 0 : index
    %c0_15 = arith.constant 0 : index
    %36 = vector.load %arg4[%c0_14, %c0_15] : memref<1x256xf32, #tpu.memory_space<vmem>>, vector<1x256xf32>
    %cst_16 = arith.constant 8.000000e-01 : f32
    %37 = vector.broadcast %cst_16 : f32 to vector<1x256xf32>
    %38 = arith.addf %35, %37 : vector<1x256xf32>
    %39 = math.rsqrt %38 : vector<1x256xf32>
    %40 = arith.mulf %36, %39 : vector<1x256xf32>
    %c0_17 = arith.constant 0 : index
    %c0_18 = arith.constant 0 : index
    %41 = vector.load %arg5[%c0_17, %c0_18] : memref<1x256xf32, #tpu.memory_space<vmem>>, vector<1x256xf32>
    %42 = arith.mulf %28, %40 : vector<1x256xf32>
    %43 = arith.subf %41, %42 : vector<1x256xf32>
    %44 = vector.broadcast %40 : vector<1x256xf32> to vector<8x256xf32>
    %45 = arith.mulf %22, %44 : vector<8x256xf32>
    %46 = vector.broadcast %43 : vector<1x256xf32> to vector<8x256xf32>
    %47 = arith.addf %45, %46 : vector<8x256xf32>
    %cst_19 = arith.constant 0.000000e+00 : f32
    %48 = vector.broadcast %cst_19 : f32 to vector<8x256xf32>
    %49 = arith.cmpf ogt, %47, %48 : vector<8x256xf32>
    %cst_20 = arith.constant 2.000000e-01 : f32
    %50 = vector.broadcast %cst_20 : f32 to vector<8x256xf32>
    %51 = arith.mulf %50, %47 : vector<8x256xf32>
    %52 = arith.select %49, %47, %51 : vector<8x256xi1>, vector<8x256xf32>
    %c0_21 = arith.constant 0 : index
    %c0_22 = arith.constant 0 : index
    %53 = vector.load %arg6[%c0_21, %c0_22] : memref<256x512xbf16, #tpu.memory_space<vmem>>, vector<256x512xbf16>
    %54 = arith.truncf %52 : vector<8x256xf32> to vector<8x256xbf16>
    %cst_23 = arith.constant dense<0.000000e+00> : vector<8x512xf32>
    %55 = tpu.matmul %54, %53, %cst_23 {dimension_numbers = #tpu.dot_dimension_numbers<[1], [0], [0], [1], [0, 0, 1, 1], [], []>} : vector<8x256xbf16>, vector<256x512xbf16>, vector<8x512xf32> -> vector<8x512xf32>
    %56 = vector.broadcast %8 : vector<8x1xf32> to vector<8x512xf32>
    %57 = arith.mulf %55, %56 : vector<8x512xf32>
    %cst_24 = arith.constant dense<0.000000e+00> : vector<512xf32>
    %58 = vector.multi_reduction <add>, %57, %cst_24 [0] : vector<8x512xf32> to vector<512xf32>
    %59 = vector.shape_cast %58 : vector<512xf32> to vector<1x512xf32>
    %cst_25 = arith.constant 5.000000e-01 : f32
    %60 = vector.broadcast %cst_25 : f32 to vector<1x512xf32>
    %61 = arith.mulf %59, %60 : vector<1x512xf32>
    %62 = arith.mulf %57, %57 : vector<8x512xf32>
    %cst_26 = arith.constant dense<0.000000e+00> : vector<512xf32>
    %63 = vector.multi_reduction <add>, %62, %cst_26 [0] : vector<8x512xf32> to vector<512xf32>
    %64 = vector.shape_cast %63 : vector<512xf32> to vector<1x512xf32>
    %cst_27 = arith.constant 5.000000e-01 : f32
    %65 = vector.broadcast %cst_27 : f32 to vector<1x512xf32>
    %66 = arith.mulf %64, %65 : vector<1x512xf32>
    %67 = arith.mulf %61, %61 : vector<1x512xf32>
    %68 = arith.subf %66, %67 : vector<1x512xf32>
    %c0_28 = arith.constant 0 : index
    %c0_29 = arith.constant 0 : index
    %69 = vector.load %arg7[%c0_28, %c0_29] : memref<1x512xf32, #tpu.memory_space<vmem>>, vector<1x512xf32>
    %cst_30 = arith.constant 8.000000e-01 : f32
    %70 = vector.broadcast %cst_30 : f32 to vector<1x512xf32>
    %71 = arith.addf %68, %70 : vector<1x512xf32>
    %72 = math.rsqrt %71 : vector<1x512xf32>
    %73 = arith.mulf %69, %72 : vector<1x512xf32>
    %c0_31 = arith.constant 0 : index
    %c0_32 = arith.constant 0 : index
    %74 = vector.load %arg8[%c0_31, %c0_32] : memref<1x512xf32, #tpu.memory_space<vmem>>, vector<1x512xf32>
    %75 = arith.mulf %61, %73 : vector<1x512xf32>
    %76 = arith.subf %74, %75 : vector<1x512xf32>
    %77 = vector.broadcast %73 : vector<1x512xf32> to vector<8x512xf32>
    %78 = arith.mulf %55, %77 : vector<8x512xf32>
    %79 = vector.broadcast %76 : vector<1x512xf32> to vector<8x512xf32>
    %80 = arith.addf %78, %79 : vector<8x512xf32>
    %cst_33 = arith.constant 0.000000e+00 : f32
    %81 = vector.broadcast %cst_33 : f32 to vector<8x512xf32>
    %82 = arith.cmpf ogt, %80, %81 : vector<8x512xf32>
    %cst_34 = arith.constant 2.000000e-01 : f32
    %83 = vector.broadcast %cst_34 : f32 to vector<8x512xf32>
    %84 = arith.mulf %83, %80 : vector<8x512xf32>
    %85 = arith.select %82, %80, %84 : vector<8x512xi1>, vector<8x512xf32>
    %c0_i32_35 = arith.constant 0 : i32
    %86 = tpu.memref_slice %arg17[%c0_i32_35] : memref<2x!tpu.dma_semaphore, #tpu.memory_space<semaphore_mem>> -> memref<1x!tpu.dma_semaphore, #tpu.memory_space<semaphore_mem>>
    %87 = tpu.memref_squeeze %86 : memref<1x!tpu.dma_semaphore, #tpu.memory_space<semaphore_mem>> -> memref<!tpu.dma_semaphore, #tpu.memory_space<semaphore_mem>>
    tpu.wait_dma2 semaphore(%87 : memref<!tpu.dma_semaphore, #tpu.memory_space<semaphore_mem>>) src(%arg9 : memref<512x1024xbf16, #tpu.memory_space<any>>) dst(%arg15 : memref<512x1024xbf16, #tpu.memory_space<vmem>>)
    %c0_36 = arith.constant 0 : index
    %c0_37 = arith.constant 0 : index
    %88 = vector.load %arg15[%c0_36, %c0_37] : memref<512x1024xbf16, #tpu.memory_space<vmem>>, vector<512x1024xbf16>
    %89 = arith.truncf %85 : vector<8x512xf32> to vector<8x512xbf16>
    %cst_38 = arith.constant dense<0.000000e+00> : vector<8x1024xf32>
    %90 = tpu.matmul %89, %88, %cst_38 {dimension_numbers = #tpu.dot_dimension_numbers<[1], [0], [0], [1], [0, 0, 1, 1], [], []>} : vector<8x512xbf16>, vector<512x1024xbf16>, vector<8x1024xf32> -> vector<8x1024xf32>
    %91 = vector.broadcast %8 : vector<8x1xf32> to vector<8x1024xf32>
    %92 = arith.mulf %90, %91 : vector<8x1024xf32>
    %cst_39 = arith.constant dense<0.000000e+00> : vector<1024xf32>
    %93 = vector.multi_reduction <add>, %92, %cst_39 [0] : vector<8x1024xf32> to vector<1024xf32>
    %94 = vector.shape_cast %93 : vector<1024xf32> to vector<1x1024xf32>
    %cst_40 = arith.constant 5.000000e-01 : f32
    %95 = vector.broadcast %cst_40 : f32 to vector<1x1024xf32>
    %96 = arith.mulf %94, %95 : vector<1x1024xf32>
    %97 = arith.mulf %92, %92 : vector<8x1024xf32>
    %cst_41 = arith.constant dense<0.000000e+00> : vector<1024xf32>
    %98 = vector.multi_reduction <add>, %97, %cst_41 [0] : vector<8x1024xf32> to vector<1024xf32>
    %99 = vector.shape_cast %98 : vector<1024xf32> to vector<1x1024xf32>
    %cst_42 = arith.constant 5.000000e-01 : f32
    %100 = vector.broadcast %cst_42 : f32 to vector<1x1024xf32>
    %101 = arith.mulf %99, %100 : vector<1x1024xf32>
    %102 = arith.mulf %96, %96 : vector<1x1024xf32>
    %103 = arith.subf %101, %102 : vector<1x1024xf32>
    %c0_43 = arith.constant 0 : index
    %c0_44 = arith.constant 0 : index
    %104 = vector.load %arg10[%c0_43, %c0_44] : memref<1x1024xf32, #tpu.memory_space<vmem>>, vector<1x1024xf32>
    %cst_45 = arith.constant 8.000000e-01 : f32
    %105 = vector.broadcast %cst_45 : f32 to vector<1x1024xf32>
    %106 = arith.addf %103, %105 : vector<1x1024xf32>
    %107 = math.rsqrt %106 : vector<1x1024xf32>
    %108 = arith.mulf %104, %107 : vector<1x1024xf32>
    %c0_46 = arith.constant 0 : index
    %c0_47 = arith.constant 0 : index
    %109 = vector.load %arg11[%c0_46, %c0_47] : memref<1x1024xf32, #tpu.memory_space<vmem>>, vector<1x1024xf32>
    %110 = arith.mulf %96, %108 : vector<1x1024xf32>
    %111 = arith.subf %109, %110 : vector<1x1024xf32>
    %112 = vector.broadcast %108 : vector<1x1024xf32> to vector<8x1024xf32>
    %113 = arith.mulf %90, %112 : vector<8x1024xf32>
    %114 = vector.broadcast %111 : vector<1x1024xf32> to vector<8x1024xf32>
    %115 = arith.addf %113, %114 : vector<8x1024xf32>
    %cst_48 = arith.constant 0.000000e+00 : f32
    %116 = vector.broadcast %cst_48 : f32 to vector<8x1024xf32>
    %117 = arith.cmpf ogt, %115, %116 : vector<8x1024xf32>
    %cst_49 = arith.constant 2.000000e-01 : f32
    %118 = vector.broadcast %cst_49 : f32 to vector<8x1024xf32>
    %119 = arith.mulf %118, %115 : vector<8x1024xf32>
    %120 = arith.select %117, %115, %119 : vector<8x1024xi1>, vector<8x1024xf32>
    %c1_i32_50 = arith.constant 1 : i32
    %121 = tpu.memref_slice %arg17[%c1_i32_50] : memref<2x!tpu.dma_semaphore, #tpu.memory_space<semaphore_mem>> -> memref<1x!tpu.dma_semaphore, #tpu.memory_space<semaphore_mem>>
    %122 = tpu.memref_squeeze %121 : memref<1x!tpu.dma_semaphore, #tpu.memory_space<semaphore_mem>> -> memref<!tpu.dma_semaphore, #tpu.memory_space<semaphore_mem>>
    tpu.wait_dma2 semaphore(%122 : memref<!tpu.dma_semaphore, #tpu.memory_space<semaphore_mem>>) src(%arg12 : memref<1024x1024xbf16, #tpu.memory_space<any>>) dst(%arg16 : memref<1024x1024xbf16, #tpu.memory_space<vmem>>)
    %c0_51 = arith.constant 0 : index
    %c0_52 = arith.constant 0 : index
    %123 = vector.load %arg16[%c0_51, %c0_52] : memref<1024x1024xbf16, #tpu.memory_space<vmem>>, vector<1024x1024xbf16>
    %c0_53 = arith.constant 0 : index
    %c0_54 = arith.constant 0 : index
    %124 = vector.load %arg13[%c0_53, %c0_54] : memref<1x1024xf32, #tpu.memory_space<vmem>>, vector<1x1024xf32>
    %125 = arith.truncf %120 : vector<8x1024xf32> to vector<8x1024xbf16>
    %cst_55 = arith.constant dense<0.000000e+00> : vector<8x1024xf32>
    %126 = tpu.matmul %125, %123, %cst_55 {dimension_numbers = #tpu.dot_dimension_numbers<[1], [0], [0], [1], [0, 0, 1, 1], [], []>} : vector<8x1024xbf16>, vector<1024x1024xbf16>, vector<8x1024xf32> -> vector<8x1024xf32>
    %127 = vector.broadcast %124 : vector<1x1024xf32> to vector<8x1024xf32>
    %128 = arith.addf %126, %127 : vector<8x1024xf32>
    %129 = math.tanh %128 : vector<8x1024xf32>
    %c0_56 = arith.constant 0 : index
    %c0_57 = arith.constant 0 : index
    %130 = vector.load %arg14[%c0_56, %c0_57] : memref<8x1024xf32, #tpu.memory_space<vmem>>, vector<8x1024xf32>
    tpu.vector_store %arg14[%c0_56, %c0_57], %129 {strides = array<i32>} : memref<8x1024xf32, #tpu.memory_space<vmem>>, vector<8x1024xf32>,
    return
  }
}

</mosaic_0001>

<bundles_post_ra>
// kernel: generator_forward.1
= control target key start
LH: loop header
LB: loop body
LE: loop exit
PB: predicated region body
PF: predicated region fallthrough
CT: control target
= control target key end

     0   :  { %19 = vsyncpa [#allocation6], 0  ;;  %s4822_s0 = inlined_call_operand.vmem [shape: bf16[8,128], index: 0, kind: input, shape index: {}]   ;;  %s4823_s1 = inlined_call_operand.hbm [shape: bf16[128,128], index: 1, kind: input, shape index: {}]   ;;  %s4824_s2 = inlined_call_operand.hbm [shape: f32[1,128], index: 2, kind: input, shape index: {}]   ;;  %s4825_s3 = inlined_call_operand.hbm [shape: bf16[128,256], index: 3, kind: input, shape index: {}]   ;;  %s4826_s4 = inlined_call_operand.hbm [shape: f32[1,256], index: 4, kind: input, shape index: {}]   ;;  %s4827_s5 = inlined_call_operand.hbm [shape: f32[1,256], index: 5, kind: input, shape index: {}]   ;;  %s4828_s6 = inlined_call_operand.hbm [shape: bf16[256,512], index: 6, kind: input, shape index: {}]   ;;  %s4829_s7 = inlined_call_operand.hbm [shape: f32[1,512], index: 7, kind: input, shape index: {}]   ;;  %s4830_s8 = inlined_call_operand.hbm [shape: f32[1,512], index: 8, kind: input, shape index: {}]   ;;  %s4831_s9 = inlined_call_operand.hbm [shape: bf16[512,1024], index: 9, kind: input, shape index: {}]   ;;  %s4832_s10 = inlined_call_operand.hbm [shape: f32[1,1024], index: 10, kind: input, shape index: {}]   ;;  %s4833_s11 = inlined_call_operand.hbm [shape: f32[1,1024], index: 11, kind: input, shape index: {}]   ;;  %s4834_s12 = inlined_call_operand.hbm [shape: bf16[1024,1024], index: 12, kind: input, shape index: {}]   ;;  %s4835_s13 = inlined_call_operand.hbm [shape: f32[1,1024], index: 13, kind: input, shape index: {}]   ;;  %s4836_s14 = inlined_call_operand.vmem [shape: f32[8,1024], index: 14, kind: output, shape index: {}]  }
   0x1   :  { %20 = vsyncpa [#allocation8], 0 }
   0x2   :  { %21 = vsyncpa [#allocation11], 0 }
   0x3   :  { %22 = vsyncpa [#allocation14], 0 }
   0x4   :  { %23 = vsyncpa [#allocation17], 0 }
   0x5   :  { %24 = vsyncpa [#allocation20], 0  ;;  %s4215_s29 = smov [#allocation7]   ;;  %s4216_s15 = smov [#allocation10]  }
   0x6   :  { %s45_s30 = sshll.u32 %s4215_s29, 4  ;;  %s67_s16 = sshll.u32 %s4216_s15, 4  ;;  %s46_s30 = int_to_ptr.vmem [resolvable:$true] %s45_s30  ;;  %s68_s16 = int_to_ptr.vmem [resolvable:$true] %s67_s16 }
   0x7   :  { %s3957_s19 = scalar_lea.hbm %s4824_s2, 16 }
   0x8   :  { %p3958_p0 = scmp.ne.s32.totalorder %s4824_s2, %s3957_s19  ;;  %p3961_p1 = scmp.lt.u32.totalorder %s3957_s19, %s4824_s2 }
   0xa   :  { %p3963_p2 = pnand %p3961_p1, %p3958_p0 }
   0xc   :  { %3966 = shalt.err (!%p3963_p2)
}
   0xd   :  { %s3967_s24 = scalar_lea.vmem %s46_s30, 16  ;;  %s3971_s25 = scalar_lea.vmem %s46_s30, 32 }
   0xe   :  { %p3968_p3 = scmp.ne.s32.totalorder %s46_s30, %s3967_s24  ;;  %p3972_p4 = scmp.lt.s32.totalorder %s46_s30, %s46_s30 }
   0xf   :  { %p3973_p5 = scmp.lt.s32.totalorder %s3971_s25, %s3967_s24 }
  0x11   :  { %p3974_p6 = por %p3973_p5, %p3972_p4 }
  0x13   :  { %p3975_p7 = pnand %p3974_p6, %p3968_p3 }
  0x15   :  { %3978 = shalt.err (!%p3975_p7)
}
  0x16   :  { %48 = dma.hbm_to_vmem [thread:$0]  %s4824_s2, 16, %s46_s30, [#allocation8]  }
  0x17   :  { %s3979_s15 = scalar_lea.hbm %s4826_s4, 32 }
  0x18   :  { %p3980_p8 = scmp.ne.s32.totalorder %s4826_s4, %s3979_s15  ;;  %p3983_p9 = scmp.lt.u32.totalorder %s3979_s15, %s4826_s4 }
  0x1a   :  { %p3985_p10 = pnand %p3983_p9, %p3980_p8 }
  0x1c   :  { %3988 = shalt.err (!%p3985_p10)
}
  0x1d   :  { %s3989_s21 = scalar_lea.vmem %s68_s16, 32  ;;  %p3994_p12 = scmp.lt.s32.totalorder %s68_s16, %s68_s16 }
  0x1e   :  { %p3990_p11 = scmp.ne.s32.totalorder %s68_s16, %s3989_s21  ;;  %p3995_p13 = scmp.lt.s32.totalorder %s3989_s21, %s3989_s21 }
  0x20   :  { %p3996_p0 = por %p3995_p13, %p3994_p12 }
  0x22   :  { %p3997_p1 = pnand %p3996_p0, %p3990_p11 }
  0x24   :  { %4000 = shalt.err (!%p3997_p1)
}
  0x25   :  { %70 = dma.hbm_to_vmem [thread:$0]  %s4826_s4, 32, %s68_s16, [#allocation11]  }
  0x26   :  { %s4217_s22 = smov [#allocation13]   ;;  %s4001_s26 = scalar_lea.hbm %s4828_s6, 8192 }
  0x27   :  { %s86_s23 = sshll.u32 %s4217_s22, 4  ;;  %p4002_p2 = scmp.ne.s32.totalorder %s4828_s6, %s4001_s26  ;;  %s87_s23 = int_to_ptr.vmem [resolvable:$true] %s86_s23 }
  0x28   :  { %p4005_p3 = scmp.lt.u32.totalorder %s4001_s26, %s4828_s6 }
  0x2a   :  { %p4007_p4 = pnand %p4005_p3, %p4002_p2 }
  0x2c   :  { %4010 = shalt.err (!%p4007_p4)
}
  0x2d   :  { %s4011_s17 = scalar_lea.vmem %s87_s23, 8192  ;;  %p4016_p6 = scmp.lt.s32.totalorder %s87_s23, %s87_s23 }
  0x2e   :  { %p4012_p5 = scmp.ne.s32.totalorder %s87_s23, %s4011_s17  ;;  %p4017_p7 = scmp.lt.s32.totalorder %s4011_s17, %s4011_s17 }
  0x30   :  { %p4018_p8 = por %p4017_p7, %p4016_p6 }
  0x32   :  { %p4019_p9 = pnand %p4018_p8, %p4012_p5 }
  0x34   :  { %4022 = shalt.err (!%p4019_p9)
}
  0x35   :  { %s4218_s4 = smov 256   ;;  %s4219_s16 = smov 16  }
  0x36   :  { %92 = dma.hbm_to_vmem [thread:$0]  %s4828_s6, 8192, %s87_s23, [#allocation14], %s4218_s4, %s4218_s4, %s4219_s16  }
  0x37   :  { %s4220_s20 = smov [#allocation16]   ;;  %s4221_s2 = smov [#allocation19]  }
  0x38   :  { %s109_s21 = sshll.u32 %s4220_s20, 4  ;;  %s129_s30 = sshll.u32 %s4221_s2, 4  ;;  %s110_s21 = int_to_ptr.vmem [resolvable:$true] %s109_s21  ;;  %s130_s30 = int_to_ptr.vmem [resolvable:$true] %s129_s30 }
  0x39   :  { %s4023_s25 = scalar_lea.hbm %s4830_s8, 64 }
  0x3a   :  { %p4024_p10 = scmp.ne.s32.totalorder %s4830_s8, %s4023_s25  ;;  %p4027_p11 = scmp.lt.u32.totalorder %s4023_s25, %s4830_s8 }
  0x3c   :  { %p4029_p12 = pnand %p4027_p11, %p4024_p10 }
  0x3e   :  { %4032 = shalt.err (!%p4029_p12)
}
  0x3f   :  { %s4033_s6 = scalar_lea.vmem %s110_s21, 64  ;;  %p4038_p0 = scmp.lt.s32.totalorder %s110_s21, %s110_s21 }
  0x40   :  { %p4034_p13 = scmp.ne.s32.totalorder %s110_s21, %s4033_s6  ;;  %p4039_p1 = scmp.lt.s32.totalorder %s4033_s6, %s4033_s6 }
  0x42   :  { %p4040_p2 = por %p4039_p1, %p4038_p0 }
  0x44   :  { %p4041_p3 = pnand %p4040_p2, %p4034_p13 }
  0x46   :  { %4044 = shalt.err (!%p4041_p3)
}
  0x47   :  { %112 = dma.hbm_to_vmem [thread:$0]  %s4830_s8, 64, %s110_s21, [#allocation17]  }
  0x48   :  { %s4045_s16 = scalar_lea.hbm %s4833_s11, 128 }
  0x49   :  { %p4046_p4 = scmp.ne.s32.totalorder %s4833_s11, %s4045_s16  ;;  %p4049_p5 = scmp.lt.u32.totalorder %s4045_s16, %s4833_s11 }
  0x4b   :  { %p4051_p6 = pnand %p4049_p5, %p4046_p4 }
  0x4d   :  { %4054 = shalt.err (!%p4051_p6)
}
  0x4e   :  { %s4055_s22 = scalar_lea.vmem %s130_s30, 128  ;;  %p4060_p8 = scmp.lt.s32.totalorder %s130_s30, %s130_s30 }
  0x4f   :  { %p4056_p7 = scmp.ne.s32.totalorder %s130_s30, %s4055_s22  ;;  %p4061_p9 = scmp.lt.s32.totalorder %s4055_s22, %s4055_s22 }
  0x51   :  { %p4062_p10 = por %p4061_p9, %p4060_p8 }
  0x53   :  { %p4063_p11 = pnand %p4062_p10, %p4056_p7 }
  0x55   :  { %4066 = shalt.err (!%p4063_p11)
}
  0x56   :  { %132 = dma.hbm_to_vmem [thread:$0]  %s4833_s11, 128, %s130_s30, [#allocation20]  }
  0x57   :  { %s4222_s24 = smov [#allocation5]   ;;  %s4067_s28 = scalar_lea.hbm %s4823_s1, 1024 }
  0x58   :  { %s32_s25 = sshll.u32 %s4222_s24, 4  ;;  %p4068_p12 = scmp.ne.s32.totalorder %s4823_s1, %s4067_s28  ;;  %s33_s25 = int_to_ptr.vmem [resolvable:$true] %s32_s25 }
  0x59   :  { %p4071_p13 = scmp.lt.u32.totalorder %s4067_s28, %s4823_s1 }
  0x5b   :  { %p4073_p0 = pnand %p4071_p13, %p4068_p12 }
  0x5d   :  { %4076 = shalt.err (!%p4073_p0)
}
  0x5e   :  { %s4077_s17 = scalar_lea.vmem %s33_s25, 1024  ;;  %p4082_p2 = scmp.lt.s32.totalorder %s33_s25, %s33_s25 }
  0x5f   :  { %p4078_p1 = scmp.ne.s32.totalorder %s33_s25, %s4077_s17  ;;  %p4083_p3 = scmp.lt.s32.totalorder %s4077_s17, %s4077_s17 }
  0x61   :  { %p4084_p4 = por %p4083_p3, %p4082_p2 }
  0x63   :  { %p4085_p5 = pnand %p4084_p4, %p4078_p1 }
  0x65   :  { %4088 = shalt.err (!%p4085_p5)
}
  0x66   :  { %s4223_s11 = smov 64   ;;  %s4224_s30 = smov 4  }
  0x67   :  { %38 = dma.hbm_to_vmem [thread:$0]  %s4823_s1, 1024, %s33_s25, [#allocation6], %s4223_s11, %s4223_s11, %s4224_s30  }
  0x68   :  { %s4225_s18 = smov [#allocation9]   ;;  %s4089_s22 = scalar_lea.hbm %s4825_s3, 2048 }
  0x69   :  { %s54_s19 = sshll.u32 %s4225_s18, 4  ;;  %p4090_p6 = scmp.ne.s32.totalorder %s4825_s3, %s4089_s22  ;;  %s55_s19 = int_to_ptr.vmem [resolvable:$true] %s54_s19 }
  0x6a   :  { %p4093_p7 = scmp.lt.u32.totalorder %s4089_s22, %s4825_s3 }
  0x6c   :  { %p4095_p8 = pnand %p4093_p7, %p4090_p6 }
  0x6e   :  { %4098 = shalt.err (!%p4095_p8)
}
  0x6f   :  { %s4099_s27 = scalar_lea.vmem %s55_s19, 2048  ;;  %p4104_p10 = scmp.lt.s32.totalorder %s55_s19, %s55_s19 }
  0x70   :  { %p4100_p9 = scmp.ne.s32.totalorder %s55_s19, %s4099_s27  ;;  %p4105_p11 = scmp.lt.s32.totalorder %s4099_s27, %s4099_s27 }
  0x72   :  { %p4106_p12 = por %p4105_p11, %p4104_p10 }
  0x74   :  { %p4107_p13 = pnand %p4106_p12, %p4100_p9 }
  0x76   :  { %4110 = shalt.err (!%p4107_p13)
}
  0x77   :  { %s4226_s1 = smov 128   ;;  %s4227_s25 = smov 8  }
  0x78   :  { %60 = dma.hbm_to_vmem [thread:$0]  %s4825_s3, 2048, %s55_s19, [#allocation8], %s4226_s1, %s4226_s1, %s4227_s25  }
  0x79   :  { %s4228_s6 = smov [#allocation12]   ;;  %s4229_s15 = smov [#allocation15]  }
  0x7a   :  { %s77_s23 = sshll.u32 %s4228_s6, 4  ;;  %s99_s17 = sshll.u32 %s4229_s15, 4  ;;  %s78_s23 = int_to_ptr.vmem [resolvable:$true] %s77_s23  ;;  %s100_s17 = int_to_ptr.vmem [resolvable:$true] %s99_s17 }
  0x7b   :  { %s4111_s18 = scalar_lea.hbm %s4827_s5, 32 }
  0x7c   :  { %p4112_p0 = scmp.ne.s32.totalorder %s4827_s5, %s4111_s18  ;;  %p4115_p1 = scmp.lt.u32.totalorder %s4111_s18, %s4827_s5 }
  0x7e   :  { %p4117_p2 = pnand %p4115_p1, %p4112_p0 }
  0x80   :  { %4120 = shalt.err (!%p4117_p2)
}
  0x81   :  { %s4121_s3 = scalar_lea.vmem %s78_s23, 32  ;;  %p4126_p4 = scmp.lt.s32.totalorder %s78_s23, %s78_s23 }
  0x82   :  { %p4122_p3 = scmp.ne.s32.totalorder %s78_s23, %s4121_s3  ;;  %p4127_p5 = scmp.lt.s32.totalorder %s4121_s3, %s4121_s3 }
  0x84   :  { %p4128_p6 = por %p4127_p5, %p4126_p4 }
  0x86   :  { %p4129_p7 = pnand %p4128_p6, %p4122_p3 }
  0x88   :  { %4132 = shalt.err (!%p4129_p7)
}
  0x89   :  { %80 = dma.hbm_to_vmem [thread:$0]  %s4827_s5, 32, %s78_s23, [#allocation11]  }
  0x8a   :  { %s4133_s27 = scalar_lea.hbm %s4829_s7, 64 }
  0x8b   :  { %p4134_p8 = scmp.ne.s32.totalorder %s4829_s7, %s4133_s27  ;;  %p4137_p9 = scmp.lt.u32.totalorder %s4133_s27, %s4829_s7 }
  0x8d   :  { %p4139_p10 = pnand %p4137_p9, %p4134_p8 }
  0x8f   :  { %4142 = shalt.err (!%p4139_p10)
}
  0x90   :  { %s4143_s4 = scalar_lea.vmem %s100_s17, 64  ;;  %p4148_p12 = scmp.lt.s32.totalorder %s100_s17, %s100_s17 }
  0x91   :  { %p4144_p11 = scmp.ne.s32.totalorder %s100_s17, %s4143_s4  ;;  %p4149_p13 = scmp.lt.s32.totalorder %s4143_s4, %s4143_s4 }
  0x93   :  { %p4150_p0 = por %p4149_p13, %p4148_p12 }
  0x95   :  { %p4151_p1 = pnand %p4150_p0, %p4144_p11 }
  0x97   :  { %4154 = shalt.err (!%p4151_p1)
}
  0x98   :  { %102 = dma.hbm_to_vmem [thread:$0]  %s4829_s7, 64, %s100_s17, [#allocation14]  }
  0x99   :  { %s4230_s16 = smov [#allocation18]   ;;  %s4231_s20 = smov [#allocation21]  }
  0x9a   :  { %s119_s18 = sshll.u32 %s4230_s16, 4  ;;  %s139_s2 = sshll.u32 %s4231_s20, 4  ;;  %s120_s18 = int_to_ptr.vmem [resolvable:$true] %s119_s18  ;;  %s140_s2 = int_to_ptr.vmem [resolvable:$true] %s139_s2 }
  0x9b   :  { %s4155_s3 = scalar_lea.hbm %s4832_s10, 128 }
  0x9c   :  { %p4156_p2 = scmp.ne.s32.totalorder %s4832_s10, %s4155_s3  ;;  %p4159_p3 = scmp.lt.u32.totalorder %s4155_s3, %s4832_s10 }
  0x9e   :  { %p4161_p4 = pnand %p4159_p3, %p4156_p2 }
  0xa0   :  { %4164 = shalt.err (!%p4161_p4)
}
  0xa1   :  { %s4165_s7 = scalar_lea.vmem %s120_s18, 128  ;;  %p4170_p6 = scmp.lt.s32.totalorder %s120_s18, %s120_s18 }
  0xa2   :  { %p4166_p5 = scmp.ne.s32.totalorder %s120_s18, %s4165_s7  ;;  %p4171_p7 = scmp.lt.s32.totalorder %s4165_s7, %s4165_s7 }
  0xa4   :  { %p4172_p8 = por %p4171_p7, %p4170_p6 }
  0xa6   :  { %p4173_p9 = pnand %p4172_p8, %p4166_p5 }
  0xa8   :  { %4176 = shalt.err (!%p4173_p9)
}
  0xa9   :  { %122 = dma.hbm_to_vmem [thread:$0]  %s4832_s10, 128, %s120_s18, [#allocation17]  }
  0xaa   :  { %s4177_s6 = scalar_lea.hbm %s4835_s13, 128 }
  0xab   :  { %p4178_p10 = scmp.ne.s32.totalorder %s4835_s13, %s4177_s6  ;;  %p4181_p11 = scmp.lt.u32.totalorder %s4177_s6, %s4835_s13 }
  0xad   :  { %p4183_p12 = pnand %p4181_p11, %p4178_p10 }
  0xaf   :  { %4186 = shalt.err (!%p4183_p12)
}
  0xb0   :  { %s4187_s16 = scalar_lea.vmem %s140_s2, 128  ;;  %p4192_p0 = scmp.lt.s32.totalorder %s140_s2, %s140_s2 }
  0xb1   :  { %p4188_p13 = scmp.ne.s32.totalorder %s140_s2, %s4187_s16  ;;  %p4193_p1 = scmp.lt.s32.totalorder %s4187_s16, %s4187_s16 }
  0xb3   :  { %p4194_p2 = por %p4193_p1, %p4192_p0 }
  0xb5   :  { %p4195_p3 = pnand %p4194_p2, %p4188_p13 }
  0xb7   :  { %4198 = shalt.err (!%p4195_p3)
}
  0xb8   :  { %142 = dma.hbm_to_vmem [thread:$0]  %s4835_s13, 128, %s140_s2, [#allocation20]  }
  0xb9   :  { %4199 = dma.done.wait [#allocation6], 1024  }
  0xba   :  { %4200 = vsyncadd [#allocation6], 4294966272 }
  0xbb   :  { %4201 = dma.done.wait [#allocation8], 2064  }
  0xbc   :  { %4202 = vsyncadd [#allocation8], 4294965232 }
  0xbd   :  { %4203 = dma.done.wait [#allocation11], 64  }
  0xbe   :  { %4204 = vsyncadd [#allocation11], 4294967232 }
  0xbf   :  { %4205 = dma.done.wait [#allocation14], 8256  }
  0xc0   :  { %4206 = vsyncadd [#allocation14], 4294959040 }
  0xc1   :  { %4207 = dma.done.wait [#allocation17], 192  }
  0xc2   :  { %4208 = vsyncadd [#allocation17], 4294967104 }
  0xc3   :  { %4209 = dma.done.wait [#allocation20], 256  }
  0xc4   :  { %4210 = vsyncadd [#allocation20], 4294967040  ;;  %s181_s20 = sld [smem:[#allocation0]]   ;;  %197 = sst [smem:[#allocation23 + $0x2]] %s4227_s25  ;;  %v4232_v0 = vmov 0.0   ;;  %vm4233_vm0 = vmmov 0  }
  0xc5   :  { %3663 = vmatprep.subr.bf16.mxu0 %v4232_v0  ;;  %3679 = vmatprep.mubr.msk.bf16.mxu0 %vm4233_vm0, %v4232_v0  ;;  %199 = sst [smem:[#allocation23 + $0x3]] %s4223_s11  ;;  %s4234_s13 = smov [#allocation2]   ;;  %v4243_v26 = vmov 0  }
  0xc6   :  { %s189_s2 = sshll.u32 %s4234_s13, 4  ;;  %201 = sst [smem:[#allocation23 + $0x4]] %s4226_s1  ;;  %496 = vmatprep.mubr.bf16.mxu1 %v4243_v26  ;;  %s190_s2 = int_to_ptr.vmem [resolvable:$true] %s189_s2 }
  0xc7   :  { %207 = sst [smem:[#allocation23 + $0x7]] %s4223_s11  ;;  %s4235_s22 = smov 1024  }
  0xc8   :  { %209 = sst [smem:[#allocation23 + $0x8]] %s4224_s30  ;;  %s4236_s19 = smov 2  }
  0xc9   :  { %193 = sst [smem:[#allocation23]] %s4235_s22  ;;  %s4237_s21 = smov 512  }
  0xca   :  { %s3558_s8 = sshll.u32 %s181_s20, 26  ;;  %195 = sst [smem:[#allocation23 + $0x1]] %s4235_s22 }
  0xcb   :  { %s3559_s3 = sadd.s32 134217728, %s3558_s8  ;;  %203 = sst [smem:[#allocation23 + $0x5]] %s4236_s19 }
  0xcc   :  { %205 = sst [smem:[#allocation23 + $0x6]] %s4237_s21  ;;  %s4238_s24 = smov [#allocation4]  }
  0xcd   :  { %s4239_s26 = smov [#allocation22]   ;;  %s4240_s27 = smov [#allocation3]  }
  0xce   :  { %211 = dma.general %s4831_s9, 32768, %s190_s2, %s4238_s24, %s4239_s26, [#allocation23], %s3559_s3, 0  }
  0xcf   :  { %228 = sst [smem:[#allocation25]] %s4235_s22  ;;  %s224_s28 = sshll.u32 %s4240_s27, 4  ;;  %s225_s28 = int_to_ptr.vmem [resolvable:$true] %s224_s28 }
  0xd0   :  { %230 = sst [smem:[#allocation25 + $0x1]] %s4235_s22  ;;  %s4241_s29 = smov [#allocation4 + $0x1]  }
  0xd1   :  { %232 = sst [smem:[#allocation25 + $0x2]] %s4227_s25  ;;  %s4242_s6 = smov [#allocation24]  }
  0xd2   :  { %234 = sst [smem:[#allocation25 + $0x3]] %s4223_s11 }
  0xd3   :  { %236 = sst [smem:[#allocation25 + $0x4]] %s4226_s1 }
  0xd4   :  { %238 = sst [smem:[#allocation25 + $0x5]] %s4236_s19 }
  0xd5   :  { %240 = sst [smem:[#allocation25 + $0x6]] %s4237_s21 }
  0xd6   :  { %242 = sst [smem:[#allocation25 + $0x7]] %s4223_s11 }
  0xd7   :  { %244 = sst [smem:[#allocation25 + $0x8]] %s4224_s30 }
  0xd8   :  { %246 = dma.general %s4834_s12, 65536, %s225_s28, %s4241_s29, %s4242_s6, [#allocation25], %s3559_s3, 0  }
  0xd9   :  { %v3785_v1 = vld [vmem:[#allocation5] sm:$0xff]   ;;  %v3786_v2 = vld [vmem:[#allocation5 + $0x8] sm:$0xff]   ;;  %v3787_v3 = vld [vmem:[#allocation5 + $0x10] sm:$0xff]  }
  0xda   :  { %3664 = vmatpush3.bf16.msra.mxu0 %v3785_v1  ;;  %v3793_v4 = vld [vmem:[#allocation9 + $0x4] ss:$8 sps:$4 sm:$0xff]   ;;  %v3795_v5 = vld [vmem:[#allocation9] ss:$8 sps:$4 sm:$0xff]   ;;  %v3788_v6 = vld [vmem:[#allocation5 + $0x18] sm:$0xff]  }
  0xdb   :  { %3665 = vmatprep.subr.bf16.mxu0 %v4232_v0  ;;  %v3796_v7 = vld [vmem:[#allocation9 + $0x14] ss:$8 sps:$4 sm:$0xff]   ;;  %464 = vmatprep.subr.bf16.mxu1 %v3793_v4  ;;  %v3798_v8 = vld [vmem:[#allocation9 + $0x10] ss:$8 sps:$4 sm:$0xff]   ;;  %v3799_v9 = vld [vmem:[#allocation9 + $0x24] ss:$8 sps:$4 sm:$0xff]  }
  0xdc   :  { %465 = vmatpush1.bf16.msra.mxu1 %v3795_v5  ;;  %v3789_v10 = vld [vmem:[#allocation5 + $0x20] sm:$0xff]   ;;  %v3790_v11 = vld [vmem:[#allocation5 + $0x28] sm:$0xff]   ;;  %v3804_v14 = vld [vmem:[#allocation9 + $0x30] ss:$8 sps:$4 sm:$0xff]  }
  0xdd   :  { %466 = vmatprep.subr.bf16.mxu1 %v3796_v7  ;;  %v3801_v12 = vld [vmem:[#allocation9 + $0x20] ss:$8 sps:$4 sm:$0xff]   ;;  %v3802_v13 = vld [vmem:[#allocation9 + $0x34] ss:$8 sps:$4 sm:$0xff]   ;;  %v3805_v15 = vld [vmem:[#allocation9 + $0x44] ss:$8 sps:$4 sm:$0xff]  }
  0xde   :  { %3666 = vmatpush3.bf16.msra.mxu0 %v3786_v2  ;;  %v3791_v16 = vld [vmem:[#allocation5 + $0x30] sm:$0xff]   ;;  %v3807_v17 = vld [vmem:[#allocation9 + $0x40] ss:$8 sps:$4 sm:$0xff]   ;;  %v3792_v19 = vld [vmem:[#allocation5 + $0x38] sm:$0xff]  }
  0xdf   :  { %3667 = vmatprep.subr.bf16.mxu0 %v4232_v0  ;;  %v3808_v18 = vld [vmem:[#allocation9 + $0x54] ss:$8 sps:$4 sm:$0xff]   ;;  %v3810_v20 = vld [vmem:[#allocation9 + $0x50] ss:$8 sps:$4 sm:$0xff]   ;;  %v3811_v22 = vld [vmem:[#allocation9 + $0x64] ss:$8 sps:$4 sm:$0xff]  }
  0xe0   :  { %467 = vmatpush1.bf16.msra.mxu1 %v3798_v8  ;;  %v252_v21 = vld [vmem:[%s4822_s0] sm:$0xf]  ;;  %v3816_v25 = vld [vmem:[#allocation9 + $0x70] ss:$8 sps:$4 sm:$0xff]   ;;  %v3817_v38 = vld [vmem:[#allocation13] ss:$16 sps:$4 sm:$0xff]  }
  0xe1   :  { %468 = vmatprep.subr.bf16.mxu1 %v3799_v9  ;;  %v3813_v23 = vld [vmem:[#allocation9 + $0x60] ss:$8 sps:$4 sm:$0xff]   ;;  %v3814_v24 = vld [vmem:[#allocation9 + $0x74] ss:$8 sps:$4 sm:$0xff]  }
  0xe2   :  { %3668 = vmatpush3.bf16.msra.mxu0 %v3787_v3  ;;  %v3563_v27 = vld [vmem:[#allocation7] ss:$0 sm:$0xff]  ;;  %v3819_v36 = vld [vmem:[#allocation13 + $0x4] ss:$16 sps:$4 sm:$0xff]   ;;  %v3822_v37 = vld [vmem:[#allocation13 + $0xc] ss:$16 sps:$4 sm:$0xff]  }
  0xe3   :  { %3669 = vmatprep.subr.bf16.mxu0 %v4232_v0  ;;  %v3820_v39 = vld [vmem:[#allocation13 + $0x8] ss:$16 sps:$4 sm:$0xff]   ;;  %v3825_v40 = vld [vmem:[#allocation13 + $0x24] ss:$16 sps:$4 sm:$0xff]   ;;  %v3828_v41 = vld [vmem:[#allocation13 + $0x2c] ss:$16 sps:$4 sm:$0xff]  }
  0xe4   :  { %469 = vmatpush1.bf16.msra.mxu1 %v3801_v12  ;;  %v3823_v42 = vld [vmem:[#allocation13 + $0x20] ss:$16 sps:$4 sm:$0xff]   ;;  %v3826_v43 = vld [vmem:[#allocation13 + $0x28] ss:$16 sps:$4 sm:$0xff]   ;;  %v3831_v44 = vld [vmem:[#allocation13 + $0x44] ss:$16 sps:$4 sm:$0xff]  }
  0xe5   :  { %470 = vmatprep.subr.bf16.mxu1 %v3802_v13  ;;  %v3834_v45 = vld [vmem:[#allocation13 + $0x4c] ss:$16 sps:$4 sm:$0xff]   ;;  %v3829_v46 = vld [vmem:[#allocation13 + $0x40] ss:$16 sps:$4 sm:$0xff]   ;;  %v3832_v47 = vld [vmem:[#allocation13 + $0x48] ss:$16 sps:$4 sm:$0xff]  }
  0xe6   :  { %3670 = vmatpush3.bf16.msra.mxu0 %v3788_v6  ;;  %v3837_v48 = vld [vmem:[#allocation13 + $0x64] ss:$16 sps:$4 sm:$0xff]   ;;  %v3840_v49 = vld [vmem:[#allocation13 + $0x6c] ss:$16 sps:$4 sm:$0xff]   ;;  %v3835_v50 = vld [vmem:[#allocation13 + $0x60] ss:$16 sps:$4 sm:$0xff]  }
  0xe7   :  { %3671 = vmatprep.subr.bf16.mxu0 %v4232_v0  ;;  %v3838_v51 = vld [vmem:[#allocation13 + $0x68] ss:$16 sps:$4 sm:$0xff]   ;;  %v3843_v52 = vld [vmem:[#allocation13 + $0x84] ss:$16 sps:$4 sm:$0xff]   ;;  %v3846_v53 = vld [vmem:[#allocation13 + $0x8c] ss:$16 sps:$4 sm:$0xff]  }
  0xe8   :  { %471 = vmatpush1.bf16.msra.mxu1 %v3804_v14  ;;  %v3841_v54 = vld [vmem:[#allocation13 + $0x80] ss:$16 sps:$4 sm:$0xff]   ;;  %v3844_v55 = vld [vmem:[#allocation13 + $0x88] ss:$16 sps:$4 sm:$0xff]   ;;  %v3849_v56 = vld [vmem:[#allocation13 + $0xa4] ss:$16 sps:$4 sm:$0xff]  }
  0xe9   :  { %472 = vmatprep.subr.bf16.mxu1 %v3805_v15  ;;  %v3852_v57 = vld [vmem:[#allocation13 + $0xac] ss:$16 sps:$4 sm:$0xff]   ;;  %v3847_v58 = vld [vmem:[#allocation13 + $0xa0] ss:$16 sps:$4 sm:$0xff]   ;;  %v3850_v59 = vld [vmem:[#allocation13 + $0xa8] ss:$16 sps:$4 sm:$0xff]  }
  0xea   :  { %3672 = vmatpush3.bf16.msra.mxu0 %v3789_v10  ;;  %v3855_v60 = vld [vmem:[#allocation13 + $0xc4] ss:$16 sps:$4 sm:$0xff]   ;;  %v3853_v61 = vld [vmem:[#allocation13 + $0xc0] ss:$16 sps:$4 sm:$0xff]   ;;  %v3856_v62 = vld [vmem:[#allocation13 + $0xc8] ss:$16 sps:$4 sm:$0xff]  }
  0xeb   :  { %3673 = vmatprep.subr.bf16.mxu0 %v4232_v0  ;;  %v3858_v63 = vld [vmem:[#allocation13 + $0xcc] ss:$16 sps:$4 sm:$0xff]   ;;  %v3861_v1 = vld [vmem:[#allocation13 + $0xe4] ss:$16 sps:$4 sm:$0xff]   ;;  %v3859_v3 = vld [vmem:[#allocation13 + $0xe0] ss:$16 sps:$4 sm:$0xff]  }
  0xec   :  { %473 = vmatpush1.bf16.msra.mxu1 %v3807_v17  ;;  %v3864_v2 = vld [vmem:[#allocation13 + $0xec] ss:$16 sps:$4 sm:$0xff]   ;;  %v3862_v4 = vld [vmem:[#allocation13 + $0xe8] ss:$16 sps:$4 sm:$0xff]   ;;  %v3867_v5 = vld [vmem:[#allocation13 + $0x104] ss:$16 sps:$4 sm:$0xff]  }
  0xed   :  { %474 = vmatprep.subr.bf16.mxu1 %v3808_v18  ;;  %v3870_v6 = vld [vmem:[#allocation13 + $0x10c] ss:$16 sps:$4 sm:$0xff]   ;;  %v3865_v7 = vld [vmem:[#allocation13 + $0x100] ss:$16 sps:$4 sm:$0xff]   ;;  %v3868_v8 = vld [vmem:[#allocation13 + $0x108] ss:$16 sps:$4 sm:$0xff]  }
  0xee   :  { %3674 = vmatpush3.bf16.msra.mxu0 %v3790_v11  ;;  %v3873_v9 = vld [vmem:[#allocation13 + $0x124] ss:$16 sps:$4 sm:$0xff]   ;;  %v3876_v10 = vld [vmem:[#allocation13 + $0x12c] ss:$16 sps:$4 sm:$0xff]   ;;  %v3871_v11 = vld [vmem:[#allocation13 + $0x120] ss:$16 sps:$4 sm:$0xff]  }
  0xef   :  { %3675 = vmatprep.subr.bf16.mxu0 %v4232_v0  ;;  %v3874_v12 = vld [vmem:[#allocation13 + $0x128] ss:$16 sps:$4 sm:$0xff]   ;;  %v3879_v13 = vld [vmem:[#allocation13 + $0x144] ss:$16 sps:$4 sm:$0xff]   ;;  %v3882_v14 = vld [vmem:[#allocation13 + $0x14c] ss:$16 sps:$4 sm:$0xff]  }
  0xf0   :  { %475 = vmatpush1.bf16.msra.mxu1 %v3810_v20  ;;  %v3877_v15 = vld [vmem:[#allocation13 + $0x140] ss:$16 sps:$4 sm:$0xff]   ;;  %v3885_v17 = vld [vmem:[#allocation13 + $0x164] ss:$16 sps:$4 sm:$0xff]   ;;  %v3888_v18 = vld [vmem:[#allocation13 + $0x16c] ss:$16 sps:$4 sm:$0xff]  }
  0xf1   :  { %476 = vmatprep.subr.bf16.mxu1 %v3811_v22  ;;  %v3886_v20 = vld [vmem:[#allocation13 + $0x168] ss:$16 sps:$4 sm:$0xff]   ;;  %v3894_v22 = vld [vmem:[#allocation13 + $0x18c] ss:$16 sps:$4 sm:$0xff]  }
  0xf2   :  { %3676 = vmatpush3.bf16.msra.mxu0 %v3791_v16  ;;  %v3880_v16 = vld [vmem:[#allocation13 + $0x148] ss:$16 sps:$4 sm:$0xff]   ;;  %v3900_v26 = vld [vmem:[#allocation13 + $0x1ac] ss:$16 sps:$4 sm:$0xff]  }
  0xf3   :  { %3677 = vmatprep.subr.bf16.mxu0 %v4232_v0 }
  0xf4   :  { %477 = vmatpush1.bf16.msra.mxu1 %v3813_v23  ;;  %v3889_v23 = vld [vmem:[#allocation13 + $0x180] ss:$16 sps:$4 sm:$0xff]  }
  0xf5   :  { %478 = vmatprep.subr.bf16.mxu1 %v3814_v24  ;;  %v3892_v24 = vld [vmem:[#allocation13 + $0x188] ss:$16 sps:$4 sm:$0xff]  }
  0xf6   :  { %3678 = vmatpush3.bf16.msra.mxu0 %v3792_v19  ;;  %v3883_v19 = vld [vmem:[#allocation13 + $0x160] ss:$16 sps:$4 sm:$0xff]  }
  0xf7   :  { %1005 = vmatprep.subr.bf16.mxu0 %v3819_v36  ;;  %v3912_v36 = vld [vmem:[#allocation13 + $0x1ec] ss:$16 sps:$4 sm:$0xff]  }
  0xf8   :  { %479 = vmatpush1.bf16.msra.mxu1 %v3816_v25  ;;  %v3897_v25 = vld [vmem:[#allocation13 + $0x1a4] ss:$16 sps:$4 sm:$0xff]  }
  0xf9   :  { %3680 = vmatmul.mubr.bf16.vlgmr.msra.gmra.mrb[0].mxu0 %v252_v21  ;;  %1046 = vmatprep.subr.bf16.mxu1 %v3822_v37  ;;  %v3891_v21 = vld [vmem:[#allocation13 + $0x184] ss:$16 sps:$4 sm:$0xff]   ;;  %v247_v37 = vlaneseq }
  0xfa   :  { %1006 = vmatpush1.bf16.msra.mxu0 %v3817_v38 }
  0xfb   :  { %1007 = vmatprep.subr.bf16.mxu0 %v3825_v40  ;;  %v4486_v38 = vshrl.u32 %v247_v37, 7 }
  0xfd   :  { %vm249_vm2 = vcmp.lt.s32.totalorder %v4486_v38, 2 }
  0xfe   :  { %1008 = vmatpush1.bf16.msra.mxu0 %v3823_v42 }
  0xff   :  { %1009 = vmatprep.subr.bf16.mxu0 %v3831_v44 }
 0x102   :  { %1010 = vmatpush1.bf16.msra.mxu0 %v3829_v46 }
 0x103   :  { %1011 = vmatprep.subr.bf16.mxu0 %v3837_v48 }
 0x106   :  { %1012 = vmatpush1.bf16.msra.mxu0 %v3835_v50 }
 0x107   :  { %1013 = vmatprep.subr.bf16.mxu0 %v3843_v52 }
 0x10a   :  { %1014 = vmatpush1.bf16.msra.mxu0 %v3841_v54 }
 0x10b   :  { %1015 = vmatprep.subr.bf16.mxu0 %v3849_v56 }
 0x10e   :  { %1016 = vmatpush1.bf16.msra.mxu0 %v3847_v58 }
 0x10f   :  { %1017 = vmatprep.subr.bf16.mxu0 %v3855_v60 }
 0x112   :  { %1018 = vmatpush1.bf16.msra.mxu0 %v3853_v61 }
 0x113   :  { %1019 = vmatprep.subr.bf16.mxu0 %v3861_v1 }
 0x116   :  { %1020 = vmatpush1.bf16.msra.mxu0 %v3859_v3 }
 0x117   :  { %1021 = vmatprep.subr.bf16.mxu0 %v3867_v5 }
 0x11a   :  { %1022 = vmatpush1.bf16.msra.mxu0 %v3865_v7 }
 0x11b   :  { %1023 = vmatprep.subr.bf16.mxu0 %v3873_v9 }
 0x11e   :  { %1024 = vmatpush1.bf16.msra.mxu0 %v3871_v11 }
 0x11f   :  { %1025 = vmatprep.subr.bf16.mxu0 %v3879_v13 }
 0x122   :  { %1026 = vmatpush1.bf16.msra.mxu0 %v3877_v15 }
 0x123   :  { %1027 = vmatprep.subr.bf16.mxu0 %v3885_v17 }
 0x126   :  { %1028 = vmatpush1.bf16.msra.mxu0 %v3883_v19 }
 0x127   :  { %1029 = vmatprep.subr.bf16.mxu0 %v3891_v21 }
 0x12a   :  { %1030 = vmatpush1.bf16.msra.mxu0 %v3889_v23 }
 0x12b   :  { %1031 = vmatprep.subr.bf16.mxu0 %v3897_v25 }
 0x1cc   :  { %v358_v28 = vpop.f32.mrb[0].mxu0 }
 0x1cd   :  { %v359_v29 = vadd.f32 %v3563_v27, %v358_v28  ;;  %v3681_v30 = vpop.f32.mrb[1].mxu0  ;;  %v3895_v27 = vld [vmem:[#allocation13 + $0x1a0] ss:$16 sps:$4 sm:$0xff]   ;;  %v3898_v28 = vld [vmem:[#allocation13 + $0x1a8] ss:$16 sps:$4 sm:$0xff]  }
 0x1ce   :  { %v361_v31 = vpop.f32.mrb[2].mxu0  ;;  %1032 = vmatpush1.bf16.msra.mxu0 %v3895_v27  ;;  %v3906_v30 = vld [vmem:[#allocation13 + $0x1cc] ss:$16 sps:$4 sm:$0xff]  }
 0x1cf   :  { %vm364_vm1 = vcmp.gt.f32.partialorder %v359_v29, 0.0  ;;  %v365_v32 = vmul.f32 0.2, %v359_v29  ;;  %v3682_v33 = vpop.f32.mrb[3].mxu0  ;;  %v3901_v31 = vld [vmem:[#allocation13 + $0x1c0] ss:$16 sps:$4 sm:$0xff]  }
 0x1d0   :  { %v3907_v33 = vld [vmem:[#allocation13 + $0x1e0] ss:$16 sps:$4 sm:$0xff]  }
 0x1d1   :  { %v366_v34 = vsel %vm364_vm1, %v359_v29, %v365_v32  ;;  %v3903_v29 = vld [vmem:[#allocation13 + $0x1c4] ss:$16 sps:$4 sm:$0xff]   ;;  %v3904_v32 = vld [vmem:[#allocation13 + $0x1c8] ss:$16 sps:$4 sm:$0xff]  }
 0x1d2   :  { %v383_v35 = vpack.c.bf16 %v366_v34, %v366_v34  ;;  %1033 = vmatprep.subr.bf16.mxu0 %v3903_v29  ;;  %v3909_v34 = vld [vmem:[#allocation13 + $0x1e4] ss:$16 sps:$4 sm:$0xff]   ;;  %v4503_v29 = vsub.s32 1, %v4486_v38 }
 0x1d3   :  { %1034 = vmatpush1.bf16.msra.mxu0 %v3901_v31 }
 0x1d4   :  { %497 = vmatmul.mubr.bf16.vlgmr.msra.gmra.mrb[0].mxu1 %v383_v35  ;;  %v3910_v35 = vld [vmem:[#allocation13 + $0x1e8] ss:$16 sps:$4 sm:$0xff]   ;;  %1035 = vmatprep.subr.bf16.mxu0 %v3909_v34 }
 0x1d5   :  { %1047 = vmatpush1.bf16.msra.mxu1 %v3820_v39  ;;  %v4490_v39 = vsel %vm249_vm2, 1.0, %v4232_v0 }
 0x1d6   :  { %1048 = vmatprep.subr.bf16.mxu1 %v3828_v41 }
 0x1d7   :  { %1036 = vmatpush1.bf16.msra.mxu0 %v3907_v33 }
 0x1d9   :  { %1049 = vmatpush1.bf16.msra.mxu1 %v3826_v43 }
 0x1da   :  { %1050 = vmatprep.subr.bf16.mxu1 %v3834_v45 }
 0x1dd   :  { %1051 = vmatpush1.bf16.msra.mxu1 %v3832_v47 }
 0x1de   :  { %1052 = vmatprep.subr.bf16.mxu1 %v3840_v49 }
 0x1e1   :  { %1053 = vmatpush1.bf16.msra.mxu1 %v3838_v51 }
 0x1e2   :  { %1054 = vmatprep.subr.bf16.mxu1 %v3846_v53 }
 0x1e5   :  { %1055 = vmatpush1.bf16.msra.mxu1 %v3844_v55 }
 0x1e6   :  { %1056 = vmatprep.subr.bf16.mxu1 %v3852_v57 }
 0x1e9   :  { %1057 = vmatpush1.bf16.msra.mxu1 %v3850_v59 }
 0x1ea   :  { %1058 = vmatprep.subr.bf16.mxu1 %v3858_v63 }
 0x1ed   :  { %1059 = vmatpush1.bf16.msra.mxu1 %v3856_v62 }
 0x1ee   :  { %1060 = vmatprep.subr.bf16.mxu1 %v3864_v2 }
 0x1f1   :  { %1061 = vmatpush1.bf16.msra.mxu1 %v3862_v4 }
 0x1f2   :  { %1062 = vmatprep.subr.bf16.mxu1 %v3870_v6 }
 0x1f5   :  { %1063 = vmatpush1.bf16.msra.mxu1 %v3868_v8 }
 0x1f6   :  { %1064 = vmatprep.subr.bf16.mxu1 %v3876_v10 }
 0x1f9   :  { %1065 = vmatpush1.bf16.msra.mxu1 %v3874_v12 }
 0x1fa   :  { %1066 = vmatprep.subr.bf16.mxu1 %v3882_v14 }
 0x1fd   :  { %1067 = vmatpush1.bf16.msra.mxu1 %v3880_v16 }
 0x1fe   :  { %1068 = vmatprep.subr.bf16.mxu1 %v3888_v18  ;;  %v4244_v18 = vmov 1966171168  }
 0x1ff   :  { %v550_v19 = vunpack.c.l.s4 %v4244_v18 }
 0x201   :  { %1069 = vmatpush1.bf16.msra.mxu1 %v3886_v20  ;;  %v551_v20 = vunpack.c.0.s8 %v550_v19 }
 0x202   :  { %1070 = vmatprep.subr.bf16.mxu1 %v3894_v22 }
 0x203   :  { %v4495_v22 = vsub.s32 %v551_v20, %v4486_v38 }
 0x205   :  { %1071 = vmatpush1.bf16.msra.mxu1 %v3892_v24 }
 0x206   :  { %1072 = vmatprep.subr.bf16.mxu1 %v3900_v26  ;;  %v541_v26 = vld [vmem:[#allocation10] sm:$0x3] }
 0x209   :  { %1073 = vmatpush1.bf16.msra.mxu1 %v3898_v28  ;;  %v4500_v28 = vsub.s32 0, %v4486_v38 }
 0x20a   :  { %1074 = vmatprep.subr.bf16.mxu1 %v3906_v30 }
 0x20d   :  { %1075 = vmatpush1.bf16.msra.mxu1 %v3904_v32 }
 0x20e   :  { %1076 = vmatprep.subr.bf16.mxu1 %v3912_v36 }
 0x211   :  { %1077 = vmatpush1.bf16.msra.mxu1 %v3910_v35 }
 0x2a7   :  { %v498_v40 = vpop.f32.mrb[0].mxu1 }
 0x2a8   :  { %v505_v41 = vmul.f32 %v4490_v39, %v498_v40  ;;  %v500_v42 = vpop.f32.mrb[1].mxu1 }
 0x2a9   :  { %v506_v43 = vmul.f32 %v4490_v39, %v500_v42  ;;  %v502_v44 = vpop.f32.mrb[2].mxu1 }
 0x2aa   :  { %v507_v45 = vrot.slane %v505_v41, 4  ;;  %v521_v46 = vmul.f32 %v505_v41, %v505_v41  ;;  %v503_v47 = vpop.f32.mrb[3].mxu1 }
 0x2ab   :  { %v513_v48 = vrot.slane %v506_v43, 4  ;;  %v522_v49 = vmul.f32 %v506_v43, %v506_v43 }
 0x2ac   :  { %v508_v50 = vadd.f32 %v507_v45, %v505_v41  ;;  %v523_v51 = vrot.slane %v521_v46, 4 }
 0x2ad   :  { %v514_v52 = vadd.f32 %v513_v48, %v506_v43  ;;  %v529_v53 = vrot.slane %v522_v49, 4  ;;  %v565_v43 = vld [vmem:[#allocation12] sm:$0x3] }
 0x2ae   :  { %v509_v54 = vrot.slane %v508_v50, 2  ;;  %v524_v55 = vadd.f32 %v523_v51, %v521_v46 }
 0x2af   :  { %v515_v0 = vrot.slane %v514_v52, 2  ;;  %v530_v56 = vadd.f32 %v529_v53, %v522_v49 }
 0x2b0   :  { %v510_v57 = vadd.f32 %v509_v54, %v508_v50  ;;  %v525_v58 = vrot.slane %v524_v55, 2 }
 0x2b1   :  { %v516_v59 = vadd.f32 %v515_v0, %v514_v52  ;;  %v531_v60 = vrot.slane %v530_v56, 2 }
 0x2b2   :  { %v511_v61 = vrot.slane %v510_v57, 1  ;;  %v526_v62 = vadd.f32 %v525_v58, %v524_v55 }
 0x2b3   :  { %v517_v63 = vrot.slane %v516_v59, 1  ;;  %v532_v1 = vadd.f32 %v531_v60, %v530_v56 }
 0x2b4   :  { %v512_v2 = vadd.f32 %v511_v61, %v510_v57  ;;  %v527_v3 = vrot.slane %v526_v62, 1 }
 0x2b5   :  { %v518_v4 = vadd.f32 %v517_v63, %v516_v59  ;;  %v533_v5 = vrot.slane %v532_v1, 1 }
 0x2b6   :  { %v519_v6 = vmul.f32 0.5, %v512_v2  ;;  %v528_v7 = vadd.f32 %v527_v3, %v526_v62 }
 0x2b7   :  { %v520_v8 = vmul.f32 0.5, %v518_v4  ;;  %v534_v9 = vadd.f32 %v533_v5, %v532_v1 }
 0x2b8   :  { %v535_v10 = vmul.f32 0.5, %v528_v7  ;;  %v537_v11 = vmul.f32 %v519_v6, %v519_v6 }
 0x2b9   :  { %v536_v12 = vmul.f32 0.5, %v534_v9  ;;  %v538_v13 = vmul.f32 %v520_v8, %v520_v8 }
 0x2ba   :  { %v539_v14 = vsub.f32 %v535_v10, %v537_v11 }
 0x2bb   :  { %v540_v15 = vsub.f32 %v536_v12, %v538_v13 }
 0x2bc   :  { %v542_v16 = vadd.f32 0.8, %v539_v14 }
 0x2bd   :  { %v543_v17 = vadd.f32 0.8, %v540_v15 }
 0x2be   :  { %3913 = vrsqrt.f32 %v542_v16 }
 0x2bf   :  { %3915 = vrsqrt.f32 %v543_v17 }
 0x2c8   :  { %v3914_v21 = vpop.eup %3913 }
 0x2c9   :  { %v3916_v23 = vpop.eup %3915 }
 0x2ca   :  { %v548_v24 = vcombine.low %v3914_v21, %v3916_v23 }
 0x2cc   :  { %v555_v25 = vrot.slane %v548_v24, %v4495_v22 }
 0x2ce   :  { %v562_v27 = vrot.slane %v555_v25, %v4495_v22 }
 0x2d0   :  { %v564_v30 = vmul.f32 %v562_v27, %v541_v26 }
 0x2d2   :  { %v570_v31 = vrot.slane %v564_v30, %v4500_v28  ;;  %v574_v32 = vrot.slane %v564_v30, %v4503_v29 }
 0x2d4   :  { %v577_v33 = vmul.f32 %v570_v31, %v519_v6  ;;  %v578_v34 = vmul.f32 %v574_v32, %v520_v8  ;;  %v598_v35 = vmul.f32 %v570_v31, %v498_v40  ;;  %v599_v36 = vmul.f32 %v574_v32, %v500_v42 }
 0x2d6   :  { %v581_v37 = vcombine.low %v577_v33, %v578_v34 }
 0x2d8   :  { %v588_v41 = vrot.slane %v581_v37, %v4495_v22 }
 0x2da   :  { %v595_v44 = vrot.slane %v588_v41, %v4495_v22 }
 0x2dc   :  { %v597_v45 = vsub.f32 %v565_v43, %v595_v44 }
 0x2de   :  { %v604_v46 = vrot.slane %v597_v45, %v4500_v28  ;;  %v608_v47 = vrot.slane %v597_v45, %v4503_v29 }
 0x2e0   :  { %v611_v48 = vadd.f32 %v604_v46, %v598_v35  ;;  %v612_v49 = vadd.f32 %v608_v47, %v599_v36 }
 0x2e2   :  { %v616_v50 = vmul.f32 0.2, %v612_v49  ;;  %vm614_vm3 = vcmp.gt.f32.partialorder %v612_v49, 0.0  ;;  %vm613_vm4 = vcmp.gt.f32.partialorder %v611_v48, 0.0  ;;  %v615_v51 = vmul.f32 0.2, %v611_v48 }
 0x2e4   :  { %v618_v52 = vsel %vm614_vm3, %v612_v49, %v616_v50  ;;  %v617_v40 = vsel %vm613_vm4, %v611_v48, %v615_v51 }
 0x2e5   :  { %v684_v42 = vpack.c.bf16 %v618_v52, %v618_v52  ;;  %v683_v53 = vpack.c.bf16 %v617_v40, %v617_v40 }
 0x2e7   :  { %1037 = vmatprep.mubr.bf16.mxu0 %v684_v42  ;;  %1078 = vmatprep.mubr.bf16.mxu1 %v684_v42 }
 0x2e8   :  { %1038 = vmatmul.mubr.bf16.vlgmr.msra.gmra.mrb[4].mxu0 %v683_v53  ;;  %1079 = vmatmul.mubr.bf16.vlgmr.msra.gmra.mrb[4].mxu1 %v683_v53 }
 0x3bb   :  { %v4511_v54 = vpop.f32.mrb[4].mxu0  ;;  %v4513_v55 = vpop.f32.mrb[4].mxu1 }
 0x3bc   :  { %v1087_v0 = vmul.f32 %v4490_v39, %v4511_v54  ;;  %v1089_v56 = vmul.f32 %v4490_v39, %v4513_v55  ;;  %v4519_v57 = vpop.f32.mrb[5].mxu0  ;;  %v4521_v58 = vpop.f32.mrb[5].mxu1 }
 0x3bd   :  { %v1088_v59 = vmul.f32 %v4490_v39, %v4519_v57  ;;  %v1090_v60 = vmul.f32 %v4490_v39, %v4521_v58  ;;  %v1043_v61 = vpop.f32.mrb[6].mxu0  ;;  %v1084_v62 = vpop.f32.mrb[6].mxu1 }
 0x3be   :  { %v1091_v63 = vrot.slane %v1087_v0, 4  ;;  %v1119_v1 = vmul.f32 %v1087_v0, %v1087_v0  ;;  %v1103_v2 = vrot.slane %v1089_v56, 4  ;;  %v1121_v3 = vmul.f32 %v1089_v56, %v1089_v56  ;;  %v1044_v4 = vpop.f32.mrb[7].mxu0  ;;  %v1085_v5 = vpop.f32.mrb[7].mxu1 }
 0x3bf   :  { %v1097_v6 = vrot.slane %v1088_v59, 4  ;;  %v1120_v7 = vmul.f32 %v1088_v59, %v1088_v59  ;;  %v1109_v8 = vrot.slane %v1090_v60, 4  ;;  %v1122_v9 = vmul.f32 %v1090_v60, %v1090_v60 }
 0x3c0   :  { %v1092_v10 = vadd.f32 %v1091_v63, %v1087_v0  ;;  %v1123_v11 = vrot.slane %v1119_v1, 4  ;;  %v1104_v12 = vadd.f32 %v1103_v2, %v1089_v56  ;;  %v1135_v13 = vrot.slane %v1121_v3, 4 }
 0x3c1   :  { %v1098_v14 = vadd.f32 %v1097_v6, %v1088_v59  ;;  %v1129_v15 = vrot.slane %v1120_v7, 4  ;;  %v1110_v16 = vadd.f32 %v1109_v8, %v1090_v60  ;;  %v1141_v17 = vrot.slane %v1122_v9, 4 }
 0x3c2   :  { %v1093_v18 = vrot.slane %v1092_v10, 2  ;;  %v1124_v19 = vadd.f32 %v1123_v11, %v1119_v1  ;;  %v1105_v20 = vrot.slane %v1104_v12, 2  ;;  %v1136_v21 = vadd.f32 %v1135_v13, %v1121_v3 }
 0x3c3   :  { %v1099_v23 = vrot.slane %v1098_v14, 2  ;;  %v1130_v24 = vadd.f32 %v1129_v15, %v1120_v7  ;;  %v1111_v25 = vrot.slane %v1110_v16, 2  ;;  %v1142_v26 = vadd.f32 %v1141_v17, %v1122_v9 }
 0x3c4   :  { %v1094_v27 = vadd.f32 %v1093_v18, %v1092_v10  ;;  %v1125_v30 = vrot.slane %v1124_v19, 2  ;;  %v1106_v31 = vadd.f32 %v1105_v20, %v1104_v12  ;;  %v1137_v32 = vrot.slane %v1136_v21, 2 }
 0x3c5   :  { %v1100_v33 = vadd.f32 %v1099_v23, %v1098_v14  ;;  %v1131_v34 = vrot.slane %v1130_v24, 2  ;;  %v1112_v35 = vadd.f32 %v1111_v25, %v1110_v16  ;;  %v1143_v36 = vrot.slane %v1142_v26, 2 }
 0x3c6   :  { %v1095_v37 = vrot.slane %v1094_v27, 1  ;;  %v1126_v41 = vadd.f32 %v1125_v30, %v1124_v19  ;;  %v1107_v43 = vrot.slane %v1106_v31, 1  ;;  %v1138_v44 = vadd.f32 %v1137_v32, %v1136_v21 }
 0x3c7   :  { %v1101_v45 = vrot.slane %v1100_v33, 1  ;;  %v1132_v46 = vadd.f32 %v1131_v34, %v1130_v24  ;;  %v1113_v47 = vrot.slane %v1112_v35, 1  ;;  %v1144_v48 = vadd.f32 %v1143_v36, %v1142_v26 }
 0x3c8   :  { %v1096_v49 = vadd.f32 %v1095_v37, %v1094_v27  ;;  %v1127_v50 = vrot.slane %v1126_v41, 1  ;;  %v1108_v51 = vadd.f32 %v1107_v43, %v1106_v31  ;;  %v1139_v52 = vrot.slane %v1138_v44, 1  ;;  %v1159_v31 = vld [vmem:[#allocation15] sm:$0xf] }
 0x3c9   :  { %v1102_v40 = vadd.f32 %v1101_v45, %v1100_v33  ;;  %v1133_v42 = vrot.slane %v1132_v46, 1  ;;  %v1114_v53 = vadd.f32 %v1113_v47, %v1112_v35  ;;  %v1145_v0 = vrot.slane %v1144_v48, 1 }
 0x3ca   :  { %v1115_v56 = vmul.f32 0.5, %v1096_v49  ;;  %v1128_v59 = vadd.f32 %v1127_v50, %v1126_v41  ;;  %v1117_v60 = vmul.f32 0.5, %v1108_v51  ;;  %v1140_v61 = vadd.f32 %v1139_v52, %v1138_v44 }
 0x3cb   :  { %v1116_v62 = vmul.f32 0.5, %v1102_v40  ;;  %v1134_v63 = vadd.f32 %v1133_v42, %v1132_v46  ;;  %v1118_v1 = vmul.f32 0.5, %v1114_v53  ;;  %v1146_v2 = vadd.f32 %v1145_v0, %v1144_v48 }
 0x3cc   :  { %v1147_v3 = vmul.f32 0.5, %v1128_v59  ;;  %v1151_v4 = vmul.f32 %v1115_v56, %v1115_v56  ;;  %v1149_v5 = vmul.f32 0.5, %v1140_v61  ;;  %v1153_v6 = vmul.f32 %v1117_v60, %v1117_v60  ;;  %v1198_v59 = vld [vmem:[#allocation16] sm:$0xf] }
 0x3cd   :  { %v1148_v7 = vmul.f32 0.5, %v1134_v63  ;;  %v1152_v8 = vmul.f32 %v1116_v62, %v1116_v62  ;;  %v1150_v9 = vmul.f32 0.5, %v1146_v2  ;;  %v1154_v10 = vmul.f32 %v1118_v1, %v1118_v1 }
 0x3ce   :  { %v1155_v11 = vsub.f32 %v1147_v3, %v1151_v4  ;;  %v1157_v12 = vsub.f32 %v1149_v5, %v1153_v6  ;;  %v4531_v33 = vsub.s32 2, %v4486_v38  ;;  %v4534_v34 = vsub.s32 3, %v4486_v38 }
 0x3cf   :  { %v1156_v13 = vsub.f32 %v1148_v7, %v1152_v8  ;;  %v1158_v14 = vsub.f32 %v1150_v9, %v1154_v10 }
 0x3d0   :  { %v1160_v15 = vadd.f32 0.8, %v1155_v11  ;;  %v1162_v16 = vadd.f32 0.8, %v1157_v12 }
 0x3d1   :  { %v1161_v17 = vadd.f32 0.8, %v1156_v13  ;;  %v1163_v18 = vadd.f32 0.8, %v1158_v14 }
 0x3d2   :  { %3917 = vrsqrt.f32 %v1160_v15 }
 0x3d3   :  { %3919 = vrsqrt.f32 %v1162_v16 }
 0x3d4   :  { %3921 = vrsqrt.f32 %v1161_v17 }
 0x3d5   :  { %3923 = vrsqrt.f32 %v1163_v18 }
 0x3dc   :  { %v3918_v19 = vpop.eup %3917 }
 0x3dd   :  { %v3920_v20 = vpop.eup %3919 }
 0x3de   :  { %v3922_v21 = vpop.eup %3921 }
 0x3df   :  { %v3924_v23 = vpop.eup %3923  ;;  %v1172_v24 = vcombine.low %v3918_v19, %v3922_v21 }
 0x3e0   :  { %v1173_v25 = vcombine.low %v3920_v20, %v3924_v23 }
 0x3e1   :  { %v1180_v26 = vrot.slane %v1172_v24, %v4495_v22 }
 0x3e2   :  { %v1187_v27 = vrot.slane %v1173_v25, %v4495_v22 }
 0x3e4   :  { %v1188_v30 = vcombine.low %v1180_v26, %v1187_v27 }
 0x3e6   :  { %v1195_v32 = vrot.slane %v1188_v30, %v4495_v22 }
 0x3e8   :  { %v1197_v35 = vmul.f32 %v1195_v32, %v1159_v31 }
 0x3ea   :  { %v1203_v36 = vrot.slane %v1197_v35, %v4500_v28  ;;  %v1207_v37 = vrot.slane %v1197_v35, %v4503_v29  ;;  %v1211_v41 = vrot.slane %v1197_v35, %v4531_v33  ;;  %v1215_v43 = vrot.slane %v1197_v35, %v4534_v34 }
 0x3ec   :  { %v1220_v44 = vmul.f32 %v1203_v36, %v1115_v56  ;;  %v1221_v45 = vmul.f32 %v1207_v37, %v1116_v62  ;;  %v1222_v46 = vmul.f32 %v1211_v41, %v1117_v60  ;;  %v1223_v47 = vmul.f32 %v1215_v43, %v1118_v1 }
 0x3ed   :  { %v1254_v48 = vmul.f32 %v1203_v36, %v4511_v54  ;;  %v1255_v49 = vmul.f32 %v1207_v37, %v4519_v57  ;;  %v1256_v50 = vmul.f32 %v1211_v41, %v4513_v55  ;;  %v1257_v51 = vmul.f32 %v1215_v43, %v4521_v58 }
 0x3ee   :  { %v1228_v52 = vcombine.low %v1220_v44, %v1221_v45  ;;  %v1229_v40 = vcombine.low %v1222_v46, %v1223_v47 }
 0x3f0   :  { %v1236_v42 = vrot.slane %v1228_v52, %v4495_v22  ;;  %v1243_v53 = vrot.slane %v1229_v40, %v4495_v22 }
 0x3f2   :  { %v1244_v0 = vcombine.low %v1236_v42, %v1243_v53 }
 0x3f4   :  { %v1251_v56 = vrot.slane %v1244_v0, %v4495_v22 }
 0x3f6   :  { %v1253_v60 = vsub.f32 %v1198_v59, %v1251_v56 }
 0x3f8   :  { %v1262_v61 = vrot.slane %v1253_v60, %v4500_v28  ;;  %v1266_v54 = vrot.slane %v1253_v60, %v4503_v29  ;;  %v1270_v57 = vrot.slane %v1253_v60, %v4531_v33  ;;  %v1274_v55 = vrot.slane %v1253_v60, %v4534_v34 }
 0x3fa   :  { %v1279_v58 = vadd.f32 %v1262_v61, %v1254_v48  ;;  %v1280_v62 = vadd.f32 %v1266_v54, %v1255_v49  ;;  %v1281_v63 = vadd.f32 %v1270_v57, %v1256_v50  ;;  %v1282_v1 = vadd.f32 %v1274_v55, %v1257_v51 }
 0x3fc   :  { %vm1283_vm5 = vcmp.gt.f32.partialorder %v1279_v58, 0.0  ;;  %vm1284_vm6 = vcmp.gt.f32.partialorder %v1280_v62, 0.0  ;;  %vm1285_vm7 = vcmp.gt.f32.partialorder %v1281_v63, 0.0  ;;  %vm1286_vm8 = vcmp.gt.f32.partialorder %v1282_v1, 0.0 }
 0x3fd   :  { %v1287_v2 = vmul.f32 0.2, %v1279_v58  ;;  %v1288_v3 = vmul.f32 0.2, %v1280_v62  ;;  %v1289_v4 = vmul.f32 0.2, %v1281_v63 }
 0x3fe   :  { %v1290_v5 = vmul.f32 0.2, %v1282_v1 }
 0x3ff   :  { %v4551_v6 = vsel %vm1283_vm5, %v1279_v58, %v1287_v2  ;;  %v1292_v7 = vsel %vm1284_vm6, %v1280_v62, %v1288_v3  ;;  %v4553_v8 = vsel %vm1285_vm7, %v1281_v63, %v1289_v4 }
 0x400   :  { %v4555_v9 = vsel %vm1286_vm8, %v1282_v1, %v1290_v5 }
 0x401   :  { %4211 = dma.done.wait [#allocation4], 32768 }
 0x402   :  { %4212 = vsyncadd [#allocation4], 4294934528  ;;  %v4557_v10 = vpack.c.bf16 %v1292_v7, %v1292_v7  ;;  %v1300_v11 = vld [vmem:[#allocation2 + $0x8] sm:$0xff]  ;;  %v1302_v12 = vld [vmem:[#allocation2 + $0x18] sm:$0xff] }
 0x403   :  { %v1299_v13 = vld [vmem:[#allocation2] sm:$0xff]  ;;  %1559 = vmatprep.subr.bf16.mxu0 %v1300_v11  ;;  %1641 = vmatprep.subr.bf16.mxu1 %v1302_v12  ;;  %v1301_v14 = vld [vmem:[#allocation2 + $0x10] sm:$0xff]  ;;  %v1308_v15 = vld [vmem:[#allocation2 + $0x48] sm:$0xff] }
 0x404   :  { %1591 = vmatprep.mubr.bf16.mxu0 %v4557_v10  ;;  %1673 = vmatprep.mubr.bf16.mxu1 %v4557_v10  ;;  %v1310_v16 = vld [vmem:[#allocation2 + $0x58] sm:$0xff]  ;;  %v1307_v17 = vld [vmem:[#allocation2 + $0x40] sm:$0xff]  ;;  %v1309_v18 = vld [vmem:[#allocation2 + $0x50] sm:$0xff] }
 0x405   :  { %1560 = vmatpush1.bf16.msra.mxu0 %v1299_v13  ;;  %1642 = vmatpush1.bf16.msra.mxu1 %v1301_v14  ;;  %v1316_v19 = vld [vmem:[#allocation2 + $0x88] sm:$0xff]  ;;  %v1318_v20 = vld [vmem:[#allocation2 + $0x98] sm:$0xff]  ;;  %v1315_v21 = vld [vmem:[#allocation2 + $0x80] sm:$0xff] }
 0x406   :  { %1561 = vmatprep.subr.bf16.mxu0 %v1308_v15  ;;  %1643 = vmatprep.subr.bf16.mxu1 %v1310_v16  ;;  %v1317_v23 = vld [vmem:[#allocation2 + $0x90] sm:$0xff]  ;;  %v1324_v24 = vld [vmem:[#allocation2 + $0xc8] sm:$0xff]  ;;  %v1326_v25 = vld [vmem:[#allocation2 + $0xd8] sm:$0xff] }
 0x407   :  { %v1323_v26 = vld [vmem:[#allocation2 + $0xc0] sm:$0xff]  ;;  %v1325_v27 = vld [vmem:[#allocation2 + $0xd0] sm:$0xff]  ;;  %v1332_v30 = vld [vmem:[#allocation2 + $0x108] sm:$0xff] }
 0x408   :  { %v1334_v31 = vld [vmem:[#allocation2 + $0x118] sm:$0xff]  ;;  %v1331_v32 = vld [vmem:[#allocation2 + $0x100] sm:$0xff]  ;;  %v1333_v35 = vld [vmem:[#allocation2 + $0x110] sm:$0xff] }
 0x409   :  { %1562 = vmatpush1.bf16.msra.mxu0 %v1307_v17  ;;  %1644 = vmatpush1.bf16.msra.mxu1 %v1309_v18  ;;  %v1340_v36 = vld [vmem:[#allocation2 + $0x148] sm:$0xff]  ;;  %v1342_v37 = vld [vmem:[#allocation2 + $0x158] sm:$0xff]  ;;  %v1339_v41 = vld [vmem:[#allocation2 + $0x140] sm:$0xff] }
 0x40a   :  { %1563 = vmatprep.subr.bf16.mxu0 %v1316_v19  ;;  %1645 = vmatprep.subr.bf16.mxu1 %v1318_v20  ;;  %v1341_v43 = vld [vmem:[#allocation2 + $0x150] sm:$0xff]  ;;  %v1348_v44 = vld [vmem:[#allocation2 + $0x188] sm:$0xff]  ;;  %v1350_v45 = vld [vmem:[#allocation2 + $0x198] sm:$0xff] }
 0x40b   :  { %v1347_v46 = vld [vmem:[#allocation2 + $0x180] sm:$0xff]  ;;  %v1349_v47 = vld [vmem:[#allocation2 + $0x190] sm:$0xff]  ;;  %v1356_v48 = vld [vmem:[#allocation2 + $0x1c8] sm:$0xff] }
 0x40c   :  { %v1358_v49 = vld [vmem:[#allocation2 + $0x1d8] sm:$0xff]  ;;  %v1355_v50 = vld [vmem:[#allocation2 + $0x1c0] sm:$0xff]  ;;  %v1357_v51 = vld [vmem:[#allocation2 + $0x1d0] sm:$0xff] }
 0x40d   :  { %1564 = vmatpush1.bf16.msra.mxu0 %v1315_v21  ;;  %1646 = vmatpush1.bf16.msra.mxu1 %v1317_v23  ;;  %v1364_v52 = vld [vmem:[#allocation2 + $0x208] sm:$0xff]  ;;  %v1366_v40 = vld [vmem:[#allocation2 + $0x218] sm:$0xff]  ;;  %v1363_v42 = vld [vmem:[#allocation2 + $0x200] sm:$0xff] }
 0x40e   :  { %1565 = vmatprep.subr.bf16.mxu0 %v1324_v24  ;;  %1647 = vmatprep.subr.bf16.mxu1 %v1326_v25  ;;  %v1365_v53 = vld [vmem:[#allocation2 + $0x210] sm:$0xff]  ;;  %v1372_v0 = vld [vmem:[#allocation2 + $0x248] sm:$0xff]  ;;  %v1374_v59 = vld [vmem:[#allocation2 + $0x258] sm:$0xff]  ;;  %v4563_v25 = vpack.c.bf16 %v4551_v6, %v4551_v6 }
 0x40f   :  { %v1371_v56 = vld [vmem:[#allocation2 + $0x240] sm:$0xff]  ;;  %v1373_v60 = vld [vmem:[#allocation2 + $0x250] sm:$0xff]  ;;  %v1380_v61 = vld [vmem:[#allocation2 + $0x288] sm:$0xff] }
 0x410   :  { %v1382_v54 = vld [vmem:[#allocation2 + $0x298] sm:$0xff]  ;;  %v1379_v57 = vld [vmem:[#allocation2 + $0x280] sm:$0xff]  ;;  %v1381_v55 = vld [vmem:[#allocation2 + $0x290] sm:$0xff] }
 0x411   :  { %1566 = vmatpush1.bf16.msra.mxu0 %v1323_v26  ;;  %1648 = vmatpush1.bf16.msra.mxu1 %v1325_v27  ;;  %v1388_v58 = vld [vmem:[#allocation2 + $0x2c8] sm:$0xff]  ;;  %v1390_v62 = vld [vmem:[#allocation2 + $0x2d8] sm:$0xff]  ;;  %v1387_v63 = vld [vmem:[#allocation2 + $0x2c0] sm:$0xff] }
 0x412   :  { %1567 = vmatprep.subr.bf16.mxu0 %v1332_v30  ;;  %1649 = vmatprep.subr.bf16.mxu1 %v1334_v31  ;;  %v1389_v1 = vld [vmem:[#allocation2 + $0x2d0] sm:$0xff]  ;;  %v1396_v2 = vld [vmem:[#allocation2 + $0x308] sm:$0xff]  ;;  %v1398_v3 = vld [vmem:[#allocation2 + $0x318] sm:$0xff] }
 0x413   :  { %v1395_v4 = vld [vmem:[#allocation2 + $0x300] sm:$0xff]  ;;  %v1397_v5 = vld [vmem:[#allocation2 + $0x310] sm:$0xff]  ;;  %v1404_v7 = vld [vmem:[#allocation2 + $0x348] sm:$0xff] }
 0x414   :  { %v1406_v11 = vld [vmem:[#allocation2 + $0x358] sm:$0xff]  ;;  %v1403_v12 = vld [vmem:[#allocation2 + $0x340] sm:$0xff]  ;;  %v1405_v13 = vld [vmem:[#allocation2 + $0x350] sm:$0xff] }
 0x415   :  { %1568 = vmatpush1.bf16.msra.mxu0 %v1331_v32  ;;  %1650 = vmatpush1.bf16.msra.mxu1 %v1333_v35  ;;  %v1412_v14 = vld [vmem:[#allocation2 + $0x388] sm:$0xff]  ;;  %v1414_v15 = vld [vmem:[#allocation2 + $0x398] sm:$0xff]  ;;  %v1411_v16 = vld [vmem:[#allocation2 + $0x380] sm:$0xff]  ;;  %v4567_v32 = vpack.c.bf16 %v4555_v9, %v4555_v9 }
 0x416   :  { %1569 = vmatprep.subr.bf16.mxu0 %v1340_v36  ;;  %1651 = vmatprep.subr.bf16.mxu1 %v1342_v37  ;;  %v1413_v17 = vld [vmem:[#allocation2 + $0x390] sm:$0xff]  ;;  %v1420_v18 = vld [vmem:[#allocation2 + $0x3c8] sm:$0xff]  ;;  %v1422_v19 = vld [vmem:[#allocation2 + $0x3d8] sm:$0xff] }
 0x417   :  { %v1419_v20 = vld [vmem:[#allocation2 + $0x3c0] sm:$0xff]  ;;  %v1421_v21 = vld [vmem:[#allocation2 + $0x3d0] sm:$0xff]  ;;  %v1428_v23 = vld [vmem:[#allocation2 + $0x408] sm:$0xff] }
 0x418   :  { %v1430_v24 = vld [vmem:[#allocation2 + $0x418] sm:$0xff]  ;;  %v1427_v26 = vld [vmem:[#allocation2 + $0x400] sm:$0xff]  ;;  %v1429_v27 = vld [vmem:[#allocation2 + $0x410] sm:$0xff] }
 0x419   :  { %1570 = vmatpush1.bf16.msra.mxu0 %v1339_v41  ;;  %1652 = vmatpush1.bf16.msra.mxu1 %v1341_v43  ;;  %v1436_v30 = vld [vmem:[#allocation2 + $0x448] sm:$0xff]  ;;  %v1438_v31 = vld [vmem:[#allocation2 + $0x458] sm:$0xff]  ;;  %v1435_v6 = vld [vmem:[#allocation2 + $0x440] sm:$0xff] }
 0x41a   :  { %1571 = vmatprep.subr.bf16.mxu0 %v1348_v44  ;;  %1653 = vmatprep.subr.bf16.mxu1 %v1350_v45  ;;  %v1437_v35 = vld [vmem:[#allocation2 + $0x450] sm:$0xff]  ;;  %v1444_v36 = vld [vmem:[#allocation2 + $0x488] sm:$0xff]  ;;  %v1446_v37 = vld [vmem:[#allocation2 + $0x498] sm:$0xff] }
 0x41b   :  { %v1443_v9 = vld [vmem:[#allocation2 + $0x480] sm:$0xff]  ;;  %v1445_v41 = vld [vmem:[#allocation2 + $0x490] sm:$0xff]  ;;  %v1452_v43 = vld [vmem:[#allocation2 + $0x4c8] sm:$0xff] }
 0x41c   :  { %v1454_v44 = vld [vmem:[#allocation2 + $0x4d8] sm:$0xff]  ;;  %v1451_v45 = vld [vmem:[#allocation2 + $0x4c0] sm:$0xff] }
 0x41d   :  { %1572 = vmatpush1.bf16.msra.mxu0 %v1347_v46  ;;  %1654 = vmatpush1.bf16.msra.mxu1 %v1349_v47  ;;  %v1453_v46 = vld [vmem:[#allocation2 + $0x4d0] sm:$0xff]  ;;  %v1460_v47 = vld [vmem:[#allocation2 + $0x508] sm:$0xff] }
 0x41e   :  { %1573 = vmatprep.subr.bf16.mxu0 %v1356_v48  ;;  %1655 = vmatprep.subr.bf16.mxu1 %v1358_v49  ;;  %v1462_v48 = vld [vmem:[#allocation2 + $0x518] sm:$0xff]  ;;  %v1459_v49 = vld [vmem:[#allocation2 + $0x500] sm:$0xff] }
 0x421   :  { %1574 = vmatpush1.bf16.msra.mxu0 %v1355_v50  ;;  %1656 = vmatpush1.bf16.msra.mxu1 %v1357_v51  ;;  %v1461_v50 = vld [vmem:[#allocation2 + $0x510] sm:$0xff]  ;;  %v1468_v51 = vld [vmem:[#allocation2 + $0x548] sm:$0xff] }
 0x422   :  { %1575 = vmatprep.subr.bf16.mxu0 %v1364_v52  ;;  %1657 = vmatprep.subr.bf16.mxu1 %v1366_v40  ;;  %v1470_v52 = vld [vmem:[#allocation2 + $0x558] sm:$0xff]  ;;  %v1467_v40 = vld [vmem:[#allocation2 + $0x540] sm:$0xff] }
 0x425   :  { %1576 = vmatpush1.bf16.msra.mxu0 %v1363_v42  ;;  %1658 = vmatpush1.bf16.msra.mxu1 %v1365_v53  ;;  %v1469_v42 = vld [vmem:[#allocation2 + $0x550] sm:$0xff]  ;;  %v1476_v53 = vld [vmem:[#allocation2 + $0x588] sm:$0xff] }
 0x426   :  { %1577 = vmatprep.subr.bf16.mxu0 %v1372_v0  ;;  %1659 = vmatprep.subr.bf16.mxu1 %v1374_v59  ;;  %v1478_v0 = vld [vmem:[#allocation2 + $0x598] sm:$0xff]  ;;  %v1475_v59 = vld [vmem:[#allocation2 + $0x580] sm:$0xff] }
 0x429   :  { %1578 = vmatpush1.bf16.msra.mxu0 %v1371_v56  ;;  %1660 = vmatpush1.bf16.msra.mxu1 %v1373_v60  ;;  %v1477_v56 = vld [vmem:[#allocation2 + $0x590] sm:$0xff]  ;;  %v1484_v60 = vld [vmem:[#allocation2 + $0x5c8] sm:$0xff] }
 0x42a   :  { %1579 = vmatprep.subr.bf16.mxu0 %v1380_v61  ;;  %1661 = vmatprep.subr.bf16.mxu1 %v1382_v54  ;;  %v1486_v61 = vld [vmem:[#allocation2 + $0x5d8] sm:$0xff]  ;;  %v1483_v54 = vld [vmem:[#allocation2 + $0x5c0] sm:$0xff] }
 0x42d   :  { %1580 = vmatpush1.bf16.msra.mxu0 %v1379_v57  ;;  %1662 = vmatpush1.bf16.msra.mxu1 %v1381_v55  ;;  %v1485_v57 = vld [vmem:[#allocation2 + $0x5d0] sm:$0xff]  ;;  %v1492_v55 = vld [vmem:[#allocation2 + $0x608] sm:$0xff] }
 0x42e   :  { %1581 = vmatprep.subr.bf16.mxu0 %v1388_v58  ;;  %1663 = vmatprep.subr.bf16.mxu1 %v1390_v62  ;;  %v1494_v58 = vld [vmem:[#allocation2 + $0x618] sm:$0xff]  ;;  %v1491_v62 = vld [vmem:[#allocation2 + $0x600] sm:$0xff] }
 0x431   :  { %1582 = vmatpush1.bf16.msra.mxu0 %v1387_v63  ;;  %1664 = vmatpush1.bf16.msra.mxu1 %v1389_v1  ;;  %v1493_v63 = vld [vmem:[#allocation2 + $0x610] sm:$0xff]  ;;  %v1500_v1 = vld [vmem:[#allocation2 + $0x648] sm:$0xff] }
 0x432   :  { %1583 = vmatprep.subr.bf16.mxu0 %v1396_v2  ;;  %1665 = vmatprep.subr.bf16.mxu1 %v1398_v3  ;;  %v1502_v2 = vld [vmem:[#allocation2 + $0x658] sm:$0xff]  ;;  %v1499_v3 = vld [vmem:[#allocation2 + $0x640] sm:$0xff] }
 0x435   :  { %1584 = vmatpush1.bf16.msra.mxu0 %v1395_v4  ;;  %1666 = vmatpush1.bf16.msra.mxu1 %v1397_v5  ;;  %v1501_v4 = vld [vmem:[#allocation2 + $0x650] sm:$0xff]  ;;  %v1508_v5 = vld [vmem:[#allocation2 + $0x688] sm:$0xff] }
 0x436   :  { %1585 = vmatprep.subr.bf16.mxu0 %v1404_v7  ;;  %1667 = vmatprep.subr.bf16.mxu1 %v1406_v11  ;;  %v1510_v7 = vld [vmem:[#allocation2 + $0x698] sm:$0xff]  ;;  %v1507_v11 = vld [vmem:[#allocation2 + $0x680] sm:$0xff] }
 0x439   :  { %1586 = vmatpush1.bf16.msra.mxu0 %v1403_v12  ;;  %1668 = vmatpush1.bf16.msra.mxu1 %v1405_v13  ;;  %v1509_v12 = vld [vmem:[#allocation2 + $0x690] sm:$0xff]  ;;  %v1516_v13 = vld [vmem:[#allocation2 + $0x6c8] sm:$0xff] }
 0x43a   :  { %1587 = vmatprep.subr.bf16.mxu0 %v1412_v14  ;;  %1669 = vmatprep.subr.bf16.mxu1 %v1414_v15  ;;  %v1518_v14 = vld [vmem:[#allocation2 + $0x6d8] sm:$0xff]  ;;  %v1515_v15 = vld [vmem:[#allocation2 + $0x6c0] sm:$0xff] }
 0x43d   :  { %1588 = vmatpush1.bf16.msra.mxu0 %v1411_v16  ;;  %1670 = vmatpush1.bf16.msra.mxu1 %v1413_v17  ;;  %v1517_v16 = vld [vmem:[#allocation2 + $0x6d0] sm:$0xff]  ;;  %v1524_v17 = vld [vmem:[#allocation2 + $0x708] sm:$0xff] }
 0x43e   :  { %1589 = vmatprep.subr.bf16.mxu0 %v1420_v18  ;;  %1671 = vmatprep.subr.bf16.mxu1 %v1422_v19  ;;  %v1526_v18 = vld [vmem:[#allocation2 + $0x718] sm:$0xff]  ;;  %v1523_v19 = vld [vmem:[#allocation2 + $0x700] sm:$0xff] }
 0x441   :  { %1590 = vmatpush1.bf16.msra.mxu0 %v1419_v20  ;;  %1672 = vmatpush1.bf16.msra.mxu1 %v1421_v21  ;;  %v1525_v20 = vld [vmem:[#allocation2 + $0x710] sm:$0xff]  ;;  %v1532_v21 = vld [vmem:[#allocation2 + $0x748] sm:$0xff] }
 0x442   :  { %1600 = vmatprep.subr.bf16.mxu0 %v1428_v23  ;;  %1682 = vmatprep.subr.bf16.mxu1 %v1430_v24  ;;  %v1534_v23 = vld [vmem:[#allocation2 + $0x758] sm:$0xff]  ;;  %v1531_v24 = vld [vmem:[#allocation2 + $0x740] sm:$0xff] }
 0x444   :  { %1592 = vmatmul.mubr.bf16.vlgmr.msra.gmra.mrb[8].mxu0 %v4563_v25  ;;  %1674 = vmatmul.mubr.bf16.vlgmr.msra.gmra.mrb[8].mxu1 %v4563_v25 }
 0x445   :  { %1601 = vmatpush1.bf16.msra.mxu0 %v1427_v26  ;;  %1683 = vmatpush1.bf16.msra.mxu1 %v1429_v27  ;;  %v1533_v26 = vld [vmem:[#allocation2 + $0x750] sm:$0xff]  ;;  %v1540_v27 = vld [vmem:[#allocation2 + $0x788] sm:$0xff] }
 0x446   :  { %1602 = vmatprep.subr.bf16.mxu0 %v1436_v30  ;;  %1684 = vmatprep.subr.bf16.mxu1 %v1438_v31  ;;  %v1542_v30 = vld [vmem:[#allocation2 + $0x798] sm:$0xff]  ;;  %v1539_v31 = vld [vmem:[#allocation2 + $0x780] sm:$0xff] }
 0x447   :  { %1632 = vmatprep.mubr.bf16.mxu0 %v4567_v32  ;;  %1714 = vmatprep.mubr.bf16.mxu1 %v4567_v32 }
 0x449   :  { %1603 = vmatpush1.bf16.msra.mxu0 %v1435_v6  ;;  %1685 = vmatpush1.bf16.msra.mxu1 %v1437_v35  ;;  %v1541_v6 = vld [vmem:[#allocation2 + $0x790] sm:$0xff]  ;;  %v1548_v35 = vld [vmem:[#allocation2 + $0x7c8] sm:$0xff] }
 0x44a   :  { %1604 = vmatprep.subr.bf16.mxu0 %v1444_v36  ;;  %1686 = vmatprep.subr.bf16.mxu1 %v1446_v37  ;;  %v1550_v36 = vld [vmem:[#allocation2 + $0x7d8] sm:$0xff]  ;;  %v1547_v37 = vld [vmem:[#allocation2 + $0x7c0] sm:$0xff] }
 0x44d   :  { %1605 = vmatpush1.bf16.msra.mxu0 %v1443_v9  ;;  %1687 = vmatpush1.bf16.msra.mxu1 %v1445_v41  ;;  %v1549_v9 = vld [vmem:[#allocation2 + $0x7d0] sm:$0xff]  ;;  %v1304_v41 = vld [vmem:[#allocation2 + $0x28] sm:$0xff] }
 0x44e   :  { %1606 = vmatprep.subr.bf16.mxu0 %v1452_v43  ;;  %1688 = vmatprep.subr.bf16.mxu1 %v1454_v44  ;;  %v1306_v43 = vld [vmem:[#allocation2 + $0x38] sm:$0xff]  ;;  %v4575_v44 = vpack.c.bf16 %v4553_v8, %v4553_v8  ;;  %v1320_v8 = vld [vmem:[#allocation2 + $0xa8] sm:$0xff] }
 0x451   :  { %1607 = vmatpush1.bf16.msra.mxu0 %v1451_v45  ;;  %1689 = vmatpush1.bf16.msra.mxu1 %v1453_v46  ;;  %v1303_v45 = vld [vmem:[#allocation2 + $0x20] sm:$0xff]  ;;  %v1305_v46 = vld [vmem:[#allocation2 + $0x30] sm:$0xff] }
 0x452   :  { %1608 = vmatprep.subr.bf16.mxu0 %v1460_v47  ;;  %1690 = vmatprep.subr.bf16.mxu1 %v1462_v48  ;;  %v1312_v47 = vld [vmem:[#allocation2 + $0x68] sm:$0xff]  ;;  %v1314_v48 = vld [vmem:[#allocation2 + $0x78] sm:$0xff] }
 0x455   :  { %1609 = vmatpush1.bf16.msra.mxu0 %v1459_v49  ;;  %1691 = vmatpush1.bf16.msra.mxu1 %v1461_v50  ;;  %v1311_v49 = vld [vmem:[#allocation2 + $0x60] sm:$0xff]  ;;  %v1313_v50 = vld [vmem:[#allocation2 + $0x70] sm:$0xff] }
 0x456   :  { %1610 = vmatprep.subr.bf16.mxu0 %v1468_v51  ;;  %1692 = vmatprep.subr.bf16.mxu1 %v1470_v52  ;;  %v1322_v51 = vld [vmem:[#allocation2 + $0xb8] sm:$0xff]  ;;  %v1319_v52 = vld [vmem:[#allocation2 + $0xa0] sm:$0xff] }
 0x459   :  { %1611 = vmatpush1.bf16.msra.mxu0 %v1467_v40  ;;  %1693 = vmatpush1.bf16.msra.mxu1 %v1469_v42  ;;  %v1321_v40 = vld [vmem:[#allocation2 + $0xb0] sm:$0xff]  ;;  %v1328_v42 = vld [vmem:[#allocation2 + $0xe8] sm:$0xff] }
 0x45a   :  { %1612 = vmatprep.subr.bf16.mxu0 %v1476_v53  ;;  %1694 = vmatprep.subr.bf16.mxu1 %v1478_v0  ;;  %v1330_v53 = vld [vmem:[#allocation2 + $0xf8] sm:$0xff]  ;;  %v1327_v0 = vld [vmem:[#allocation2 + $0xe0] sm:$0xff] }
 0x45d   :  { %1613 = vmatpush1.bf16.msra.mxu0 %v1475_v59  ;;  %1695 = vmatpush1.bf16.msra.mxu1 %v1477_v56  ;;  %v1329_v59 = vld [vmem:[#allocation2 + $0xf0] sm:$0xff]  ;;  %v1336_v56 = vld [vmem:[#allocation2 + $0x128] sm:$0xff] }
 0x45e   :  { %1614 = vmatprep.subr.bf16.mxu0 %v1484_v60  ;;  %1696 = vmatprep.subr.bf16.mxu1 %v1486_v61  ;;  %v1338_v60 = vld [vmem:[#allocation2 + $0x138] sm:$0xff]  ;;  %v1337_v61 = vld [vmem:[#allocation2 + $0x130] sm:$0xff] }
 0x461   :  { %1615 = vmatpush1.bf16.msra.mxu0 %v1483_v54  ;;  %1697 = vmatpush1.bf16.msra.mxu1 %v1485_v57  ;;  %v1344_v54 = vld [vmem:[#allocation2 + $0x168] sm:$0xff]  ;;  %v1346_v57 = vld [vmem:[#allocation2 + $0x178] sm:$0xff] }
 0x462   :  { %1616 = vmatprep.subr.bf16.mxu0 %v1492_v55  ;;  %1698 = vmatprep.subr.bf16.mxu1 %v1494_v58  ;;  %v1343_v55 = vld [vmem:[#allocation2 + $0x160] sm:$0xff]  ;;  %v1345_v58 = vld [vmem:[#allocation2 + $0x170] sm:$0xff] }
 0x465   :  { %1617 = vmatpush1.bf16.msra.mxu0 %v1491_v62  ;;  %1699 = vmatpush1.bf16.msra.mxu1 %v1493_v63  ;;  %v1352_v62 = vld [vmem:[#allocation2 + $0x1a8] sm:$0xff]  ;;  %v1354_v63 = vld [vmem:[#allocation2 + $0x1b8] sm:$0xff] }
 0x466   :  { %1618 = vmatprep.subr.bf16.mxu0 %v1500_v1  ;;  %1700 = vmatprep.subr.bf16.mxu1 %v1502_v2  ;;  %v1351_v1 = vld [vmem:[#allocation2 + $0x1a0] sm:$0xff]  ;;  %v1353_v2 = vld [vmem:[#allocation2 + $0x1b0] sm:$0xff] }
 0x469   :  { %1619 = vmatpush1.bf16.msra.mxu0 %v1499_v3  ;;  %1701 = vmatpush1.bf16.msra.mxu1 %v1501_v4  ;;  %v1360_v3 = vld [vmem:[#allocation2 + $0x1e8] sm:$0xff]  ;;  %v1362_v4 = vld [vmem:[#allocation2 + $0x1f8] sm:$0xff] }
 0x46a   :  { %1620 = vmatprep.subr.bf16.mxu0 %v1508_v5  ;;  %1702 = vmatprep.subr.bf16.mxu1 %v1510_v7  ;;  %v1359_v5 = vld [vmem:[#allocation2 + $0x1e0] sm:$0xff]  ;;  %v1361_v7 = vld [vmem:[#allocation2 + $0x1f0] sm:$0xff] }
 0x46d   :  { %1621 = vmatpush1.bf16.msra.mxu0 %v1507_v11  ;;  %1703 = vmatpush1.bf16.msra.mxu1 %v1509_v12  ;;  %v1368_v11 = vld [vmem:[#allocation2 + $0x228] sm:$0xff]  ;;  %v1370_v12 = vld [vmem:[#allocation2 + $0x238] sm:$0xff] }
 0x46e   :  { %1622 = vmatprep.subr.bf16.mxu0 %v1516_v13  ;;  %1704 = vmatprep.subr.bf16.mxu1 %v1518_v14  ;;  %v1367_v13 = vld [vmem:[#allocation2 + $0x220] sm:$0xff]  ;;  %v1369_v14 = vld [vmem:[#allocation2 + $0x230] sm:$0xff] }
 0x471   :  { %1623 = vmatpush1.bf16.msra.mxu0 %v1515_v15  ;;  %1705 = vmatpush1.bf16.msra.mxu1 %v1517_v16  ;;  %v1376_v15 = vld [vmem:[#allocation2 + $0x268] sm:$0xff]  ;;  %v1378_v16 = vld [vmem:[#allocation2 + $0x278] sm:$0xff] }
 0x472   :  { %1624 = vmatprep.subr.bf16.mxu0 %v1524_v17  ;;  %1706 = vmatprep.subr.bf16.mxu1 %v1526_v18  ;;  %v1375_v17 = vld [vmem:[#allocation2 + $0x260] sm:$0xff]  ;;  %v1377_v18 = vld [vmem:[#allocation2 + $0x270] sm:$0xff] }
 0x475   :  { %1625 = vmatpush1.bf16.msra.mxu0 %v1523_v19  ;;  %1707 = vmatpush1.bf16.msra.mxu1 %v1525_v20  ;;  %v1384_v19 = vld [vmem:[#allocation2 + $0x2a8] sm:$0xff]  ;;  %v1386_v20 = vld [vmem:[#allocation2 + $0x2b8] sm:$0xff] }
 0x476   :  { %1626 = vmatprep.subr.bf16.mxu0 %v1532_v21  ;;  %1708 = vmatprep.subr.bf16.mxu1 %v1534_v23  ;;  %v1383_v21 = vld [vmem:[#allocation2 + $0x2a0] sm:$0xff]  ;;  %v1385_v23 = vld [vmem:[#allocation2 + $0x2b0] sm:$0xff] }
 0x479   :  { %1627 = vmatpush1.bf16.msra.mxu0 %v1531_v24  ;;  %1709 = vmatpush1.bf16.msra.mxu1 %v1533_v26  ;;  %v1392_v24 = vld [vmem:[#allocation2 + $0x2e8] sm:$0xff]  ;;  %v1394_v26 = vld [vmem:[#allocation2 + $0x2f8] sm:$0xff] }
 0x47a   :  { %1628 = vmatprep.subr.bf16.mxu0 %v1540_v27  ;;  %1710 = vmatprep.subr.bf16.mxu1 %v1542_v30  ;;  %v1391_v27 = vld [vmem:[#allocation2 + $0x2e0] sm:$0xff]  ;;  %v1393_v30 = vld [vmem:[#allocation2 + $0x2f0] sm:$0xff] }
 0x47d   :  { %1629 = vmatpush1.bf16.msra.mxu0 %v1539_v31  ;;  %1711 = vmatpush1.bf16.msra.mxu1 %v1541_v6  ;;  %v1400_v31 = vld [vmem:[#allocation2 + $0x328] sm:$0xff]  ;;  %v1402_v6 = vld [vmem:[#allocation2 + $0x338] sm:$0xff] }
 0x47e   :  { %1630 = vmatprep.subr.bf16.mxu0 %v1548_v35  ;;  %1712 = vmatprep.subr.bf16.mxu1 %v1550_v36  ;;  %v1399_v35 = vld [vmem:[#allocation2 + $0x320] sm:$0xff]  ;;  %v1401_v36 = vld [vmem:[#allocation2 + $0x330] sm:$0xff] }
 0x481   :  { %1631 = vmatpush1.bf16.msra.mxu0 %v1547_v37  ;;  %1713 = vmatpush1.bf16.msra.mxu1 %v1549_v9  ;;  %v1408_v37 = vld [vmem:[#allocation2 + $0x368] sm:$0xff]  ;;  %v1410_v9 = vld [vmem:[#allocation2 + $0x378] sm:$0xff] }
 0x482   :  { %1723 = vmatprep.subr.bf16.mxu0 %v1304_v41  ;;  %1805 = vmatprep.subr.bf16.mxu1 %v1306_v43  ;;  %v1407_v41 = vld [vmem:[#allocation2 + $0x360] sm:$0xff]  ;;  %v1409_v43 = vld [vmem:[#allocation2 + $0x370] sm:$0xff] }
 0x484   :  { %1633 = vmatmul.mubr.bf16.vlgmr.msra.gmra.mrb[8].mxu0 %v4575_v44  ;;  %1715 = vmatmul.mubr.bf16.vlgmr.msra.gmra.mrb[8].mxu1 %v4575_v44 }
 0x485   :  { %1724 = vmatpush1.bf16.msra.mxu0 %v1303_v45  ;;  %1806 = vmatpush1.bf16.msra.mxu1 %v1305_v46  ;;  %v1416_v45 = vld [vmem:[#allocation2 + $0x3a8] sm:$0xff]  ;;  %v1418_v46 = vld [vmem:[#allocation2 + $0x3b8] sm:$0xff] }
 0x486   :  { %1725 = vmatprep.subr.bf16.mxu0 %v1312_v47  ;;  %1807 = vmatprep.subr.bf16.mxu1 %v1314_v48  ;;  %v1415_v47 = vld [vmem:[#allocation2 + $0x3a0] sm:$0xff]  ;;  %v1417_v48 = vld [vmem:[#allocation2 + $0x3b0] sm:$0xff] }
 0x487   :  { %1755 = vmatprep.mubr.bf16.mxu0 %v4557_v10  ;;  %1837 = vmatprep.mubr.bf16.mxu1 %v4557_v10  ;;  %v1335_v10 = vld [vmem:[#allocation2 + $0x120] sm:$0xff] }
 0x489   :  { %1726 = vmatpush1.bf16.msra.mxu0 %v1311_v49  ;;  %1808 = vmatpush1.bf16.msra.mxu1 %v1313_v50  ;;  %v1424_v49 = vld [vmem:[#allocation2 + $0x3e8] sm:$0xff]  ;;  %v1426_v50 = vld [vmem:[#allocation2 + $0x3f8] sm:$0xff] }
 0x48a   :  { %1727 = vmatprep.subr.bf16.mxu0 %v1320_v8  ;;  %1809 = vmatprep.subr.bf16.mxu1 %v1322_v51  ;;  %v1423_v8 = vld [vmem:[#allocation2 + $0x3e0] sm:$0xff]  ;;  %v1425_v51 = vld [vmem:[#allocation2 + $0x3f0] sm:$0xff] }
 0x48d   :  { %1728 = vmatpush1.bf16.msra.mxu0 %v1319_v52  ;;  %1810 = vmatpush1.bf16.msra.mxu1 %v1321_v40  ;;  %v1432_v52 = vld [vmem:[#allocation2 + $0x428] sm:$0xff]  ;;  %v1434_v40 = vld [vmem:[#allocation2 + $0x438] sm:$0xff] }
 0x48e   :  { %1729 = vmatprep.subr.bf16.mxu0 %v1328_v42  ;;  %1811 = vmatprep.subr.bf16.mxu1 %v1330_v53  ;;  %v1431_v42 = vld [vmem:[#allocation2 + $0x420] sm:$0xff]  ;;  %v1433_v53 = vld [vmem:[#allocation2 + $0x430] sm:$0xff] }
 0x491   :  { %1730 = vmatpush1.bf16.msra.mxu0 %v1327_v0  ;;  %1812 = vmatpush1.bf16.msra.mxu1 %v1329_v59  ;;  %v1440_v0 = vld [vmem:[#allocation2 + $0x468] sm:$0xff]  ;;  %v1442_v59 = vld [vmem:[#allocation2 + $0x478] sm:$0xff] }
 0x492   :  { %1731 = vmatprep.subr.bf16.mxu0 %v1336_v56  ;;  %1813 = vmatprep.subr.bf16.mxu1 %v1338_v60  ;;  %v1439_v56 = vld [vmem:[#allocation2 + $0x460] sm:$0xff]  ;;  %v1441_v60 = vld [vmem:[#allocation2 + $0x470] sm:$0xff] }
 0x495   :  { %1732 = vmatpush1.bf16.msra.mxu0 %v1335_v10  ;;  %1814 = vmatpush1.bf16.msra.mxu1 %v1337_v61  ;;  %v1448_v10 = vld [vmem:[#allocation2 + $0x4a8] sm:$0xff]  ;;  %v1450_v61 = vld [vmem:[#allocation2 + $0x4b8] sm:$0xff] }
 0x496   :  { %1733 = vmatprep.subr.bf16.mxu0 %v1344_v54  ;;  %1815 = vmatprep.subr.bf16.mxu1 %v1346_v57  ;;  %v1447_v54 = vld [vmem:[#allocation2 + $0x4a0] sm:$0xff]  ;;  %v1449_v57 = vld [vmem:[#allocation2 + $0x4b0] sm:$0xff] }
 0x499   :  { %1734 = vmatpush1.bf16.msra.mxu0 %v1343_v55  ;;  %1816 = vmatpush1.bf16.msra.mxu1 %v1345_v58  ;;  %v1456_v55 = vld [vmem:[#allocation2 + $0x4e8] sm:$0xff]  ;;  %v1455_v58 = vld [vmem:[#allocation2 + $0x4e0] sm:$0xff] }
 0x49a   :  { %1735 = vmatprep.subr.bf16.mxu0 %v1352_v62  ;;  %1817 = vmatprep.subr.bf16.mxu1 %v1354_v63  ;;  %v1457_v62 = vld [vmem:[#allocation2 + $0x4f0] sm:$0xff]  ;;  %v1464_v63 = vld [vmem:[#allocation2 + $0x528] sm:$0xff] }
 0x49d   :  { %1736 = vmatpush1.bf16.msra.mxu0 %v1351_v1  ;;  %1818 = vmatpush1.bf16.msra.mxu1 %v1353_v2  ;;  %v1466_v1 = vld [vmem:[#allocation2 + $0x538] sm:$0xff]  ;;  %v1465_v2 = vld [vmem:[#allocation2 + $0x530] sm:$0xff] }
 0x49e   :  { %1737 = vmatprep.subr.bf16.mxu0 %v1360_v3  ;;  %1819 = vmatprep.subr.bf16.mxu1 %v1362_v4  ;;  %v1472_v3 = vld [vmem:[#allocation2 + $0x568] sm:$0xff]  ;;  %v1474_v4 = vld [vmem:[#allocation2 + $0x578] sm:$0xff] }
 0x4a1   :  { %1738 = vmatpush1.bf16.msra.mxu0 %v1359_v5  ;;  %1820 = vmatpush1.bf16.msra.mxu1 %v1361_v7  ;;  %v1471_v5 = vld [vmem:[#allocation2 + $0x560] sm:$0xff]  ;;  %v1473_v7 = vld [vmem:[#allocation2 + $0x570] sm:$0xff] }
 0x4a2   :  { %1739 = vmatprep.subr.bf16.mxu0 %v1368_v11  ;;  %1821 = vmatprep.subr.bf16.mxu1 %v1370_v12  ;;  %v1480_v11 = vld [vmem:[#allocation2 + $0x5a8] sm:$0xff]  ;;  %v1482_v12 = vld [vmem:[#allocation2 + $0x5b8] sm:$0xff] }
 0x4a5   :  { %1740 = vmatpush1.bf16.msra.mxu0 %v1367_v13  ;;  %1822 = vmatpush1.bf16.msra.mxu1 %v1369_v14  ;;  %v1479_v13 = vld [vmem:[#allocation2 + $0x5a0] sm:$0xff]  ;;  %v1481_v14 = vld [vmem:[#allocation2 + $0x5b0] sm:$0xff] }
 0x4a6   :  { %1741 = vmatprep.subr.bf16.mxu0 %v1376_v15  ;;  %1823 = vmatprep.subr.bf16.mxu1 %v1378_v16  ;;  %v1488_v15 = vld [vmem:[#allocation2 + $0x5e8] sm:$0xff]  ;;  %v1490_v16 = vld [vmem:[#allocation2 + $0x5f8] sm:$0xff] }
 0x4a9   :  { %1742 = vmatpush1.bf16.msra.mxu0 %v1375_v17  ;;  %1824 = vmatpush1.bf16.msra.mxu1 %v1377_v18  ;;  %v1487_v17 = vld [vmem:[#allocation2 + $0x5e0] sm:$0xff]  ;;  %v1489_v18 = vld [vmem:[#allocation2 + $0x5f0] sm:$0xff] }
 0x4aa   :  { %1743 = vmatprep.subr.bf16.mxu0 %v1384_v19  ;;  %1825 = vmatprep.subr.bf16.mxu1 %v1386_v20  ;;  %v1496_v19 = vld [vmem:[#allocation2 + $0x628] sm:$0xff]  ;;  %v1498_v20 = vld [vmem:[#allocation2 + $0x638] sm:$0xff] }
 0x4ad   :  { %1744 = vmatpush1.bf16.msra.mxu0 %v1383_v21  ;;  %1826 = vmatpush1.bf16.msra.mxu1 %v1385_v23  ;;  %v1495_v21 = vld [vmem:[#allocation2 + $0x620] sm:$0xff]  ;;  %v1497_v23 = vld [vmem:[#allocation2 + $0x630] sm:$0xff] }
 0x4ae   :  { %1745 = vmatprep.subr.bf16.mxu0 %v1392_v24  ;;  %1827 = vmatprep.subr.bf16.mxu1 %v1394_v26  ;;  %v1504_v24 = vld [vmem:[#allocation2 + $0x668] sm:$0xff]  ;;  %v1506_v26 = vld [vmem:[#allocation2 + $0x678] sm:$0xff] }
 0x4b1   :  { %1746 = vmatpush1.bf16.msra.mxu0 %v1391_v27  ;;  %1828 = vmatpush1.bf16.msra.mxu1 %v1393_v30  ;;  %v1503_v27 = vld [vmem:[#allocation2 + $0x660] sm:$0xff]  ;;  %v1505_v30 = vld [vmem:[#allocation2 + $0x670] sm:$0xff] }
 0x4b2   :  { %1747 = vmatprep.subr.bf16.mxu0 %v1400_v31  ;;  %1829 = vmatprep.subr.bf16.mxu1 %v1402_v6  ;;  %v1512_v31 = vld [vmem:[#allocation2 + $0x6a8] sm:$0xff]  ;;  %v1514_v6 = vld [vmem:[#allocation2 + $0x6b8] sm:$0xff] }
 0x4b5   :  { %1748 = vmatpush1.bf16.msra.mxu0 %v1399_v35  ;;  %1830 = vmatpush1.bf16.msra.mxu1 %v1401_v36  ;;  %v1511_v35 = vld [vmem:[#allocation2 + $0x6a0] sm:$0xff]  ;;  %v1513_v36 = vld [vmem:[#allocation2 + $0x6b0] sm:$0xff] }
 0x4b6   :  { %1749 = vmatprep.subr.bf16.mxu0 %v1408_v37  ;;  %1831 = vmatprep.subr.bf16.mxu1 %v1410_v9  ;;  %v1520_v37 = vld [vmem:[#allocation2 + $0x6e8] sm:$0xff]  ;;  %v1522_v9 = vld [vmem:[#allocation2 + $0x6f8] sm:$0xff] }
 0x4b9   :  { %1750 = vmatpush1.bf16.msra.mxu0 %v1407_v41  ;;  %1832 = vmatpush1.bf16.msra.mxu1 %v1409_v43  ;;  %v1519_v41 = vld [vmem:[#allocation2 + $0x6e0] sm:$0xff]  ;;  %v1521_v43 = vld [vmem:[#allocation2 + $0x6f0] sm:$0xff] }
 0x4ba   :  { %1751 = vmatprep.subr.bf16.mxu0 %v1416_v45  ;;  %1833 = vmatprep.subr.bf16.mxu1 %v1418_v46  ;;  %v1528_v45 = vld [vmem:[#allocation2 + $0x728] sm:$0xff]  ;;  %v1530_v46 = vld [vmem:[#allocation2 + $0x738] sm:$0xff] }
 0x4bd   :  { %1752 = vmatpush1.bf16.msra.mxu0 %v1415_v47  ;;  %1834 = vmatpush1.bf16.msra.mxu1 %v1417_v48  ;;  %v1527_v47 = vld [vmem:[#allocation2 + $0x720] sm:$0xff]  ;;  %v1529_v48 = vld [vmem:[#allocation2 + $0x730] sm:$0xff] }
 0x4be   :  { %1753 = vmatprep.subr.bf16.mxu0 %v1424_v49  ;;  %1835 = vmatprep.subr.bf16.mxu1 %v1426_v50  ;;  %v1536_v49 = vld [vmem:[#allocation2 + $0x768] sm:$0xff]  ;;  %v1538_v50 = vld [vmem:[#allocation2 + $0x778] sm:$0xff] }
 0x4c1   :  { %1754 = vmatpush1.bf16.msra.mxu0 %v1423_v8  ;;  %1836 = vmatpush1.bf16.msra.mxu1 %v1425_v51  ;;  %v1535_v8 = vld [vmem:[#allocation2 + $0x760] sm:$0xff]  ;;  %v1537_v51 = vld [vmem:[#allocation2 + $0x770] sm:$0xff] }
 0x4c2   :  { %1764 = vmatprep.subr.bf16.mxu0 %v1432_v52  ;;  %1846 = vmatprep.subr.bf16.mxu1 %v1434_v40  ;;  %v1544_v52 = vld [vmem:[#allocation2 + $0x7a8] sm:$0xff]  ;;  %v1546_v40 = vld [vmem:[#allocation2 + $0x7b8] sm:$0xff] }
 0x4c4   :  { %1756 = vmatmul.mubr.bf16.vlgmr.msra.gmra.mrb[12].mxu0 %v4563_v25  ;;  %1838 = vmatmul.mubr.bf16.vlgmr.msra.gmra.mrb[12].mxu1 %v4563_v25  ;;  %v1458_v25 = vld [vmem:[#allocation2 + $0x4f8] sm:$0xff] }
 0x4c5   :  { %1765 = vmatpush1.bf16.msra.mxu0 %v1431_v42  ;;  %1847 = vmatpush1.bf16.msra.mxu1 %v1433_v53  ;;  %v1543_v42 = vld [vmem:[#allocation2 + $0x7a0] sm:$0xff]  ;;  %v1545_v53 = vld [vmem:[#allocation2 + $0x7b0] sm:$0xff] }
 0x4c6   :  { %1766 = vmatprep.subr.bf16.mxu0 %v1440_v0  ;;  %1848 = vmatprep.subr.bf16.mxu1 %v1442_v59  ;;  %v1552_v0 = vld [vmem:[#allocation2 + $0x7e8] sm:$0xff]  ;;  %v1554_v59 = vld [vmem:[#allocation2 + $0x7f8] sm:$0xff] }
 0x4c7   :  { %1796 = vmatprep.mubr.bf16.mxu0 %v4567_v32  ;;  %1878 = vmatprep.mubr.bf16.mxu1 %v4567_v32  ;;  %v1463_v32 = vld [vmem:[#allocation2 + $0x520] sm:$0xff] }
 0x4c9   :  { %1767 = vmatpush1.bf16.msra.mxu0 %v1439_v56  ;;  %1849 = vmatpush1.bf16.msra.mxu1 %v1441_v60  ;;  %v1551_v56 = vld [vmem:[#allocation2 + $0x7e0] sm:$0xff]  ;;  %v1553_v60 = vld [vmem:[#allocation2 + $0x7f0] sm:$0xff] }
 0x4ca   :  { %1768 = vmatprep.subr.bf16.mxu0 %v1448_v10  ;;  %1850 = vmatprep.subr.bf16.mxu1 %v1450_v61 }
 0x4cd   :  { %1769 = vmatpush1.bf16.msra.mxu0 %v1447_v54  ;;  %1851 = vmatpush1.bf16.msra.mxu1 %v1449_v57 }
 0x4ce   :  { %1770 = vmatprep.subr.bf16.mxu0 %v1456_v55  ;;  %1852 = vmatprep.subr.bf16.mxu1 %v1458_v25 }
 0x4d1   :  { %1771 = vmatpush1.bf16.msra.mxu0 %v1455_v58  ;;  %1853 = vmatpush1.bf16.msra.mxu1 %v1457_v62 }
 0x4d2   :  { %1772 = vmatprep.subr.bf16.mxu0 %v1464_v63  ;;  %1854 = vmatprep.subr.bf16.mxu1 %v1466_v1 }
 0x4d5   :  { %1773 = vmatpush1.bf16.msra.mxu0 %v1463_v32  ;;  %1855 = vmatpush1.bf16.msra.mxu1 %v1465_v2 }
 0x4d6   :  { %1774 = vmatprep.subr.bf16.mxu0 %v1472_v3  ;;  %1856 = vmatprep.subr.bf16.mxu1 %v1474_v4 }
 0x4d9   :  { %1775 = vmatpush1.bf16.msra.mxu0 %v1471_v5  ;;  %1857 = vmatpush1.bf16.msra.mxu1 %v1473_v7 }
 0x4da   :  { %1776 = vmatprep.subr.bf16.mxu0 %v1480_v11  ;;  %1858 = vmatprep.subr.bf16.mxu1 %v1482_v12 }
 0x4dd   :  { %1777 = vmatpush1.bf16.msra.mxu0 %v1479_v13  ;;  %1859 = vmatpush1.bf16.msra.mxu1 %v1481_v14 }
 0x4de   :  { %1778 = vmatprep.subr.bf16.mxu0 %v1488_v15  ;;  %1860 = vmatprep.subr.bf16.mxu1 %v1490_v16 }
 0x4e1   :  { %1779 = vmatpush1.bf16.msra.mxu0 %v1487_v17  ;;  %1861 = vmatpush1.bf16.msra.mxu1 %v1489_v18 }
 0x4e2   :  { %1780 = vmatprep.subr.bf16.mxu0 %v1496_v19  ;;  %1862 = vmatprep.subr.bf16.mxu1 %v1498_v20 }
 0x4e5   :  { %1781 = vmatpush1.bf16.msra.mxu0 %v1495_v21  ;;  %1863 = vmatpush1.bf16.msra.mxu1 %v1497_v23 }
 0x4e6   :  { %1782 = vmatprep.subr.bf16.mxu0 %v1504_v24  ;;  %1864 = vmatprep.subr.bf16.mxu1 %v1506_v26 }
 0x4e9   :  { %1783 = vmatpush1.bf16.msra.mxu0 %v1503_v27  ;;  %1865 = vmatpush1.bf16.msra.mxu1 %v1505_v30 }
 0x4ea   :  { %1784 = vmatprep.subr.bf16.mxu0 %v1512_v31  ;;  %1866 = vmatprep.subr.bf16.mxu1 %v1514_v6 }
 0x4ed   :  { %1785 = vmatpush1.bf16.msra.mxu0 %v1511_v35  ;;  %1867 = vmatpush1.bf16.msra.mxu1 %v1513_v36 }
 0x4ee   :  { %1786 = vmatprep.subr.bf16.mxu0 %v1520_v37  ;;  %1868 = vmatprep.subr.bf16.mxu1 %v1522_v9 }
 0x4f1   :  { %1787 = vmatpush1.bf16.msra.mxu0 %v1519_v41  ;;  %1869 = vmatpush1.bf16.msra.mxu1 %v1521_v43 }
 0x4f2   :  { %1788 = vmatprep.subr.bf16.mxu0 %v1528_v45  ;;  %1870 = vmatprep.subr.bf16.mxu1 %v1530_v46 }
 0x4f5   :  { %1789 = vmatpush1.bf16.msra.mxu0 %v1527_v47  ;;  %1871 = vmatpush1.bf16.msra.mxu1 %v1529_v48 }
 0x4f6   :  { %1790 = vmatprep.subr.bf16.mxu0 %v1536_v49  ;;  %1872 = vmatprep.subr.bf16.mxu1 %v1538_v50 }
 0x4f9   :  { %1791 = vmatpush1.bf16.msra.mxu0 %v1535_v8  ;;  %1873 = vmatpush1.bf16.msra.mxu1 %v1537_v51 }
 0x4fa   :  { %1792 = vmatprep.subr.bf16.mxu0 %v1544_v52  ;;  %1874 = vmatprep.subr.bf16.mxu1 %v1546_v40 }
 0x4fd   :  { %1793 = vmatpush1.bf16.msra.mxu0 %v1543_v42  ;;  %1875 = vmatpush1.bf16.msra.mxu1 %v1545_v53 }
 0x4fe   :  { %1794 = vmatprep.subr.bf16.mxu0 %v1552_v0  ;;  %1876 = vmatprep.subr.bf16.mxu1 %v1554_v59 }
 0x501   :  { %1795 = vmatpush1.bf16.msra.mxu0 %v1551_v56  ;;  %1877 = vmatpush1.bf16.msra.mxu1 %v1553_v60 }
 0x504   :  { %1797 = vmatmul.mubr.bf16.vlgmr.msra.gmra.mrb[12].mxu0 %v4575_v44  ;;  %1879 = vmatmul.mubr.bf16.vlgmr.msra.gmra.mrb[12].mxu1 %v4575_v44 }
 0x557   :  { %v4587_v10 = vpop.f32.mrb[8].mxu0  ;;  %v4589_v61 = vpop.f32.mrb[8].mxu1 }
 0x558   :  { %v1887_v54 = vmul.f32 %v4490_v39, %v4587_v10  ;;  %v1889_v57 = vmul.f32 %v4490_v39, %v4589_v61  ;;  %v4595_v55 = vpop.f32.mrb[9].mxu0  ;;  %v4597_v25 = vpop.f32.mrb[9].mxu1 }
 0x559   :  { %v1888_v58 = vmul.f32 %v4490_v39, %v4595_v55  ;;  %v1890_v44 = vmul.f32 %v4490_v39, %v4597_v25  ;;  %v1638_v62 = vpop.f32.mrb[10].mxu0  ;;  %v1720_v63 = vpop.f32.mrb[10].mxu1 }
 0x55a   :  { %v1895_v1 = vrot.slane %v1887_v54, 4  ;;  %v1951_v32 = vmul.f32 %v1887_v54, %v1887_v54  ;;  %v1907_v2 = vrot.slane %v1889_v57, 4  ;;  %v1953_v3 = vmul.f32 %v1889_v57, %v1889_v57  ;;  %v1639_v4 = vpop.f32.mrb[11].mxu0  ;;  %v1721_v5 = vpop.f32.mrb[11].mxu1 }
 0x55b   :  { %v1901_v7 = vrot.slane %v1888_v58, 4  ;;  %v1952_v11 = vmul.f32 %v1888_v58, %v1888_v58  ;;  %v1913_v12 = vrot.slane %v1890_v44, 4  ;;  %v1954_v13 = vmul.f32 %v1890_v44, %v1890_v44 }
 0x55c   :  { %v1896_v14 = vadd.f32 %v1895_v1, %v1887_v54  ;;  %v1959_v15 = vrot.slane %v1951_v32, 4  ;;  %v1908_v16 = vadd.f32 %v1907_v2, %v1889_v57  ;;  %v1971_v17 = vrot.slane %v1953_v3, 4 }
 0x55d   :  { %v1902_v18 = vadd.f32 %v1901_v7, %v1888_v58  ;;  %v1965_v19 = vrot.slane %v1952_v11, 4  ;;  %v1914_v20 = vadd.f32 %v1913_v12, %v1890_v44  ;;  %v1977_v21 = vrot.slane %v1954_v13, 4 }
 0x55e   :  { %v1897_v23 = vrot.slane %v1896_v14, 2  ;;  %v1960_v24 = vadd.f32 %v1959_v15, %v1951_v32  ;;  %v1909_v26 = vrot.slane %v1908_v16, 2  ;;  %v1972_v27 = vadd.f32 %v1971_v17, %v1953_v3 }
 0x55f   :  { %v1903_v30 = vrot.slane %v1902_v18, 2  ;;  %v1966_v31 = vadd.f32 %v1965_v19, %v1952_v11  ;;  %v1915_v6 = vrot.slane %v1914_v20, 2  ;;  %v1978_v35 = vadd.f32 %v1977_v21, %v1954_v13 }
 0x560   :  { %v1898_v36 = vadd.f32 %v1897_v23, %v1896_v14  ;;  %v1961_v37 = vrot.slane %v1960_v24, 2  ;;  %v1910_v9 = vadd.f32 %v1909_v26, %v1908_v16  ;;  %v1973_v41 = vrot.slane %v1972_v27, 2 }
 0x561   :  { %v1904_v43 = vadd.f32 %v1903_v30, %v1902_v18  ;;  %v1967_v45 = vrot.slane %v1966_v31, 2  ;;  %v1916_v46 = vadd.f32 %v1915_v6, %v1914_v20  ;;  %v1979_v47 = vrot.slane %v1978_v35, 2 }
 0x562   :  { %v1899_v48 = vrot.slane %v1898_v36, 1  ;;  %v1962_v49 = vadd.f32 %v1961_v37, %v1960_v24  ;;  %v1911_v50 = vrot.slane %v1910_v9, 1  ;;  %v1974_v8 = vadd.f32 %v1973_v41, %v1972_v27 }
 0x563   :  { %v1905_v51 = vrot.slane %v1904_v43, 1  ;;  %v1968_v52 = vadd.f32 %v1967_v45, %v1966_v31  ;;  %v1917_v40 = vrot.slane %v1916_v46, 1  ;;  %v1980_v42 = vadd.f32 %v1979_v47, %v1978_v35 }
 0x564   :  { %v1900_v53 = vadd.f32 %v1899_v48, %v1898_v36  ;;  %v1963_v0 = vrot.slane %v1962_v49, 1  ;;  %v1912_v59 = vadd.f32 %v1911_v50, %v1910_v9  ;;  %v1975_v56 = vrot.slane %v1974_v8, 1 }
 0x565   :  { %v1906_v60 = vadd.f32 %v1905_v51, %v1904_v43  ;;  %v1969_v54 = vrot.slane %v1968_v52, 1  ;;  %v1918_v57 = vadd.f32 %v1917_v40, %v1916_v46  ;;  %v1981_v58 = vrot.slane %v1980_v42, 1 }
 0x566   :  { %v4603_v44 = vmul.f32 0.5, %v1900_v53  ;;  %v1964_v62 = vadd.f32 %v1963_v0, %v1962_v49  ;;  %v4605_v63 = vmul.f32 0.5, %v1912_v59  ;;  %v1976_v1 = vadd.f32 %v1975_v56, %v1974_v8 }
 0x567   :  { %v4607_v32 = vmul.f32 0.5, %v1906_v60  ;;  %v1970_v2 = vadd.f32 %v1969_v54, %v1968_v52  ;;  %v4609_v3 = vmul.f32 0.5, %v1918_v57  ;;  %v1982_v4 = vadd.f32 %v1981_v58, %v1980_v42 }
 0x568   :  { %v2007_v5 = vmul.f32 0.5, %v1964_v62  ;;  %v2015_v7 = vmul.f32 %v4603_v44, %v4603_v44  ;;  %v2009_v11 = vmul.f32 0.5, %v1976_v1  ;;  %v2017_v12 = vmul.f32 %v4605_v63, %v4605_v63 }
 0x569   :  { %v2008_v13 = vmul.f32 0.5, %v1970_v2  ;;  %v2016_v14 = vmul.f32 %v4607_v32, %v4607_v32  ;;  %v2010_v15 = vmul.f32 0.5, %v1982_v4  ;;  %v2018_v16 = vmul.f32 %v4609_v3, %v4609_v3 }
 0x56a   :  { %v2023_v17 = vsub.f32 %v2007_v5, %v2015_v7  ;;  %v2025_v18 = vsub.f32 %v2009_v11, %v2017_v12 }
 0x56b   :  { %v2024_v19 = vsub.f32 %v2008_v13, %v2016_v14  ;;  %v2026_v20 = vsub.f32 %v2010_v15, %v2018_v16 }
 0x56c   :  { %v2032_v21 = vadd.f32 0.8, %v2023_v17  ;;  %v2034_v23 = vadd.f32 0.8, %v2025_v18 }
 0x56d   :  { %v2033_v24 = vadd.f32 0.8, %v2024_v19  ;;  %v2035_v26 = vadd.f32 0.8, %v2026_v20 }
 0x56e   :  { %3925 = vrsqrt.f32 %v2032_v21 }
 0x56f   :  { %3927 = vrsqrt.f32 %v2034_v23 }
 0x570   :  { %3929 = vrsqrt.f32 %v2033_v24 }
 0x571   :  { %3931 = vrsqrt.f32 %v2035_v26 }
 0x578   :  { %v3926_v27 = vpop.eup %3925 }
 0x579   :  { %v3928_v30 = vpop.eup %3927 }
 0x57a   :  { %v3930_v31 = vpop.eup %3929 }
 0x57b   :  { %v3932_v6 = vpop.eup %3931  ;;  %v2056_v35 = vcombine.low %v3926_v27, %v3930_v31 }
 0x57c   :  { %v2057_v36 = vcombine.low %v3928_v30, %v3932_v6 }
 0x57d   :  { %v4620_v37 = vrot.slane %v2056_v35, %v4495_v22 }
 0x57e   :  { %v4623_v9 = vrot.slane %v2057_v36, %v4495_v22 }
 0x580   :  { %v2088_v41 = vcombine.low %v4620_v37, %v4623_v9 }
 0x5d7   :  { %v4627_v43 = vpop.f32.mrb[12].mxu0  ;;  %v4629_v45 = vpop.f32.mrb[12].mxu1 }
 0x5d8   :  { %v1891_v46 = vmul.f32 %v4490_v39, %v4627_v43  ;;  %v1893_v47 = vmul.f32 %v4490_v39, %v4629_v45  ;;  %v4635_v48 = vpop.f32.mrb[13].mxu0  ;;  %v4637_v49 = vpop.f32.mrb[13].mxu1 }
 0x5d9   :  { %v1892_v50 = vmul.f32 %v4490_v39, %v4635_v48  ;;  %v1894_v8 = vmul.f32 %v4490_v39, %v4637_v49  ;;  %v1802_v51 = vpop.f32.mrb[14].mxu0  ;;  %v1884_v52 = vpop.f32.mrb[14].mxu1 }
 0x5da   :  { %v1919_v40 = vrot.slane %v1891_v46, 4  ;;  %v1955_v42 = vmul.f32 %v1891_v46, %v1891_v46  ;;  %v1931_v53 = vrot.slane %v1893_v47, 4  ;;  %v1957_v0 = vmul.f32 %v1893_v47, %v1893_v47  ;;  %v1803_v59 = vpop.f32.mrb[15].mxu0  ;;  %v1885_v56 = vpop.f32.mrb[15].mxu1 }
 0x5db   :  { %v1925_v60 = vrot.slane %v1892_v50, 4  ;;  %v1956_v54 = vmul.f32 %v1892_v50, %v1892_v50  ;;  %v1937_v57 = vrot.slane %v1894_v8, 4  ;;  %v1958_v58 = vmul.f32 %v1894_v8, %v1894_v8 }
 0x5dc   :  { %v1920_v62 = vadd.f32 %v1919_v40, %v1891_v46  ;;  %v1983_v1 = vrot.slane %v1955_v42, 4  ;;  %v1932_v2 = vadd.f32 %v1931_v53, %v1893_v47  ;;  %v1995_v4 = vrot.slane %v1957_v0, 4 }
 0x5dd   :  { %v1926_v5 = vadd.f32 %v1925_v60, %v1892_v50  ;;  %v1989_v7 = vrot.slane %v1956_v54, 4  ;;  %v1938_v11 = vadd.f32 %v1937_v57, %v1894_v8  ;;  %v2001_v39 = vrot.slane %v1958_v58, 4 }
 0x5de   :  { %v1921_v12 = vrot.slane %v1920_v62, 2  ;;  %v1984_v13 = vadd.f32 %v1983_v1, %v1955_v42  ;;  %v1933_v14 = vrot.slane %v1932_v2, 2  ;;  %v1996_v15 = vadd.f32 %v1995_v4, %v1957_v0 }
 0x5df   :  { %v1927_v16 = vrot.slane %v1926_v5, 2  ;;  %v1990_v17 = vadd.f32 %v1989_v7, %v1956_v54  ;;  %v1939_v18 = vrot.slane %v1938_v11, 2  ;;  %v2002_v19 = vadd.f32 %v2001_v39, %v1958_v58 }
 0x5e0   :  { %v1922_v20 = vadd.f32 %v1921_v12, %v1920_v62  ;;  %v1985_v21 = vrot.slane %v1984_v13, 2  ;;  %v1934_v23 = vadd.f32 %v1933_v14, %v1932_v2  ;;  %v1997_v24 = vrot.slane %v1996_v15, 2 }
 0x5e1   :  { %v1928_v26 = vadd.f32 %v1927_v16, %v1926_v5  ;;  %v1991_v27 = vrot.slane %v1990_v17, 2  ;;  %v1940_v30 = vadd.f32 %v1939_v18, %v1938_v11  ;;  %v2003_v31 = vrot.slane %v2002_v19, 2 }
 0x5e2   :  { %v1923_v6 = vrot.slane %v1922_v20, 1  ;;  %v1986_v35 = vadd.f32 %v1985_v21, %v1984_v13  ;;  %v1935_v36 = vrot.slane %v1934_v23, 1  ;;  %v1998_v46 = vadd.f32 %v1997_v24, %v1996_v15 }
 0x5e3   :  { %v1929_v47 = vrot.slane %v1928_v26, 1  ;;  %v1992_v50 = vadd.f32 %v1991_v27, %v1990_v17  ;;  %v1941_v8 = vrot.slane %v1940_v30, 1  ;;  %v2004_v51 = vadd.f32 %v2003_v31, %v2002_v19 }
 0x5e4   :  { %v1924_v52 = vadd.f32 %v1923_v6, %v1922_v20  ;;  %v1987_v40 = vrot.slane %v1986_v35, 1  ;;  %v1936_v42 = vadd.f32 %v1935_v36, %v1934_v23  ;;  %v1999_v53 = vrot.slane %v1998_v46, 1 }
 0x5e5   :  { %v1930_v0 = vadd.f32 %v1929_v47, %v1928_v26  ;;  %v1993_v59 = vrot.slane %v1992_v50, 1  ;;  %v1942_v56 = vadd.f32 %v1941_v8, %v1940_v30  ;;  %v2005_v60 = vrot.slane %v2004_v51, 1 }
 0x5e6   :  { %v1947_v54 = vmul.f32 0.5, %v1924_v52  ;;  %v1988_v57 = vadd.f32 %v1987_v40, %v1986_v35  ;;  %v1949_v58 = vmul.f32 0.5, %v1936_v42  ;;  %v2000_v62 = vadd.f32 %v1999_v53, %v1998_v46  ;;  %v2031_v52 = vld [vmem:[#allocation18] sm:$0xff] }
 0x5e7   :  { %v1948_v1 = vmul.f32 0.5, %v1930_v0  ;;  %v1994_v2 = vadd.f32 %v1993_v59, %v1992_v50  ;;  %v1950_v4 = vmul.f32 0.5, %v1942_v56  ;;  %v2006_v5 = vadd.f32 %v2005_v60, %v2004_v51 }
 0x5e8   :  { %v2011_v7 = vmul.f32 0.5, %v1988_v57  ;;  %v2019_v11 = vmul.f32 %v1947_v54, %v1947_v54  ;;  %v2013_v39 = vmul.f32 0.5, %v2000_v62  ;;  %v2021_v12 = vmul.f32 %v1949_v58, %v1949_v58 }
 0x5e9   :  { %v2012_v13 = vmul.f32 0.5, %v1994_v2  ;;  %v2020_v14 = vmul.f32 %v1948_v1, %v1948_v1  ;;  %v2014_v15 = vmul.f32 0.5, %v2006_v5  ;;  %v2022_v16 = vmul.f32 %v1950_v4, %v1950_v4 }
 0x5ea   :  { %v2027_v17 = vsub.f32 %v2011_v7, %v2019_v11  ;;  %v2029_v18 = vsub.f32 %v2013_v39, %v2021_v12  ;;  %v2096_v8 = vrot.slane %v2088_v41, %v4495_v22  ;;  %v4651_v42 = vsub.s32 4, %v4486_v38 }
 0x5eb   :  { %v2028_v19 = vsub.f32 %v2012_v13, %v2020_v14  ;;  %v2030_v20 = vsub.f32 %v2014_v15, %v2022_v16  ;;  %v4654_v53 = vsub.s32 5, %v4486_v38  ;;  %v4657_v0 = vsub.s32 6, %v4486_v38 }
 0x5ec   :  { %v2036_v21 = vadd.f32 0.8, %v2027_v17  ;;  %v2038_v23 = vadd.f32 0.8, %v2029_v18  ;;  %v4660_v59 = vsub.s32 7, %v4486_v38 }
 0x5ed   :  { %v2037_v24 = vadd.f32 0.8, %v2028_v19  ;;  %v2039_v26 = vadd.f32 0.8, %v2030_v20 }
 0x5ee   :  { %3933 = vrsqrt.f32 %v2036_v21 }
 0x5ef   :  { %3935 = vrsqrt.f32 %v2038_v23 }
 0x5f0   :  { %3937 = vrsqrt.f32 %v2037_v24 }
 0x5f1   :  { %3939 = vrsqrt.f32 %v2039_v26  ;;  %v2107_v26 = vld [vmem:[#allocation19] sm:$0xff] }
 0x5f8   :  { %v3934_v27 = vpop.eup %3933 }
 0x5f9   :  { %v3936_v30 = vpop.eup %3935 }
 0x5fa   :  { %v3938_v31 = vpop.eup %3937 }
 0x5fb   :  { %v3940_v6 = vpop.eup %3939  ;;  %v2058_v35 = vcombine.low %v3934_v27, %v3938_v31 }
 0x5fc   :  { %v2059_v36 = vcombine.low %v3936_v30, %v3940_v6 }
 0x5fd   :  { %v2080_v46 = vrot.slane %v2058_v35, %v4495_v22 }
 0x5fe   :  { %v2087_v47 = vrot.slane %v2059_v36, %v4495_v22 }
 0x600   :  { %v2089_v50 = vcombine.low %v2080_v46, %v2087_v47 }
 0x602   :  { %v2103_v51 = vrot.slane %v2089_v50, %v4495_v22 }
 0x604   :  { %v2104_v40 = vcombine.low %v2096_v8, %v2103_v51 }
 0x606   :  { %v2106_v56 = vmul.f32 %v2104_v40, %v2031_v52 }
 0x608   :  { %v2112_v37 = vrot.slane %v2106_v56, %v4500_v28  ;;  %v2116_v9 = vrot.slane %v2106_v56, %v4503_v29  ;;  %v2120_v41 = vrot.slane %v2106_v56, %v4531_v33  ;;  %v2124_v60 = vrot.slane %v2106_v56, %v4534_v34 }
 0x609   :  { %v2128_v57 = vrot.slane %v2106_v56, %v4651_v42  ;;  %v2132_v62 = vrot.slane %v2106_v56, %v4654_v53  ;;  %v2136_v2 = vrot.slane %v2106_v56, %v4657_v0  ;;  %v2140_v5 = vrot.slane %v2106_v56, %v4660_v59 }
 0x60a   :  { %v2149_v38 = vmul.f32 %v2112_v37, %v4603_v44  ;;  %v2150_v7 = vmul.f32 %v2116_v9, %v4607_v32  ;;  %v2151_v11 = vmul.f32 %v2120_v41, %v4605_v63  ;;  %v2152_v39 = vmul.f32 %v2124_v60, %v4609_v3 }
 0x60b   :  { %v2153_v12 = vmul.f32 %v2128_v57, %v1947_v54  ;;  %v2154_v13 = vmul.f32 %v2132_v62, %v1948_v1  ;;  %v2155_v14 = vmul.f32 %v2136_v2, %v1949_v58  ;;  %v2156_v15 = vmul.f32 %v2140_v5, %v1950_v4 }
 0x60c   :  { %v2165_v16 = vcombine.low %v2149_v38, %v2150_v7  ;;  %v2166_v17 = vcombine.low %v2151_v11, %v2152_v39  ;;  %v2216_v18 = vmul.f32 %v2112_v37, %v4587_v10  ;;  %v2217_v19 = vmul.f32 %v2116_v9, %v4595_v55 }
 0x60d   :  { %v2167_v20 = vcombine.low %v2153_v12, %v2154_v13  ;;  %v2168_v21 = vcombine.low %v2155_v14, %v2156_v15  ;;  %v2218_v44 = vmul.f32 %v2120_v41, %v4589_v61  ;;  %v2219_v32 = vmul.f32 %v2124_v60, %v4597_v25 }
 0x60e   :  { %v2175_v63 = vrot.slane %v2165_v16, %v4495_v22  ;;  %v2182_v3 = vrot.slane %v2166_v17, %v4495_v22  ;;  %v2220_v54 = vmul.f32 %v2128_v57, %v4627_v43  ;;  %v2221_v58 = vmul.f32 %v2132_v62, %v4635_v48 }
 0x60f   :  { %v2189_v1 = vrot.slane %v2167_v20, %v4495_v22  ;;  %v2196_v10 = vrot.slane %v2168_v21, %v4495_v22  ;;  %v2222_v55 = vmul.f32 %v2136_v2, %v4629_v45  ;;  %v2223_v4 = vmul.f32 %v2140_v5, %v4637_v49 }
 0x610   :  { %v2197_v23 = vcombine.low %v2175_v63, %v2182_v3 }
 0x611   :  { %v2198_v61 = vcombine.low %v2189_v1, %v2196_v10 }
 0x612   :  { %v2205_v25 = vrot.slane %v2197_v23, %v4495_v22 }
 0x613   :  { %v2212_v24 = vrot.slane %v2198_v61, %v4495_v22 }
 0x615   :  { %v2213_v27 = vcombine.low %v2205_v25, %v2212_v24 }
 0x617   :  { %v2215_v30 = vsub.f32 %v2107_v26, %v2213_v27 }
 0x619   :  { %v2228_v43 = vrot.slane %v2215_v30, %v4500_v28  ;;  %v2232_v48 = vrot.slane %v2215_v30, %v4503_v29  ;;  %v2236_v31 = vrot.slane %v2215_v30, %v4531_v33  ;;  %v2240_v6 = vrot.slane %v2215_v30, %v4534_v34 }
 0x61a   :  { %v2244_v45 = vrot.slane %v2215_v30, %v4651_v42  ;;  %v2248_v49 = vrot.slane %v2215_v30, %v4654_v53  ;;  %v2252_v35 = vrot.slane %v2215_v30, %v4657_v0  ;;  %v2256_v36 = vrot.slane %v2215_v30, %v4660_v59 }
 0x61b   :  { %v2265_v22 = vadd.f32 %v2228_v43, %v2216_v18  ;;  %v2266_v46 = vadd.f32 %v2232_v48, %v2217_v19  ;;  %v2267_v47 = vadd.f32 %v2236_v31, %v2218_v44  ;;  %v2268_v50 = vadd.f32 %v2240_v6, %v2219_v32 }
 0x61c   :  { %v2269_v8 = vadd.f32 %v2244_v45, %v2220_v54  ;;  %v2270_v51 = vadd.f32 %v2248_v49, %v2221_v58  ;;  %v2271_v52 = vadd.f32 %v2252_v35, %v2222_v55  ;;  %v2272_v40 = vadd.f32 %v2256_v36, %v2223_v4 }
 0x61d   :  { %vm2273_vm9 = vcmp.gt.f32.partialorder %v2265_v22, 0.0  ;;  %vm2274_vm10 = vcmp.gt.f32.partialorder %v2266_v46, 0.0  ;;  %vm2275_vm11 = vcmp.gt.f32.partialorder %v2267_v47, 0.0  ;;  %vm2276_vm12 = vcmp.gt.f32.partialorder %v2268_v50, 0.0 }
 0x61e   :  { %vm2277_vm13 = vcmp.gt.f32.partialorder %v2269_v8, 0.0  ;;  %vm2278_vm14 = vcmp.gt.f32.partialorder %v2270_v51, 0.0  ;;  %vm2279_vm15 = vcmp.gt.f32.partialorder %v2271_v52, 0.0  ;;  %vm2280_vm0 = vcmp.gt.f32.partialorder %v2272_v40, 0.0 }
 0x61f   :  { %v2281_v56 = vmul.f32 0.2, %v2265_v22  ;;  %v2282_v37 = vmul.f32 0.2, %v2266_v46  ;;  %v2283_v9 = vmul.f32 0.2, %v2267_v47 }
 0x620   :  { %v2284_v41 = vmul.f32 0.2, %v2268_v50  ;;  %v2285_v60 = vmul.f32 0.2, %v2269_v8  ;;  %v2286_v57 = vmul.f32 0.2, %v2270_v51 }
 0x621   :  { %v2287_v62 = vmul.f32 0.2, %v2271_v52  ;;  %v2288_v2 = vmul.f32 0.2, %v2272_v40  ;;  %v4697_v5 = vsel %vm2273_vm9, %v2265_v22, %v2281_v56  ;;  %v2290_v38 = vsel %vm2274_vm10, %v2266_v46, %v2282_v37 }
 0x622   :  { %v4701_v7 = vsel %vm2275_vm11, %v2267_v47, %v2283_v9  ;;  %v4704_v11 = vsel %vm2276_vm12, %v2268_v50, %v2284_v41  ;;  %v4707_v39 = vsel %vm2277_vm13, %v2269_v8, %v2285_v60  ;;  %v4710_v12 = vsel %vm2278_vm14, %v2270_v51, %v2286_v57 }
 0x623   :  { %v4713_v13 = vsel %vm2279_vm15, %v2271_v52, %v2287_v62  ;;  %v4716_v14 = vsel %vm2280_vm0, %v2272_v40, %v2288_v2 }
 0x624   :  { %4213 = dma.done.wait [#allocation4 + $0x1], 65536 }
 0x625   :  { %4214 = vsyncadd [#allocation4 + $0x1], 4294901760  ;;  %v4718_v15 = vpack.c.bf16 %v2290_v38, %v2290_v38  ;;  %v2302_v16 = vld [vmem:[#allocation3 + $0x8] sm:$0xff]  ;;  %v2304_v17 = vld [vmem:[#allocation3 + $0x18] sm:$0xff] }
 0x626   :  { %v2301_v18 = vld [vmem:[#allocation3] sm:$0xff]  ;;  %2863 = vmatprep.subr.bf16.mxu0 %v2302_v16  ;;  %3027 = vmatprep.subr.bf16.mxu1 %v2304_v17  ;;  %v2303_v19 = vld [vmem:[#allocation3 + $0x10] sm:$0xff]  ;;  %v2310_v20 = vld [vmem:[#allocation3 + $0x48] sm:$0xff] }
 0x627   :  { %2895 = vmatprep.mubr.bf16.mxu0 %v4718_v15  ;;  %3059 = vmatprep.mubr.bf16.mxu1 %v4718_v15  ;;  %v2312_v21 = vld [vmem:[#allocation3 + $0x58] sm:$0xff]  ;;  %v2309_v44 = vld [vmem:[#allocation3 + $0x40] sm:$0xff]  ;;  %v2311_v32 = vld [vmem:[#allocation3 + $0x50] sm:$0xff] }
 0x628   :  { %2864 = vmatpush1.bf16.msra.mxu0 %v2301_v18  ;;  %3028 = vmatpush1.bf16.msra.mxu1 %v2303_v19  ;;  %v2318_v63 = vld [vmem:[#allocation3 + $0x88] sm:$0xff]  ;;  %v2320_v3 = vld [vmem:[#allocation3 + $0x98] sm:$0xff]  ;;  %v2317_v54 = vld [vmem:[#allocation3 + $0x80] sm:$0xff] }
 0x629   :  { %2865 = vmatprep.subr.bf16.mxu0 %v2310_v20  ;;  %3029 = vmatprep.subr.bf16.mxu1 %v2312_v21  ;;  %v2319_v58 = vld [vmem:[#allocation3 + $0x90] sm:$0xff]  ;;  %v2326_v1 = vld [vmem:[#allocation3 + $0xc8] sm:$0xff]  ;;  %v2328_v10 = vld [vmem:[#allocation3 + $0xd8] sm:$0xff] }
 0x62a   :  { %v2325_v55 = vld [vmem:[#allocation3 + $0xc0] sm:$0xff]  ;;  %v2327_v4 = vld [vmem:[#allocation3 + $0xd0] sm:$0xff]  ;;  %v2334_v23 = vld [vmem:[#allocation3 + $0x108] sm:$0xff] }
 0x62b   :  { %v2336_v61 = vld [vmem:[#allocation3 + $0x118] sm:$0xff]  ;;  %v2333_v25 = vld [vmem:[#allocation3 + $0x100] sm:$0xff]  ;;  %v2335_v24 = vld [vmem:[#allocation3 + $0x110] sm:$0xff] }
 0x62c   :  { %2866 = vmatpush1.bf16.msra.mxu0 %v2309_v44  ;;  %3030 = vmatpush1.bf16.msra.mxu1 %v2311_v32  ;;  %v2342_v26 = vld [vmem:[#allocation3 + $0x148] sm:$0xff]  ;;  %v2344_v27 = vld [vmem:[#allocation3 + $0x158] sm:$0xff]  ;;  %v2341_v30 = vld [vmem:[#allocation3 + $0x140] sm:$0xff] }
 0x62d   :  { %2867 = vmatprep.subr.bf16.mxu0 %v2318_v63  ;;  %3031 = vmatprep.subr.bf16.mxu1 %v2320_v3  ;;  %v2343_v43 = vld [vmem:[#allocation3 + $0x150] sm:$0xff]  ;;  %v2350_v48 = vld [vmem:[#allocation3 + $0x188] sm:$0xff]  ;;  %v2352_v31 = vld [vmem:[#allocation3 + $0x198] sm:$0xff] }
 0x62e   :  { %v2349_v6 = vld [vmem:[#allocation3 + $0x180] sm:$0xff]  ;;  %v2351_v45 = vld [vmem:[#allocation3 + $0x190] sm:$0xff]  ;;  %v2358_v49 = vld [vmem:[#allocation3 + $0x1c8] sm:$0xff] }
 0x62f   :  { %v2360_v35 = vld [vmem:[#allocation3 + $0x1d8] sm:$0xff]  ;;  %v2357_v36 = vld [vmem:[#allocation3 + $0x1c0] sm:$0xff]  ;;  %v2359_v22 = vld [vmem:[#allocation3 + $0x1d0] sm:$0xff] }
 0x630   :  { %2868 = vmatpush1.bf16.msra.mxu0 %v2317_v54  ;;  %3032 = vmatpush1.bf16.msra.mxu1 %v2319_v58  ;;  %v2366_v46 = vld [vmem:[#allocation3 + $0x208] sm:$0xff]  ;;  %v2368_v47 = vld [vmem:[#allocation3 + $0x218] sm:$0xff]  ;;  %v2365_v50 = vld [vmem:[#allocation3 + $0x200] sm:$0xff] }
 0x631   :  { %2869 = vmatprep.subr.bf16.mxu0 %v2326_v1  ;;  %3033 = vmatprep.subr.bf16.mxu1 %v2328_v10  ;;  %v2367_v8 = vld [vmem:[#allocation3 + $0x210] sm:$0xff]  ;;  %v2374_v51 = vld [vmem:[#allocation3 + $0x248] sm:$0xff]  ;;  %v2376_v52 = vld [vmem:[#allocation3 + $0x258] sm:$0xff] }
 0x632   :  { %v2373_v40 = vld [vmem:[#allocation3 + $0x240] sm:$0xff]  ;;  %v2375_v56 = vld [vmem:[#allocation3 + $0x250] sm:$0xff]  ;;  %v2382_v37 = vld [vmem:[#allocation3 + $0x288] sm:$0xff] }
 0x633   :  { %v2384_v9 = vld [vmem:[#allocation3 + $0x298] sm:$0xff]  ;;  %v2381_v41 = vld [vmem:[#allocation3 + $0x280] sm:$0xff]  ;;  %v2383_v60 = vld [vmem:[#allocation3 + $0x290] sm:$0xff] }
 0x634   :  { %2870 = vmatpush1.bf16.msra.mxu0 %v2325_v55  ;;  %3034 = vmatpush1.bf16.msra.mxu1 %v2327_v4  ;;  %v2390_v57 = vld [vmem:[#allocation3 + $0x2c8] sm:$0xff]  ;;  %v2392_v62 = vld [vmem:[#allocation3 + $0x2d8] sm:$0xff]  ;;  %v2389_v2 = vld [vmem:[#allocation3 + $0x2c0] sm:$0xff] }
 0x635   :  { %2871 = vmatprep.subr.bf16.mxu0 %v2334_v23  ;;  %3035 = vmatprep.subr.bf16.mxu1 %v2336_v61  ;;  %v2391_v38 = vld [vmem:[#allocation3 + $0x2d0] sm:$0xff]  ;;  %v2398_v16 = vld [vmem:[#allocation3 + $0x308] sm:$0xff]  ;;  %v2400_v17 = vld [vmem:[#allocation3 + $0x318] sm:$0xff] }
 0x636   :  { %v2397_v18 = vld [vmem:[#allocation3 + $0x300] sm:$0xff]  ;;  %v2399_v19 = vld [vmem:[#allocation3 + $0x310] sm:$0xff]  ;;  %v2406_v20 = vld [vmem:[#allocation3 + $0x348] sm:$0xff] }
 0x637   :  { %v2408_v21 = vld [vmem:[#allocation3 + $0x358] sm:$0xff]  ;;  %v2405_v44 = vld [vmem:[#allocation3 + $0x340] sm:$0xff]  ;;  %v2407_v32 = vld [vmem:[#allocation3 + $0x350] sm:$0xff] }
 0x638   :  { %2872 = vmatpush1.bf16.msra.mxu0 %v2333_v25  ;;  %3036 = vmatpush1.bf16.msra.mxu1 %v2335_v24  ;;  %v2414_v63 = vld [vmem:[#allocation3 + $0x388] sm:$0xff]  ;;  %v2416_v3 = vld [vmem:[#allocation3 + $0x398] sm:$0xff]  ;;  %v2413_v54 = vld [vmem:[#allocation3 + $0x380] sm:$0xff]  ;;  %v4724_v25 = vpack.c.bf16 %v4697_v5, %v4697_v5 }
 0x639   :  { %2873 = vmatprep.subr.bf16.mxu0 %v2342_v26  ;;  %3037 = vmatprep.subr.bf16.mxu1 %v2344_v27  ;;  %v2415_v58 = vld [vmem:[#allocation3 + $0x390] sm:$0xff]  ;;  %v2422_v1 = vld [vmem:[#allocation3 + $0x3c8] sm:$0xff]  ;;  %v2424_v10 = vld [vmem:[#allocation3 + $0x3d8] sm:$0xff] }
 0x63a   :  { %v2421_v55 = vld [vmem:[#allocation3 + $0x3c0] sm:$0xff]  ;;  %v2423_v4 = vld [vmem:[#allocation3 + $0x3d0] sm:$0xff]  ;;  %v2430_v23 = vld [vmem:[#allocation3 + $0x408] sm:$0xff] }
 0x63b   :  { %v2432_v61 = vld [vmem:[#allocation3 + $0x418] sm:$0xff]  ;;  %v2429_v24 = vld [vmem:[#allocation3 + $0x400] sm:$0xff]  ;;  %v2431_v26 = vld [vmem:[#allocation3 + $0x410] sm:$0xff] }
 0x63c   :  { %2874 = vmatpush1.bf16.msra.mxu0 %v2341_v30  ;;  %3038 = vmatpush1.bf16.msra.mxu1 %v2343_v43  ;;  %v2438_v27 = vld [vmem:[#allocation3 + $0x448] sm:$0xff]  ;;  %v2440_v30 = vld [vmem:[#allocation3 + $0x458] sm:$0xff]  ;;  %v4728_v43 = vpack.c.bf16 %v4704_v11, %v4704_v11  ;;  %v2437_v5 = vld [vmem:[#allocation3 + $0x440] sm:$0xff] }
 0x63d   :  { %2875 = vmatprep.subr.bf16.mxu0 %v2350_v48  ;;  %3039 = vmatprep.subr.bf16.mxu1 %v2352_v31  ;;  %v2439_v48 = vld [vmem:[#allocation3 + $0x450] sm:$0xff]  ;;  %v2446_v31 = vld [vmem:[#allocation3 + $0x488] sm:$0xff]  ;;  %v2445_v11 = vld [vmem:[#allocation3 + $0x480] sm:$0xff] }
 0x640   :  { %2876 = vmatpush1.bf16.msra.mxu0 %v2349_v6  ;;  %3040 = vmatpush1.bf16.msra.mxu1 %v2351_v45  ;;  %v2448_v6 = vld [vmem:[#allocation3 + $0x498] sm:$0xff]  ;;  %v2447_v45 = vld [vmem:[#allocation3 + $0x490] sm:$0xff] }
 0x641   :  { %2877 = vmatprep.subr.bf16.mxu0 %v2358_v49  ;;  %3041 = vmatprep.subr.bf16.mxu1 %v2360_v35  ;;  %v2454_v49 = vld [vmem:[#allocation3 + $0x4c8] sm:$0xff]  ;;  %v2456_v35 = vld [vmem:[#allocation3 + $0x4d8] sm:$0xff] }
 0x644   :  { %2878 = vmatpush1.bf16.msra.mxu0 %v2357_v36  ;;  %3042 = vmatpush1.bf16.msra.mxu1 %v2359_v22  ;;  %v2453_v36 = vld [vmem:[#allocation3 + $0x4c0] sm:$0xff]  ;;  %v2455_v22 = vld [vmem:[#allocation3 + $0x4d0] sm:$0xff] }
 0x645   :  { %2879 = vmatprep.subr.bf16.mxu0 %v2366_v46  ;;  %3043 = vmatprep.subr.bf16.mxu1 %v2368_v47  ;;  %v2462_v46 = vld [vmem:[#allocation3 + $0x508] sm:$0xff]  ;;  %v2464_v47 = vld [vmem:[#allocation3 + $0x518] sm:$0xff] }
 0x648   :  { %2880 = vmatpush1.bf16.msra.mxu0 %v2365_v50  ;;  %3044 = vmatpush1.bf16.msra.mxu1 %v2367_v8  ;;  %v2461_v50 = vld [vmem:[#allocation3 + $0x500] sm:$0xff]  ;;  %v2463_v8 = vld [vmem:[#allocation3 + $0x510] sm:$0xff] }
 0x649   :  { %2881 = vmatprep.subr.bf16.mxu0 %v2374_v51  ;;  %3045 = vmatprep.subr.bf16.mxu1 %v2376_v52  ;;  %v2470_v51 = vld [vmem:[#allocation3 + $0x548] sm:$0xff]  ;;  %v2472_v52 = vld [vmem:[#allocation3 + $0x558] sm:$0xff] }
 0x64c   :  { %2882 = vmatpush1.bf16.msra.mxu0 %v2373_v40  ;;  %3046 = vmatpush1.bf16.msra.mxu1 %v2375_v56  ;;  %v2469_v40 = vld [vmem:[#allocation3 + $0x540] sm:$0xff]  ;;  %v2471_v56 = vld [vmem:[#allocation3 + $0x550] sm:$0xff] }
 0x64d   :  { %2883 = vmatprep.subr.bf16.mxu0 %v2382_v37  ;;  %3047 = vmatprep.subr.bf16.mxu1 %v2384_v9  ;;  %v2478_v37 = vld [vmem:[#allocation3 + $0x588] sm:$0xff]  ;;  %v2480_v9 = vld [vmem:[#allocation3 + $0x598] sm:$0xff] }
 0x650   :  { %2884 = vmatpush1.bf16.msra.mxu0 %v2381_v41  ;;  %3048 = vmatpush1.bf16.msra.mxu1 %v2383_v60  ;;  %v2477_v41 = vld [vmem:[#allocation3 + $0x580] sm:$0xff]  ;;  %v2479_v60 = vld [vmem:[#allocation3 + $0x590] sm:$0xff] }
 0x651   :  { %2885 = vmatprep.subr.bf16.mxu0 %v2390_v57  ;;  %3049 = vmatprep.subr.bf16.mxu1 %v2392_v62  ;;  %v2486_v57 = vld [vmem:[#allocation3 + $0x5c8] sm:$0xff]  ;;  %v2488_v62 = vld [vmem:[#allocation3 + $0x5d8] sm:$0xff] }
 0x654   :  { %2886 = vmatpush1.bf16.msra.mxu0 %v2389_v2  ;;  %3050 = vmatpush1.bf16.msra.mxu1 %v2391_v38  ;;  %v2485_v2 = vld [vmem:[#allocation3 + $0x5c0] sm:$0xff]  ;;  %v2487_v38 = vld [vmem:[#allocation3 + $0x5d0] sm:$0xff] }
 0x655   :  { %2887 = vmatprep.subr.bf16.mxu0 %v2398_v16  ;;  %3051 = vmatprep.subr.bf16.mxu1 %v2400_v17  ;;  %v2494_v16 = vld [vmem:[#allocation3 + $0x608] sm:$0xff]  ;;  %v2496_v17 = vld [vmem:[#allocation3 + $0x618] sm:$0xff] }
 0x658   :  { %2888 = vmatpush1.bf16.msra.mxu0 %v2397_v18  ;;  %3052 = vmatpush1.bf16.msra.mxu1 %v2399_v19  ;;  %v2493_v18 = vld [vmem:[#allocation3 + $0x600] sm:$0xff]  ;;  %v2495_v19 = vld [vmem:[#allocation3 + $0x610] sm:$0xff] }
 0x659   :  { %2889 = vmatprep.subr.bf16.mxu0 %v2406_v20  ;;  %3053 = vmatprep.subr.bf16.mxu1 %v2408_v21  ;;  %v2502_v20 = vld [vmem:[#allocation3 + $0x648] sm:$0xff]  ;;  %v2504_v21 = vld [vmem:[#allocation3 + $0x658] sm:$0xff] }
 0x65c   :  { %2890 = vmatpush1.bf16.msra.mxu0 %v2405_v44  ;;  %3054 = vmatpush1.bf16.msra.mxu1 %v2407_v32  ;;  %v2501_v44 = vld [vmem:[#allocation3 + $0x640] sm:$0xff]  ;;  %v2503_v32 = vld [vmem:[#allocation3 + $0x650] sm:$0xff] }
 0x65d   :  { %2891 = vmatprep.subr.bf16.mxu0 %v2414_v63  ;;  %3055 = vmatprep.subr.bf16.mxu1 %v2416_v3  ;;  %v2510_v63 = vld [vmem:[#allocation3 + $0x688] sm:$0xff]  ;;  %v2512_v3 = vld [vmem:[#allocation3 + $0x698] sm:$0xff] }
 0x660   :  { %2892 = vmatpush1.bf16.msra.mxu0 %v2413_v54  ;;  %3056 = vmatpush1.bf16.msra.mxu1 %v2415_v58  ;;  %v2509_v54 = vld [vmem:[#allocation3 + $0x680] sm:$0xff]  ;;  %v2511_v58 = vld [vmem:[#allocation3 + $0x690] sm:$0xff] }
 0x661   :  { %2893 = vmatprep.subr.bf16.mxu0 %v2422_v1  ;;  %3057 = vmatprep.subr.bf16.mxu1 %v2424_v10  ;;  %v2518_v1 = vld [vmem:[#allocation3 + $0x6c8] sm:$0xff]  ;;  %v2520_v10 = vld [vmem:[#allocation3 + $0x6d8] sm:$0xff] }
 0x664   :  { %2894 = vmatpush1.bf16.msra.mxu0 %v2421_v55  ;;  %3058 = vmatpush1.bf16.msra.mxu1 %v2423_v4  ;;  %v2517_v55 = vld [vmem:[#allocation3 + $0x6c0] sm:$0xff]  ;;  %v2519_v4 = vld [vmem:[#allocation3 + $0x6d0] sm:$0xff] }
 0x665   :  { %2904 = vmatprep.subr.bf16.mxu0 %v2430_v23  ;;  %3068 = vmatprep.subr.bf16.mxu1 %v2432_v61  ;;  %v2526_v23 = vld [vmem:[#allocation3 + $0x708] sm:$0xff]  ;;  %v2528_v61 = vld [vmem:[#allocation3 + $0x718] sm:$0xff] }
 0x667   :  { %2896 = vmatmul.mubr.bf16.vlgmr.msra.gmra.mrb[16].mxu0 %v4724_v25  ;;  %3060 = vmatmul.mubr.bf16.vlgmr.msra.gmra.mrb[16].mxu1 %v4724_v25 }
 0x668   :  { %2905 = vmatpush1.bf16.msra.mxu0 %v2429_v24  ;;  %3069 = vmatpush1.bf16.msra.mxu1 %v2431_v26  ;;  %v2525_v24 = vld [vmem:[#allocation3 + $0x700] sm:$0xff]  ;;  %v2527_v26 = vld [vmem:[#allocation3 + $0x710] sm:$0xff] }
 0x669   :  { %2906 = vmatprep.subr.bf16.mxu0 %v2438_v27  ;;  %3070 = vmatprep.subr.bf16.mxu1 %v2440_v30  ;;  %v2534_v27 = vld [vmem:[#allocation3 + $0x748] sm:$0xff]  ;;  %v2536_v30 = vld [vmem:[#allocation3 + $0x758] sm:$0xff] }
 0x66a   :  { %2936 = vmatprep.mubr.bf16.mxu0 %v4728_v43  ;;  %3100 = vmatprep.mubr.bf16.mxu1 %v4728_v43 }
 0x66c   :  { %2907 = vmatpush1.bf16.msra.mxu0 %v2437_v5  ;;  %3071 = vmatpush1.bf16.msra.mxu1 %v2439_v48  ;;  %v2533_v5 = vld [vmem:[#allocation3 + $0x740] sm:$0xff]  ;;  %v2535_v48 = vld [vmem:[#allocation3 + $0x750] sm:$0xff] }
 0x66d   :  { %2908 = vmatprep.subr.bf16.mxu0 %v2446_v31  ;;  %3072 = vmatprep.subr.bf16.mxu1 %v2448_v6  ;;  %v2542_v31 = vld [vmem:[#allocation3 + $0x788] sm:$0xff]  ;;  %v2544_v6 = vld [vmem:[#allocation3 + $0x798] sm:$0xff] }
 0x670   :  { %2909 = vmatpush1.bf16.msra.mxu0 %v2445_v11  ;;  %3073 = vmatpush1.bf16.msra.mxu1 %v2447_v45  ;;  %v2541_v11 = vld [vmem:[#allocation3 + $0x780] sm:$0xff]  ;;  %v2543_v45 = vld [vmem:[#allocation3 + $0x790] sm:$0xff] }
 0x671   :  { %2910 = vmatprep.subr.bf16.mxu0 %v2454_v49  ;;  %3074 = vmatprep.subr.bf16.mxu1 %v2456_v35  ;;  %v2550_v49 = vld [vmem:[#allocation3 + $0x7c8] sm:$0xff]  ;;  %v2552_v35 = vld [vmem:[#allocation3 + $0x7d8] sm:$0xff] }
 0x674   :  { %2911 = vmatpush1.bf16.msra.mxu0 %v2453_v36  ;;  %3075 = vmatpush1.bf16.msra.mxu1 %v2455_v22  ;;  %v2549_v36 = vld [vmem:[#allocation3 + $0x7c0] sm:$0xff]  ;;  %v2551_v22 = vld [vmem:[#allocation3 + $0x7d0] sm:$0xff] }
 0x675   :  { %2912 = vmatprep.subr.bf16.mxu0 %v2462_v46  ;;  %3076 = vmatprep.subr.bf16.mxu1 %v2464_v47  ;;  %v2558_v46 = vld [vmem:[#allocation3 + $0x808] sm:$0xff]  ;;  %v2560_v47 = vld [vmem:[#allocation3 + $0x818] sm:$0xff] }
 0x678   :  { %2913 = vmatpush1.bf16.msra.mxu0 %v2461_v50  ;;  %3077 = vmatpush1.bf16.msra.mxu1 %v2463_v8  ;;  %v4736_v50 = vpack.c.bf16 %v4701_v7, %v4701_v7  ;;  %v2557_v8 = vld [vmem:[#allocation3 + $0x800] sm:$0xff] }
 0x679   :  { %2914 = vmatprep.subr.bf16.mxu0 %v2470_v51  ;;  %3078 = vmatprep.subr.bf16.mxu1 %v2472_v52  ;;  %v2559_v51 = vld [vmem:[#allocation3 + $0x810] sm:$0xff]  ;;  %v2566_v52 = vld [vmem:[#allocation3 + $0x848] sm:$0xff]  ;;  %v2565_v7 = vld [vmem:[#allocation3 + $0x840] sm:$0xff] }
 0x67c   :  { %2915 = vmatpush1.bf16.msra.mxu0 %v2469_v40  ;;  %3079 = vmatpush1.bf16.msra.mxu1 %v2471_v56  ;;  %v2568_v40 = vld [vmem:[#allocation3 + $0x858] sm:$0xff]  ;;  %v4740_v56 = vpack.c.bf16 %v4710_v12, %v4710_v12  ;;  %v2573_v12 = vld [vmem:[#allocation3 + $0x880] sm:$0xff] }
 0x67d   :  { %2916 = vmatprep.subr.bf16.mxu0 %v2478_v37  ;;  %3080 = vmatprep.subr.bf16.mxu1 %v2480_v9  ;;  %v2567_v37 = vld [vmem:[#allocation3 + $0x850] sm:$0xff]  ;;  %v2574_v9 = vld [vmem:[#allocation3 + $0x888] sm:$0xff] }
 0x680   :  { %2917 = vmatpush1.bf16.msra.mxu0 %v2477_v41  ;;  %3081 = vmatpush1.bf16.msra.mxu1 %v2479_v60  ;;  %v2576_v41 = vld [vmem:[#allocation3 + $0x898] sm:$0xff]  ;;  %v2575_v60 = vld [vmem:[#allocation3 + $0x890] sm:$0xff] }
 0x681   :  { %2918 = vmatprep.subr.bf16.mxu0 %v2486_v57  ;;  %3082 = vmatprep.subr.bf16.mxu1 %v2488_v62  ;;  %v2582_v57 = vld [vmem:[#allocation3 + $0x8c8] sm:$0xff]  ;;  %v2584_v62 = vld [vmem:[#allocation3 + $0x8d8] sm:$0xff] }
 0x684   :  { %2919 = vmatpush1.bf16.msra.mxu0 %v2485_v2  ;;  %3083 = vmatpush1.bf16.msra.mxu1 %v2487_v38  ;;  %v2581_v2 = vld [vmem:[#allocation3 + $0x8c0] sm:$0xff]  ;;  %v2583_v38 = vld [vmem:[#allocation3 + $0x8d0] sm:$0xff] }
 0x685   :  { %2920 = vmatprep.subr.bf16.mxu0 %v2494_v16  ;;  %3084 = vmatprep.subr.bf16.mxu1 %v2496_v17  ;;  %v2590_v16 = vld [vmem:[#allocation3 + $0x908] sm:$0xff]  ;;  %v2592_v17 = vld [vmem:[#allocation3 + $0x918] sm:$0xff] }
 0x688   :  { %2921 = vmatpush1.bf16.msra.mxu0 %v2493_v18  ;;  %3085 = vmatpush1.bf16.msra.mxu1 %v2495_v19  ;;  %v2589_v18 = vld [vmem:[#allocation3 + $0x900] sm:$0xff]  ;;  %v2591_v19 = vld [vmem:[#allocation3 + $0x910] sm:$0xff] }
 0x689   :  { %2922 = vmatprep.subr.bf16.mxu0 %v2502_v20  ;;  %3086 = vmatprep.subr.bf16.mxu1 %v2504_v21  ;;  %v2598_v20 = vld [vmem:[#allocation3 + $0x948] sm:$0xff]  ;;  %v2600_v21 = vld [vmem:[#allocation3 + $0x958] sm:$0xff] }
 0x68c   :  { %2923 = vmatpush1.bf16.msra.mxu0 %v2501_v44  ;;  %3087 = vmatpush1.bf16.msra.mxu1 %v2503_v32  ;;  %v2597_v44 = vld [vmem:[#allocation3 + $0x940] sm:$0xff]  ;;  %v2599_v32 = vld [vmem:[#allocation3 + $0x950] sm:$0xff] }
 0x68d   :  { %2924 = vmatprep.subr.bf16.mxu0 %v2510_v63  ;;  %3088 = vmatprep.subr.bf16.mxu1 %v2512_v3  ;;  %v2606_v63 = vld [vmem:[#allocation3 + $0x988] sm:$0xff]  ;;  %v2608_v3 = vld [vmem:[#allocation3 + $0x998] sm:$0xff] }
 0x690   :  { %2925 = vmatpush1.bf16.msra.mxu0 %v2509_v54  ;;  %3089 = vmatpush1.bf16.msra.mxu1 %v2511_v58  ;;  %v2605_v54 = vld [vmem:[#allocation3 + $0x980] sm:$0xff]  ;;  %v2607_v58 = vld [vmem:[#allocation3 + $0x990] sm:$0xff] }
 0x691   :  { %2926 = vmatprep.subr.bf16.mxu0 %v2518_v1  ;;  %3090 = vmatprep.subr.bf16.mxu1 %v2520_v10  ;;  %v2614_v1 = vld [vmem:[#allocation3 + $0x9c8] sm:$0xff]  ;;  %v2616_v10 = vld [vmem:[#allocation3 + $0x9d8] sm:$0xff] }
 0x694   :  { %2927 = vmatpush1.bf16.msra.mxu0 %v2517_v55  ;;  %3091 = vmatpush1.bf16.msra.mxu1 %v2519_v4  ;;  %v2613_v55 = vld [vmem:[#allocation3 + $0x9c0] sm:$0xff]  ;;  %v2615_v4 = vld [vmem:[#allocation3 + $0x9d0] sm:$0xff] }
 0x695   :  { %2928 = vmatprep.subr.bf16.mxu0 %v2526_v23  ;;  %3092 = vmatprep.subr.bf16.mxu1 %v2528_v61  ;;  %v2622_v23 = vld [vmem:[#allocation3 + $0xa08] sm:$0xff]  ;;  %v2624_v61 = vld [vmem:[#allocation3 + $0xa18] sm:$0xff] }
 0x698   :  { %2929 = vmatpush1.bf16.msra.mxu0 %v2525_v24  ;;  %3093 = vmatpush1.bf16.msra.mxu1 %v2527_v26  ;;  %v2621_v24 = vld [vmem:[#allocation3 + $0xa00] sm:$0xff]  ;;  %v2623_v26 = vld [vmem:[#allocation3 + $0xa10] sm:$0xff] }
 0x699   :  { %2930 = vmatprep.subr.bf16.mxu0 %v2534_v27  ;;  %3094 = vmatprep.subr.bf16.mxu1 %v2536_v30  ;;  %v2630_v27 = vld [vmem:[#allocation3 + $0xa48] sm:$0xff]  ;;  %v2632_v30 = vld [vmem:[#allocation3 + $0xa58] sm:$0xff] }
 0x69c   :  { %2931 = vmatpush1.bf16.msra.mxu0 %v2533_v5  ;;  %3095 = vmatpush1.bf16.msra.mxu1 %v2535_v48  ;;  %v2629_v5 = vld [vmem:[#allocation3 + $0xa40] sm:$0xff]  ;;  %v2631_v48 = vld [vmem:[#allocation3 + $0xa50] sm:$0xff] }
 0x69d   :  { %2932 = vmatprep.subr.bf16.mxu0 %v2542_v31  ;;  %3096 = vmatprep.subr.bf16.mxu1 %v2544_v6  ;;  %v2638_v31 = vld [vmem:[#allocation3 + $0xa88] sm:$0xff]  ;;  %v2640_v6 = vld [vmem:[#allocation3 + $0xa98] sm:$0xff] }
 0x6a0   :  { %2933 = vmatpush1.bf16.msra.mxu0 %v2541_v11  ;;  %3097 = vmatpush1.bf16.msra.mxu1 %v2543_v45  ;;  %v2637_v11 = vld [vmem:[#allocation3 + $0xa80] sm:$0xff]  ;;  %v2639_v45 = vld [vmem:[#allocation3 + $0xa90] sm:$0xff] }
 0x6a1   :  { %2934 = vmatprep.subr.bf16.mxu0 %v2550_v49  ;;  %3098 = vmatprep.subr.bf16.mxu1 %v2552_v35  ;;  %v2646_v49 = vld [vmem:[#allocation3 + $0xac8] sm:$0xff]  ;;  %v2648_v35 = vld [vmem:[#allocation3 + $0xad8] sm:$0xff] }
 0x6a4   :  { %2935 = vmatpush1.bf16.msra.mxu0 %v2549_v36  ;;  %3099 = vmatpush1.bf16.msra.mxu1 %v2551_v22  ;;  %v2645_v36 = vld [vmem:[#allocation3 + $0xac0] sm:$0xff]  ;;  %v2647_v22 = vld [vmem:[#allocation3 + $0xad0] sm:$0xff] }
 0x6a5   :  { %2945 = vmatprep.subr.bf16.mxu0 %v2558_v46  ;;  %3109 = vmatprep.subr.bf16.mxu1 %v2560_v47  ;;  %v2654_v46 = vld [vmem:[#allocation3 + $0xb08] sm:$0xff]  ;;  %v2656_v47 = vld [vmem:[#allocation3 + $0xb18] sm:$0xff] }
 0x6a7   :  { %2937 = vmatmul.mubr.bf16.vlgmr.msra.gmra.mrb[16].mxu0 %v4736_v50  ;;  %3101 = vmatmul.mubr.bf16.vlgmr.msra.gmra.mrb[16].mxu1 %v4736_v50 }
 0x6a8   :  { %2946 = vmatpush1.bf16.msra.mxu0 %v2557_v8  ;;  %3110 = vmatpush1.bf16.msra.mxu1 %v2559_v51  ;;  %v2653_v8 = vld [vmem:[#allocation3 + $0xb00] sm:$0xff]  ;;  %v2655_v51 = vld [vmem:[#allocation3 + $0xb10] sm:$0xff] }
 0x6a9   :  { %2947 = vmatprep.subr.bf16.mxu0 %v2566_v52  ;;  %3111 = vmatprep.subr.bf16.mxu1 %v2568_v40  ;;  %v2662_v52 = vld [vmem:[#allocation3 + $0xb48] sm:$0xff]  ;;  %v2664_v40 = vld [vmem:[#allocation3 + $0xb58] sm:$0xff] }
 0x6aa   :  { %2977 = vmatprep.mubr.bf16.mxu0 %v4740_v56  ;;  %3141 = vmatprep.mubr.bf16.mxu1 %v4740_v56 }
 0x6ac   :  { %2948 = vmatpush1.bf16.msra.mxu0 %v2565_v7  ;;  %3112 = vmatpush1.bf16.msra.mxu1 %v2567_v37  ;;  %v2661_v7 = vld [vmem:[#allocation3 + $0xb40] sm:$0xff]  ;;  %v2663_v37 = vld [vmem:[#allocation3 + $0xb50] sm:$0xff] }
 0x6ad   :  { %2949 = vmatprep.subr.bf16.mxu0 %v2574_v9  ;;  %3113 = vmatprep.subr.bf16.mxu1 %v2576_v41  ;;  %v2670_v9 = vld [vmem:[#allocation3 + $0xb88] sm:$0xff]  ;;  %v2672_v41 = vld [vmem:[#allocation3 + $0xb98] sm:$0xff] }
 0x6b0   :  { %2950 = vmatpush1.bf16.msra.mxu0 %v2573_v12  ;;  %3114 = vmatpush1.bf16.msra.mxu1 %v2575_v60  ;;  %v2669_v12 = vld [vmem:[#allocation3 + $0xb80] sm:$0xff]  ;;  %v2671_v60 = vld [vmem:[#allocation3 + $0xb90] sm:$0xff] }
 0x6b1   :  { %2951 = vmatprep.subr.bf16.mxu0 %v2582_v57  ;;  %3115 = vmatprep.subr.bf16.mxu1 %v2584_v62  ;;  %v2678_v57 = vld [vmem:[#allocation3 + $0xbc8] sm:$0xff]  ;;  %v2680_v62 = vld [vmem:[#allocation3 + $0xbd8] sm:$0xff] }
 0x6b4   :  { %2952 = vmatpush1.bf16.msra.mxu0 %v2581_v2  ;;  %3116 = vmatpush1.bf16.msra.mxu1 %v2583_v38  ;;  %v2677_v2 = vld [vmem:[#allocation3 + $0xbc0] sm:$0xff]  ;;  %v2679_v38 = vld [vmem:[#allocation3 + $0xbd0] sm:$0xff] }
 0x6b5   :  { %2953 = vmatprep.subr.bf16.mxu0 %v2590_v16  ;;  %3117 = vmatprep.subr.bf16.mxu1 %v2592_v17  ;;  %v2686_v16 = vld [vmem:[#allocation3 + $0xc08] sm:$0xff]  ;;  %v2688_v17 = vld [vmem:[#allocation3 + $0xc18] sm:$0xff] }
 0x6b8   :  { %2954 = vmatpush1.bf16.msra.mxu0 %v2589_v18  ;;  %3118 = vmatpush1.bf16.msra.mxu1 %v2591_v19  ;;  %v4748_v18 = vpack.c.bf16 %v4707_v39, %v4707_v39  ;;  %v2685_v19 = vld [vmem:[#allocation3 + $0xc00] sm:$0xff] }
 0x6b9   :  { %2955 = vmatprep.subr.bf16.mxu0 %v2598_v20  ;;  %3119 = vmatprep.subr.bf16.mxu1 %v2600_v21  ;;  %v2687_v20 = vld [vmem:[#allocation3 + $0xc10] sm:$0xff]  ;;  %v2694_v21 = vld [vmem:[#allocation3 + $0xc48] sm:$0xff]  ;;  %v2693_v39 = vld [vmem:[#allocation3 + $0xc40] sm:$0xff] }
 0x6bc   :  { %2956 = vmatpush1.bf16.msra.mxu0 %v2597_v44  ;;  %3120 = vmatpush1.bf16.msra.mxu1 %v2599_v32  ;;  %v2696_v44 = vld [vmem:[#allocation3 + $0xc58] sm:$0xff]  ;;  %v4752_v32 = vpack.c.bf16 %v4716_v14, %v4716_v14  ;;  %v2701_v14 = vld [vmem:[#allocation3 + $0xc80] sm:$0xff] }
 0x6bd   :  { %2957 = vmatprep.subr.bf16.mxu0 %v2606_v63  ;;  %3121 = vmatprep.subr.bf16.mxu1 %v2608_v3  ;;  %v2695_v63 = vld [vmem:[#allocation3 + $0xc50] sm:$0xff]  ;;  %v2702_v3 = vld [vmem:[#allocation3 + $0xc88] sm:$0xff] }
 0x6c0   :  { %2958 = vmatpush1.bf16.msra.mxu0 %v2605_v54  ;;  %3122 = vmatpush1.bf16.msra.mxu1 %v2607_v58  ;;  %v2704_v54 = vld [vmem:[#allocation3 + $0xc98] sm:$0xff]  ;;  %v2703_v58 = vld [vmem:[#allocation3 + $0xc90] sm:$0xff] }
 0x6c1   :  { %2959 = vmatprep.subr.bf16.mxu0 %v2614_v1  ;;  %3123 = vmatprep.subr.bf16.mxu1 %v2616_v10  ;;  %v2710_v1 = vld [vmem:[#allocation3 + $0xcc8] sm:$0xff]  ;;  %v2712_v10 = vld [vmem:[#allocation3 + $0xcd8] sm:$0xff] }
 0x6c4   :  { %2960 = vmatpush1.bf16.msra.mxu0 %v2613_v55  ;;  %3124 = vmatpush1.bf16.msra.mxu1 %v2615_v4  ;;  %v2709_v55 = vld [vmem:[#allocation3 + $0xcc0] sm:$0xff]  ;;  %v2711_v4 = vld [vmem:[#allocation3 + $0xcd0] sm:$0xff] }
 0x6c5   :  { %2961 = vmatprep.subr.bf16.mxu0 %v2622_v23  ;;  %3125 = vmatprep.subr.bf16.mxu1 %v2624_v61  ;;  %v2718_v23 = vld [vmem:[#allocation3 + $0xd08] sm:$0xff]  ;;  %v2720_v61 = vld [vmem:[#allocation3 + $0xd18] sm:$0xff] }
 0x6c8   :  { %2962 = vmatpush1.bf16.msra.mxu0 %v2621_v24  ;;  %3126 = vmatpush1.bf16.msra.mxu1 %v2623_v26  ;;  %v2717_v24 = vld [vmem:[#allocation3 + $0xd00] sm:$0xff]  ;;  %v2719_v26 = vld [vmem:[#allocation3 + $0xd10] sm:$0xff] }
 0x6c9   :  { %2963 = vmatprep.subr.bf16.mxu0 %v2630_v27  ;;  %3127 = vmatprep.subr.bf16.mxu1 %v2632_v30  ;;  %v2726_v27 = vld [vmem:[#allocation3 + $0xd48] sm:$0xff]  ;;  %v2728_v30 = vld [vmem:[#allocation3 + $0xd58] sm:$0xff] }
 0x6cc   :  { %2964 = vmatpush1.bf16.msra.mxu0 %v2629_v5  ;;  %3128 = vmatpush1.bf16.msra.mxu1 %v2631_v48  ;;  %v2725_v5 = vld [vmem:[#allocation3 + $0xd40] sm:$0xff]  ;;  %v2727_v48 = vld [vmem:[#allocation3 + $0xd50] sm:$0xff] }
 0x6cd   :  { %2965 = vmatprep.subr.bf16.mxu0 %v2638_v31  ;;  %3129 = vmatprep.subr.bf16.mxu1 %v2640_v6  ;;  %v2734_v31 = vld [vmem:[#allocation3 + $0xd88] sm:$0xff]  ;;  %v2736_v6 = vld [vmem:[#allocation3 + $0xd98] sm:$0xff] }
 0x6d0   :  { %2966 = vmatpush1.bf16.msra.mxu0 %v2637_v11  ;;  %3130 = vmatpush1.bf16.msra.mxu1 %v2639_v45  ;;  %v2733_v11 = vld [vmem:[#allocation3 + $0xd80] sm:$0xff]  ;;  %v2735_v45 = vld [vmem:[#allocation3 + $0xd90] sm:$0xff] }
 0x6d1   :  { %2967 = vmatprep.subr.bf16.mxu0 %v2646_v49  ;;  %3131 = vmatprep.subr.bf16.mxu1 %v2648_v35  ;;  %v2742_v49 = vld [vmem:[#allocation3 + $0xdc8] sm:$0xff]  ;;  %v2744_v35 = vld [vmem:[#allocation3 + $0xdd8] sm:$0xff] }
 0x6d4   :  { %2968 = vmatpush1.bf16.msra.mxu0 %v2645_v36  ;;  %3132 = vmatpush1.bf16.msra.mxu1 %v2647_v22  ;;  %v2741_v36 = vld [vmem:[#allocation3 + $0xdc0] sm:$0xff]  ;;  %v2743_v22 = vld [vmem:[#allocation3 + $0xdd0] sm:$0xff] }
 0x6d5   :  { %2969 = vmatprep.subr.bf16.mxu0 %v2654_v46  ;;  %3133 = vmatprep.subr.bf16.mxu1 %v2656_v47  ;;  %v2750_v46 = vld [vmem:[#allocation3 + $0xe08] sm:$0xff]  ;;  %v2752_v47 = vld [vmem:[#allocation3 + $0xe18] sm:$0xff] }
 0x6d8   :  { %2970 = vmatpush1.bf16.msra.mxu0 %v2653_v8  ;;  %3134 = vmatpush1.bf16.msra.mxu1 %v2655_v51  ;;  %v2749_v8 = vld [vmem:[#allocation3 + $0xe00] sm:$0xff]  ;;  %v2751_v51 = vld [vmem:[#allocation3 + $0xe10] sm:$0xff] }
 0x6d9   :  { %2971 = vmatprep.subr.bf16.mxu0 %v2662_v52  ;;  %3135 = vmatprep.subr.bf16.mxu1 %v2664_v40  ;;  %v2758_v52 = vld [vmem:[#allocation3 + $0xe48] sm:$0xff]  ;;  %v2760_v40 = vld [vmem:[#allocation3 + $0xe58] sm:$0xff] }
 0x6dc   :  { %2972 = vmatpush1.bf16.msra.mxu0 %v2661_v7  ;;  %3136 = vmatpush1.bf16.msra.mxu1 %v2663_v37  ;;  %v2757_v7 = vld [vmem:[#allocation3 + $0xe40] sm:$0xff]  ;;  %v2759_v37 = vld [vmem:[#allocation3 + $0xe50] sm:$0xff] }
 0x6dd   :  { %2973 = vmatprep.subr.bf16.mxu0 %v2670_v9  ;;  %3137 = vmatprep.subr.bf16.mxu1 %v2672_v41  ;;  %v2766_v9 = vld [vmem:[#allocation3 + $0xe88] sm:$0xff]  ;;  %v2768_v41 = vld [vmem:[#allocation3 + $0xe98] sm:$0xff] }
 0x6e0   :  { %2974 = vmatpush1.bf16.msra.mxu0 %v2669_v12  ;;  %3138 = vmatpush1.bf16.msra.mxu1 %v2671_v60  ;;  %v2765_v12 = vld [vmem:[#allocation3 + $0xe80] sm:$0xff]  ;;  %v2767_v60 = vld [vmem:[#allocation3 + $0xe90] sm:$0xff] }
 0x6e1   :  { %2975 = vmatprep.subr.bf16.mxu0 %v2678_v57  ;;  %3139 = vmatprep.subr.bf16.mxu1 %v2680_v62  ;;  %v2774_v57 = vld [vmem:[#allocation3 + $0xec8] sm:$0xff]  ;;  %v2776_v62 = vld [vmem:[#allocation3 + $0xed8] sm:$0xff] }
 0x6e4   :  { %2976 = vmatpush1.bf16.msra.mxu0 %v2677_v2  ;;  %3140 = vmatpush1.bf16.msra.mxu1 %v2679_v38  ;;  %v2773_v2 = vld [vmem:[#allocation3 + $0xec0] sm:$0xff]  ;;  %v2775_v38 = vld [vmem:[#allocation3 + $0xed0] sm:$0xff] }
 0x6e5   :  { %2986 = vmatprep.subr.bf16.mxu0 %v2686_v16  ;;  %3150 = vmatprep.subr.bf16.mxu1 %v2688_v17  ;;  %v2782_v16 = vld [vmem:[#allocation3 + $0xf08] sm:$0xff]  ;;  %v2784_v17 = vld [vmem:[#allocation3 + $0xf18] sm:$0xff] }
 0x6e7   :  { %2978 = vmatmul.mubr.bf16.vlgmr.msra.gmra.mrb[16].mxu0 %v4748_v18  ;;  %3142 = vmatmul.mubr.bf16.vlgmr.msra.gmra.mrb[16].mxu1 %v4748_v18 }
 0x6e8   :  { %2987 = vmatpush1.bf16.msra.mxu0 %v2685_v19  ;;  %3151 = vmatpush1.bf16.msra.mxu1 %v2687_v20  ;;  %v2781_v19 = vld [vmem:[#allocation3 + $0xf00] sm:$0xff]  ;;  %v2783_v20 = vld [vmem:[#allocation3 + $0xf10] sm:$0xff] }
 0x6e9   :  { %2988 = vmatprep.subr.bf16.mxu0 %v2694_v21  ;;  %3152 = vmatprep.subr.bf16.mxu1 %v2696_v44  ;;  %v2790_v21 = vld [vmem:[#allocation3 + $0xf48] sm:$0xff]  ;;  %v2792_v44 = vld [vmem:[#allocation3 + $0xf58] sm:$0xff] }
 0x6ea   :  { %3018 = vmatprep.mubr.bf16.mxu0 %v4752_v32  ;;  %3182 = vmatprep.mubr.bf16.mxu1 %v4752_v32 }
 0x6ec   :  { %2989 = vmatpush1.bf16.msra.mxu0 %v2693_v39  ;;  %3153 = vmatpush1.bf16.msra.mxu1 %v2695_v63  ;;  %v2789_v39 = vld [vmem:[#allocation3 + $0xf40] sm:$0xff]  ;;  %v2791_v63 = vld [vmem:[#allocation3 + $0xf50] sm:$0xff] }
 0x6ed   :  { %2990 = vmatprep.subr.bf16.mxu0 %v2702_v3  ;;  %3154 = vmatprep.subr.bf16.mxu1 %v2704_v54  ;;  %v2798_v3 = vld [vmem:[#allocation3 + $0xf88] sm:$0xff]  ;;  %v2800_v54 = vld [vmem:[#allocation3 + $0xf98] sm:$0xff] }
 0x6f0   :  { %2991 = vmatpush1.bf16.msra.mxu0 %v2701_v14  ;;  %3155 = vmatpush1.bf16.msra.mxu1 %v2703_v58  ;;  %v2797_v14 = vld [vmem:[#allocation3 + $0xf80] sm:$0xff]  ;;  %v2799_v58 = vld [vmem:[#allocation3 + $0xf90] sm:$0xff] }
 0x6f1   :  { %2992 = vmatprep.subr.bf16.mxu0 %v2710_v1  ;;  %3156 = vmatprep.subr.bf16.mxu1 %v2712_v10  ;;  %v2806_v1 = vld [vmem:[#allocation3 + $0xfc8] sm:$0xff]  ;;  %v2808_v10 = vld [vmem:[#allocation3 + $0xfd8] sm:$0xff] }
 0x6f4   :  { %2993 = vmatpush1.bf16.msra.mxu0 %v2709_v55  ;;  %3157 = vmatpush1.bf16.msra.mxu1 %v2711_v4  ;;  %v2805_v55 = vld [vmem:[#allocation3 + $0xfc0] sm:$0xff]  ;;  %v2807_v4 = vld [vmem:[#allocation3 + $0xfd0] sm:$0xff] }
 0x6f5   :  { %2994 = vmatprep.subr.bf16.mxu0 %v2718_v23  ;;  %3158 = vmatprep.subr.bf16.mxu1 %v2720_v61  ;;  %v2306_v23 = vld [vmem:[#allocation3 + $0x28] sm:$0xff]  ;;  %v2308_v61 = vld [vmem:[#allocation3 + $0x38] sm:$0xff] }
 0x6f8   :  { %2995 = vmatpush1.bf16.msra.mxu0 %v2717_v24  ;;  %3159 = vmatpush1.bf16.msra.mxu1 %v2719_v26  ;;  %v4760_v24 = vpack.c.bf16 %v4713_v13, %v4713_v13  ;;  %v2305_v26 = vld [vmem:[#allocation3 + $0x20] sm:$0xff]  ;;  %v2322_v13 = vld [vmem:[#allocation3 + $0xa8] sm:$0xff] }
 0x6f9   :  { %2996 = vmatprep.subr.bf16.mxu0 %v2726_v27  ;;  %3160 = vmatprep.subr.bf16.mxu1 %v2728_v30  ;;  %v2307_v27 = vld [vmem:[#allocation3 + $0x30] sm:$0xff]  ;;  %v2314_v30 = vld [vmem:[#allocation3 + $0x68] sm:$0xff] }
 0x6fc   :  { %2997 = vmatpush1.bf16.msra.mxu0 %v2725_v5  ;;  %3161 = vmatpush1.bf16.msra.mxu1 %v2727_v48  ;;  %v2316_v5 = vld [vmem:[#allocation3 + $0x78] sm:$0xff]  ;;  %v2313_v48 = vld [vmem:[#allocation3 + $0x60] sm:$0xff] }
 0x6fd   :  { %2998 = vmatprep.subr.bf16.mxu0 %v2734_v31  ;;  %3162 = vmatprep.subr.bf16.mxu1 %v2736_v6  ;;  %v2315_v31 = vld [vmem:[#allocation3 + $0x70] sm:$0xff]  ;;  %v2324_v6 = vld [vmem:[#allocation3 + $0xb8] sm:$0xff] }
 0x700   :  { %2999 = vmatpush1.bf16.msra.mxu0 %v2733_v11  ;;  %3163 = vmatpush1.bf16.msra.mxu1 %v2735_v45  ;;  %v2321_v11 = vld [vmem:[#allocation3 + $0xa0] sm:$0xff]  ;;  %v2323_v45 = vld [vmem:[#allocation3 + $0xb0] sm:$0xff] }
 0x701   :  { %3000 = vmatprep.subr.bf16.mxu0 %v2742_v49  ;;  %3164 = vmatprep.subr.bf16.mxu1 %v2744_v35  ;;  %v2330_v49 = vld [vmem:[#allocation3 + $0xe8] sm:$0xff]  ;;  %v2332_v35 = vld [vmem:[#allocation3 + $0xf8] sm:$0xff] }
 0x704   :  { %3001 = vmatpush1.bf16.msra.mxu0 %v2741_v36  ;;  %3165 = vmatpush1.bf16.msra.mxu1 %v2743_v22  ;;  %v2329_v36 = vld [vmem:[#allocation3 + $0xe0] sm:$0xff]  ;;  %v2331_v22 = vld [vmem:[#allocation3 + $0xf0] sm:$0xff] }
 0x705   :  { %3002 = vmatprep.subr.bf16.mxu0 %v2750_v46  ;;  %3166 = vmatprep.subr.bf16.mxu1 %v2752_v47  ;;  %v2338_v46 = vld [vmem:[#allocation3 + $0x128] sm:$0xff]  ;;  %v2340_v47 = vld [vmem:[#allocation3 + $0x138] sm:$0xff] }
 0x708   :  { %3003 = vmatpush1.bf16.msra.mxu0 %v2749_v8  ;;  %3167 = vmatpush1.bf16.msra.mxu1 %v2751_v51  ;;  %v2339_v8 = vld [vmem:[#allocation3 + $0x130] sm:$0xff]  ;;  %v2346_v51 = vld [vmem:[#allocation3 + $0x168] sm:$0xff] }
 0x709   :  { %3004 = vmatprep.subr.bf16.mxu0 %v2758_v52  ;;  %3168 = vmatprep.subr.bf16.mxu1 %v2760_v40  ;;  %v2348_v52 = vld [vmem:[#allocation3 + $0x178] sm:$0xff]  ;;  %v2345_v40 = vld [vmem:[#allocation3 + $0x160] sm:$0xff] }
 0x70c   :  { %3005 = vmatpush1.bf16.msra.mxu0 %v2757_v7  ;;  %3169 = vmatpush1.bf16.msra.mxu1 %v2759_v37  ;;  %v2347_v7 = vld [vmem:[#allocation3 + $0x170] sm:$0xff]  ;;  %v2354_v37 = vld [vmem:[#allocation3 + $0x1a8] sm:$0xff] }
 0x70d   :  { %3006 = vmatprep.subr.bf16.mxu0 %v2766_v9  ;;  %3170 = vmatprep.subr.bf16.mxu1 %v2768_v41  ;;  %v2356_v9 = vld [vmem:[#allocation3 + $0x1b8] sm:$0xff]  ;;  %v2353_v41 = vld [vmem:[#allocation3 + $0x1a0] sm:$0xff] }
 0x710   :  { %3007 = vmatpush1.bf16.msra.mxu0 %v2765_v12  ;;  %3171 = vmatpush1.bf16.msra.mxu1 %v2767_v60  ;;  %v2355_v12 = vld [vmem:[#allocation3 + $0x1b0] sm:$0xff]  ;;  %v2362_v60 = vld [vmem:[#allocation3 + $0x1e8] sm:$0xff] }
 0x711   :  { %3008 = vmatprep.subr.bf16.mxu0 %v2774_v57  ;;  %3172 = vmatprep.subr.bf16.mxu1 %v2776_v62  ;;  %v2364_v57 = vld [vmem:[#allocation3 + $0x1f8] sm:$0xff]  ;;  %v2361_v62 = vld [vmem:[#allocation3 + $0x1e0] sm:$0xff] }
 0x714   :  { %3009 = vmatpush1.bf16.msra.mxu0 %v2773_v2  ;;  %3173 = vmatpush1.bf16.msra.mxu1 %v2775_v38  ;;  %v2363_v2 = vld [vmem:[#allocation3 + $0x1f0] sm:$0xff]  ;;  %v2370_v38 = vld [vmem:[#allocation3 + $0x228] sm:$0xff] }
 0x715   :  { %3010 = vmatprep.subr.bf16.mxu0 %v2782_v16  ;;  %3174 = vmatprep.subr.bf16.mxu1 %v2784_v17  ;;  %v2372_v16 = vld [vmem:[#allocation3 + $0x238] sm:$0xff]  ;;  %v2369_v17 = vld [vmem:[#allocation3 + $0x220] sm:$0xff] }
 0x718   :  { %3011 = vmatpush1.bf16.msra.mxu0 %v2781_v19  ;;  %3175 = vmatpush1.bf16.msra.mxu1 %v2783_v20  ;;  %v2371_v19 = vld [vmem:[#allocation3 + $0x230] sm:$0xff]  ;;  %v2378_v20 = vld [vmem:[#allocation3 + $0x268] sm:$0xff] }
 0x719   :  { %3012 = vmatprep.subr.bf16.mxu0 %v2790_v21  ;;  %3176 = vmatprep.subr.bf16.mxu1 %v2792_v44  ;;  %v2380_v21 = vld [vmem:[#allocation3 + $0x278] sm:$0xff]  ;;  %v2377_v44 = vld [vmem:[#allocation3 + $0x260] sm:$0xff] }
 0x71c   :  { %3013 = vmatpush1.bf16.msra.mxu0 %v2789_v39  ;;  %3177 = vmatpush1.bf16.msra.mxu1 %v2791_v63  ;;  %v2379_v39 = vld [vmem:[#allocation3 + $0x270] sm:$0xff]  ;;  %v2386_v63 = vld [vmem:[#allocation3 + $0x2a8] sm:$0xff] }
 0x71d   :  { %3014 = vmatprep.subr.bf16.mxu0 %v2798_v3  ;;  %3178 = vmatprep.subr.bf16.mxu1 %v2800_v54  ;;  %v2388_v3 = vld [vmem:[#allocation3 + $0x2b8] sm:$0xff]  ;;  %v2385_v54 = vld [vmem:[#allocation3 + $0x2a0] sm:$0xff] }
 0x720   :  { %3015 = vmatpush1.bf16.msra.mxu0 %v2797_v14  ;;  %3179 = vmatpush1.bf16.msra.mxu1 %v2799_v58  ;;  %v2387_v14 = vld [vmem:[#allocation3 + $0x2b0] sm:$0xff]  ;;  %v2394_v58 = vld [vmem:[#allocation3 + $0x2e8] sm:$0xff] }
 0x721   :  { %3016 = vmatprep.subr.bf16.mxu0 %v2806_v1  ;;  %3180 = vmatprep.subr.bf16.mxu1 %v2808_v10  ;;  %v2396_v1 = vld [vmem:[#allocation3 + $0x2f8] sm:$0xff]  ;;  %v2393_v10 = vld [vmem:[#allocation3 + $0x2e0] sm:$0xff] }
 0x724   :  { %3017 = vmatpush1.bf16.msra.mxu0 %v2805_v55  ;;  %3181 = vmatpush1.bf16.msra.mxu1 %v2807_v4  ;;  %v2395_v55 = vld [vmem:[#allocation3 + $0x2f0] sm:$0xff]  ;;  %v2402_v4 = vld [vmem:[#allocation3 + $0x328] sm:$0xff] }
 0x725   :  { %3191 = vmatprep.subr.bf16.mxu0 %v2306_v23  ;;  %3355 = vmatprep.subr.bf16.mxu1 %v2308_v61  ;;  %v2404_v23 = vld [vmem:[#allocation3 + $0x338] sm:$0xff]  ;;  %v2401_v61 = vld [vmem:[#allocation3 + $0x320] sm:$0xff] }
 0x727   :  { %3019 = vmatmul.mubr.bf16.vlgmr.msra.gmra.mrb[16].mxu0 %v4760_v24  ;;  %3183 = vmatmul.mubr.bf16.vlgmr.msra.gmra.mrb[16].mxu1 %v4760_v24 }
 0x728   :  { %3192 = vmatpush1.bf16.msra.mxu0 %v2305_v26  ;;  %3356 = vmatpush1.bf16.msra.mxu1 %v2307_v27  ;;  %v2403_v26 = vld [vmem:[#allocation3 + $0x330] sm:$0xff]  ;;  %v2410_v27 = vld [vmem:[#allocation3 + $0x368] sm:$0xff] }
 0x729   :  { %3193 = vmatprep.subr.bf16.mxu0 %v2314_v30  ;;  %3357 = vmatprep.subr.bf16.mxu1 %v2316_v5  ;;  %v2412_v30 = vld [vmem:[#allocation3 + $0x378] sm:$0xff]  ;;  %v2409_v5 = vld [vmem:[#allocation3 + $0x360] sm:$0xff] }
 0x72a   :  { %3223 = vmatprep.mubr.bf16.mxu0 %v4718_v15  ;;  %3387 = vmatprep.mubr.bf16.mxu1 %v4718_v15  ;;  %v2337_v15 = vld [vmem:[#allocation3 + $0x120] sm:$0xff] }
 0x72c   :  { %3194 = vmatpush1.bf16.msra.mxu0 %v2313_v48  ;;  %3358 = vmatpush1.bf16.msra.mxu1 %v2315_v31  ;;  %v2411_v48 = vld [vmem:[#allocation3 + $0x370] sm:$0xff]  ;;  %v2418_v31 = vld [vmem:[#allocation3 + $0x3a8] sm:$0xff] }
 0x72d   :  { %3195 = vmatprep.subr.bf16.mxu0 %v2322_v13  ;;  %3359 = vmatprep.subr.bf16.mxu1 %v2324_v6  ;;  %v2420_v13 = vld [vmem:[#allocation3 + $0x3b8] sm:$0xff]  ;;  %v2417_v6 = vld [vmem:[#allocation3 + $0x3a0] sm:$0xff] }
 0x730   :  { %3196 = vmatpush1.bf16.msra.mxu0 %v2321_v11  ;;  %3360 = vmatpush1.bf16.msra.mxu1 %v2323_v45  ;;  %v2419_v11 = vld [vmem:[#allocation3 + $0x3b0] sm:$0xff]  ;;  %v2426_v45 = vld [vmem:[#allocation3 + $0x3e8] sm:$0xff] }
 0x731   :  { %3197 = vmatprep.subr.bf16.mxu0 %v2330_v49  ;;  %3361 = vmatprep.subr.bf16.mxu1 %v2332_v35  ;;  %v2428_v49 = vld [vmem:[#allocation3 + $0x3f8] sm:$0xff]  ;;  %v2425_v35 = vld [vmem:[#allocation3 + $0x3e0] sm:$0xff] }
 0x734   :  { %3198 = vmatpush1.bf16.msra.mxu0 %v2329_v36  ;;  %3362 = vmatpush1.bf16.msra.mxu1 %v2331_v22  ;;  %v2427_v36 = vld [vmem:[#allocation3 + $0x3f0] sm:$0xff]  ;;  %v2434_v22 = vld [vmem:[#allocation3 + $0x428] sm:$0xff] }
 0x735   :  { %3199 = vmatprep.subr.bf16.mxu0 %v2338_v46  ;;  %3363 = vmatprep.subr.bf16.mxu1 %v2340_v47  ;;  %v2436_v46 = vld [vmem:[#allocation3 + $0x438] sm:$0xff]  ;;  %v2433_v47 = vld [vmem:[#allocation3 + $0x420] sm:$0xff] }
 0x738   :  { %3200 = vmatpush1.bf16.msra.mxu0 %v2337_v15  ;;  %3364 = vmatpush1.bf16.msra.mxu1 %v2339_v8  ;;  %v2435_v15 = vld [vmem:[#allocation3 + $0x430] sm:$0xff]  ;;  %v2442_v8 = vld [vmem:[#allocation3 + $0x468] sm:$0xff] }
 0x739   :  { %3201 = vmatprep.subr.bf16.mxu0 %v2346_v51  ;;  %3365 = vmatprep.subr.bf16.mxu1 %v2348_v52  ;;  %v2444_v51 = vld [vmem:[#allocation3 + $0x478] sm:$0xff]  ;;  %v2441_v52 = vld [vmem:[#allocation3 + $0x460] sm:$0xff] }
 0x73c   :  { %3202 = vmatpush1.bf16.msra.mxu0 %v2345_v40  ;;  %3366 = vmatpush1.bf16.msra.mxu1 %v2347_v7  ;;  %v2443_v40 = vld [vmem:[#allocation3 + $0x470] sm:$0xff]  ;;  %v2450_v7 = vld [vmem:[#allocation3 + $0x4a8] sm:$0xff] }
 0x73d   :  { %3203 = vmatprep.subr.bf16.mxu0 %v2354_v37  ;;  %3367 = vmatprep.subr.bf16.mxu1 %v2356_v9  ;;  %v2452_v37 = vld [vmem:[#allocation3 + $0x4b8] sm:$0xff]  ;;  %v2449_v9 = vld [vmem:[#allocation3 + $0x4a0] sm:$0xff] }
 0x740   :  { %3204 = vmatpush1.bf16.msra.mxu0 %v2353_v41  ;;  %3368 = vmatpush1.bf16.msra.mxu1 %v2355_v12  ;;  %v2451_v41 = vld [vmem:[#allocation3 + $0x4b0] sm:$0xff]  ;;  %v2458_v12 = vld [vmem:[#allocation3 + $0x4e8] sm:$0xff] }
 0x741   :  { %3205 = vmatprep.subr.bf16.mxu0 %v2362_v60  ;;  %3369 = vmatprep.subr.bf16.mxu1 %v2364_v57  ;;  %v2457_v60 = vld [vmem:[#allocation3 + $0x4e0] sm:$0xff]  ;;  %v2459_v57 = vld [vmem:[#allocation3 + $0x4f0] sm:$0xff] }
 0x744   :  { %3206 = vmatpush1.bf16.msra.mxu0 %v2361_v62  ;;  %3370 = vmatpush1.bf16.msra.mxu1 %v2363_v2  ;;  %v2466_v62 = vld [vmem:[#allocation3 + $0x528] sm:$0xff]  ;;  %v2468_v2 = vld [vmem:[#allocation3 + $0x538] sm:$0xff] }
 0x745   :  { %3207 = vmatprep.subr.bf16.mxu0 %v2370_v38  ;;  %3371 = vmatprep.subr.bf16.mxu1 %v2372_v16  ;;  %v2467_v38 = vld [vmem:[#allocation3 + $0x530] sm:$0xff]  ;;  %v2474_v16 = vld [vmem:[#allocation3 + $0x568] sm:$0xff] }
 0x748   :  { %3208 = vmatpush1.bf16.msra.mxu0 %v2369_v17  ;;  %3372 = vmatpush1.bf16.msra.mxu1 %v2371_v19  ;;  %v2476_v17 = vld [vmem:[#allocation3 + $0x578] sm:$0xff]  ;;  %v2473_v19 = vld [vmem:[#allocation3 + $0x560] sm:$0xff] }
 0x749   :  { %3209 = vmatprep.subr.bf16.mxu0 %v2378_v20  ;;  %3373 = vmatprep.subr.bf16.mxu1 %v2380_v21  ;;  %v2475_v20 = vld [vmem:[#allocation3 + $0x570] sm:$0xff]  ;;  %v2482_v21 = vld [vmem:[#allocation3 + $0x5a8] sm:$0xff] }
 0x74c   :  { %3210 = vmatpush1.bf16.msra.mxu0 %v2377_v44  ;;  %3374 = vmatpush1.bf16.msra.mxu1 %v2379_v39  ;;  %v2484_v44 = vld [vmem:[#allocation3 + $0x5b8] sm:$0xff]  ;;  %v2481_v39 = vld [vmem:[#allocation3 + $0x5a0] sm:$0xff] }
 0x74d   :  { %3211 = vmatprep.subr.bf16.mxu0 %v2386_v63  ;;  %3375 = vmatprep.subr.bf16.mxu1 %v2388_v3  ;;  %v2483_v63 = vld [vmem:[#allocation3 + $0x5b0] sm:$0xff]  ;;  %v2490_v3 = vld [vmem:[#allocation3 + $0x5e8] sm:$0xff] }
 0x750   :  { %3212 = vmatpush1.bf16.msra.mxu0 %v2385_v54  ;;  %3376 = vmatpush1.bf16.msra.mxu1 %v2387_v14  ;;  %v2492_v54 = vld [vmem:[#allocation3 + $0x5f8] sm:$0xff]  ;;  %v2489_v14 = vld [vmem:[#allocation3 + $0x5e0] sm:$0xff] }
 0x751   :  { %3213 = vmatprep.subr.bf16.mxu0 %v2394_v58  ;;  %3377 = vmatprep.subr.bf16.mxu1 %v2396_v1  ;;  %v2491_v58 = vld [vmem:[#allocation3 + $0x5f0] sm:$0xff]  ;;  %v2498_v1 = vld [vmem:[#allocation3 + $0x628] sm:$0xff] }
 0x754   :  { %3214 = vmatpush1.bf16.msra.mxu0 %v2393_v10  ;;  %3378 = vmatpush1.bf16.msra.mxu1 %v2395_v55  ;;  %v2500_v10 = vld [vmem:[#allocation3 + $0x638] sm:$0xff]  ;;  %v2497_v55 = vld [vmem:[#allocation3 + $0x620] sm:$0xff] }
 0x755   :  { %3215 = vmatprep.subr.bf16.mxu0 %v2402_v4  ;;  %3379 = vmatprep.subr.bf16.mxu1 %v2404_v23  ;;  %v2499_v4 = vld [vmem:[#allocation3 + $0x630] sm:$0xff]  ;;  %v2506_v23 = vld [vmem:[#allocation3 + $0x668] sm:$0xff] }
 0x758   :  { %3216 = vmatpush1.bf16.msra.mxu0 %v2401_v61  ;;  %3380 = vmatpush1.bf16.msra.mxu1 %v2403_v26  ;;  %v2508_v61 = vld [vmem:[#allocation3 + $0x678] sm:$0xff]  ;;  %v2505_v26 = vld [vmem:[#allocation3 + $0x660] sm:$0xff] }
 0x759   :  { %3217 = vmatprep.subr.bf16.mxu0 %v2410_v27  ;;  %3381 = vmatprep.subr.bf16.mxu1 %v2412_v30  ;;  %v2507_v27 = vld [vmem:[#allocation3 + $0x670] sm:$0xff]  ;;  %v2514_v30 = vld [vmem:[#allocation3 + $0x6a8] sm:$0xff] }
 0x75c   :  { %3218 = vmatpush1.bf16.msra.mxu0 %v2409_v5  ;;  %3382 = vmatpush1.bf16.msra.mxu1 %v2411_v48  ;;  %v2516_v5 = vld [vmem:[#allocation3 + $0x6b8] sm:$0xff]  ;;  %v2513_v48 = vld [vmem:[#allocation3 + $0x6a0] sm:$0xff] }
 0x75d   :  { %3219 = vmatprep.subr.bf16.mxu0 %v2418_v31  ;;  %3383 = vmatprep.subr.bf16.mxu1 %v2420_v13  ;;  %v2515_v31 = vld [vmem:[#allocation3 + $0x6b0] sm:$0xff]  ;;  %v2522_v13 = vld [vmem:[#allocation3 + $0x6e8] sm:$0xff] }
 0x760   :  { %3220 = vmatpush1.bf16.msra.mxu0 %v2417_v6  ;;  %3384 = vmatpush1.bf16.msra.mxu1 %v2419_v11  ;;  %v2524_v6 = vld [vmem:[#allocation3 + $0x6f8] sm:$0xff]  ;;  %v2521_v11 = vld [vmem:[#allocation3 + $0x6e0] sm:$0xff] }
 0x761   :  { %3221 = vmatprep.subr.bf16.mxu0 %v2426_v45  ;;  %3385 = vmatprep.subr.bf16.mxu1 %v2428_v49  ;;  %v2523_v45 = vld [vmem:[#allocation3 + $0x6f0] sm:$0xff]  ;;  %v2530_v49 = vld [vmem:[#allocation3 + $0x728] sm:$0xff] }
 0x764   :  { %3222 = vmatpush1.bf16.msra.mxu0 %v2425_v35  ;;  %3386 = vmatpush1.bf16.msra.mxu1 %v2427_v36  ;;  %v2532_v35 = vld [vmem:[#allocation3 + $0x738] sm:$0xff]  ;;  %v2529_v36 = vld [vmem:[#allocation3 + $0x720] sm:$0xff] }
 0x765   :  { %3232 = vmatprep.subr.bf16.mxu0 %v2434_v22  ;;  %3396 = vmatprep.subr.bf16.mxu1 %v2436_v46  ;;  %v2531_v22 = vld [vmem:[#allocation3 + $0x730] sm:$0xff]  ;;  %v2538_v46 = vld [vmem:[#allocation3 + $0x768] sm:$0xff] }
 0x767   :  { %3224 = vmatmul.mubr.bf16.vlgmr.msra.gmra.mrb[20].mxu0 %v4724_v25  ;;  %3388 = vmatmul.mubr.bf16.vlgmr.msra.gmra.mrb[20].mxu1 %v4724_v25  ;;  %v2460_v25 = vld [vmem:[#allocation3 + $0x4f8] sm:$0xff] }
 0x768   :  { %3233 = vmatpush1.bf16.msra.mxu0 %v2433_v47  ;;  %3397 = vmatpush1.bf16.msra.mxu1 %v2435_v15  ;;  %v2540_v47 = vld [vmem:[#allocation3 + $0x778] sm:$0xff]  ;;  %v2537_v15 = vld [vmem:[#allocation3 + $0x760] sm:$0xff] }
 0x769   :  { %3234 = vmatprep.subr.bf16.mxu0 %v2442_v8  ;;  %3398 = vmatprep.subr.bf16.mxu1 %v2444_v51  ;;  %v2539_v8 = vld [vmem:[#allocation3 + $0x770] sm:$0xff]  ;;  %v2546_v51 = vld [vmem:[#allocation3 + $0x7a8] sm:$0xff] }
 0x76a   :  { %3264 = vmatprep.mubr.bf16.mxu0 %v4728_v43  ;;  %3428 = vmatprep.mubr.bf16.mxu1 %v4728_v43  ;;  %v2465_v43 = vld [vmem:[#allocation3 + $0x520] sm:$0xff] }
 0x76c   :  { %3235 = vmatpush1.bf16.msra.mxu0 %v2441_v52  ;;  %3399 = vmatpush1.bf16.msra.mxu1 %v2443_v40  ;;  %v2548_v52 = vld [vmem:[#allocation3 + $0x7b8] sm:$0xff]  ;;  %v2545_v40 = vld [vmem:[#allocation3 + $0x7a0] sm:$0xff] }
 0x76d   :  { %3236 = vmatprep.subr.bf16.mxu0 %v2450_v7  ;;  %3400 = vmatprep.subr.bf16.mxu1 %v2452_v37  ;;  %v2547_v7 = vld [vmem:[#allocation3 + $0x7b0] sm:$0xff]  ;;  %v2554_v37 = vld [vmem:[#allocation3 + $0x7e8] sm:$0xff] }
 0x770   :  { %3237 = vmatpush1.bf16.msra.mxu0 %v2449_v9  ;;  %3401 = vmatpush1.bf16.msra.mxu1 %v2451_v41  ;;  %v2556_v9 = vld [vmem:[#allocation3 + $0x7f8] sm:$0xff]  ;;  %v2553_v41 = vld [vmem:[#allocation3 + $0x7e0] sm:$0xff] }
 0x771   :  { %3238 = vmatprep.subr.bf16.mxu0 %v2458_v12  ;;  %3402 = vmatprep.subr.bf16.mxu1 %v2460_v25  ;;  %v2555_v12 = vld [vmem:[#allocation3 + $0x7f0] sm:$0xff]  ;;  %v2562_v25 = vld [vmem:[#allocation3 + $0x828] sm:$0xff] }
 0x774   :  { %3239 = vmatpush1.bf16.msra.mxu0 %v2457_v60  ;;  %3403 = vmatpush1.bf16.msra.mxu1 %v2459_v57  ;;  %v2564_v60 = vld [vmem:[#allocation3 + $0x838] sm:$0xff]  ;;  %v2561_v57 = vld [vmem:[#allocation3 + $0x820] sm:$0xff] }
 0x775   :  { %3240 = vmatprep.subr.bf16.mxu0 %v2466_v62  ;;  %3404 = vmatprep.subr.bf16.mxu1 %v2468_v2  ;;  %v2563_v62 = vld [vmem:[#allocation3 + $0x830] sm:$0xff]  ;;  %v2570_v2 = vld [vmem:[#allocation3 + $0x868] sm:$0xff] }
 0x778   :  { %3241 = vmatpush1.bf16.msra.mxu0 %v2465_v43  ;;  %3405 = vmatpush1.bf16.msra.mxu1 %v2467_v38  ;;  %v2572_v43 = vld [vmem:[#allocation3 + $0x878] sm:$0xff]  ;;  %v2569_v38 = vld [vmem:[#allocation3 + $0x860] sm:$0xff] }
 0x779   :  { %3242 = vmatprep.subr.bf16.mxu0 %v2474_v16  ;;  %3406 = vmatprep.subr.bf16.mxu1 %v2476_v17  ;;  %v2571_v16 = vld [vmem:[#allocation3 + $0x870] sm:$0xff]  ;;  %v2578_v17 = vld [vmem:[#allocation3 + $0x8a8] sm:$0xff] }
 0x77c   :  { %3243 = vmatpush1.bf16.msra.mxu0 %v2473_v19  ;;  %3407 = vmatpush1.bf16.msra.mxu1 %v2475_v20  ;;  %v2580_v19 = vld [vmem:[#allocation3 + $0x8b8] sm:$0xff]  ;;  %v2577_v20 = vld [vmem:[#allocation3 + $0x8a0] sm:$0xff] }
 0x77d   :  { %3244 = vmatprep.subr.bf16.mxu0 %v2482_v21  ;;  %3408 = vmatprep.subr.bf16.mxu1 %v2484_v44  ;;  %v2579_v21 = vld [vmem:[#allocation3 + $0x8b0] sm:$0xff]  ;;  %v2586_v44 = vld [vmem:[#allocation3 + $0x8e8] sm:$0xff] }
 0x780   :  { %3245 = vmatpush1.bf16.msra.mxu0 %v2481_v39  ;;  %3409 = vmatpush1.bf16.msra.mxu1 %v2483_v63  ;;  %v2585_v39 = vld [vmem:[#allocation3 + $0x8e0] sm:$0xff]  ;;  %v2587_v63 = vld [vmem:[#allocation3 + $0x8f0] sm:$0xff] }
 0x781   :  { %3246 = vmatprep.subr.bf16.mxu0 %v2490_v3  ;;  %3410 = vmatprep.subr.bf16.mxu1 %v2492_v54  ;;  %v2594_v3 = vld [vmem:[#allocation3 + $0x928] sm:$0xff]  ;;  %v2596_v54 = vld [vmem:[#allocation3 + $0x938] sm:$0xff] }
 0x784   :  { %3247 = vmatpush1.bf16.msra.mxu0 %v2489_v14  ;;  %3411 = vmatpush1.bf16.msra.mxu1 %v2491_v58  ;;  %v2595_v14 = vld [vmem:[#allocation3 + $0x930] sm:$0xff]  ;;  %v2602_v58 = vld [vmem:[#allocation3 + $0x968] sm:$0xff] }
 0x785   :  { %3248 = vmatprep.subr.bf16.mxu0 %v2498_v1  ;;  %3412 = vmatprep.subr.bf16.mxu1 %v2500_v10  ;;  %v2604_v1 = vld [vmem:[#allocation3 + $0x978] sm:$0xff]  ;;  %v2601_v10 = vld [vmem:[#allocation3 + $0x960] sm:$0xff] }
 0x788   :  { %3249 = vmatpush1.bf16.msra.mxu0 %v2497_v55  ;;  %3413 = vmatpush1.bf16.msra.mxu1 %v2499_v4  ;;  %v2603_v55 = vld [vmem:[#allocation3 + $0x970] sm:$0xff]  ;;  %v2610_v4 = vld [vmem:[#allocation3 + $0x9a8] sm:$0xff] }
 0x789   :  { %3250 = vmatprep.subr.bf16.mxu0 %v2506_v23  ;;  %3414 = vmatprep.subr.bf16.mxu1 %v2508_v61  ;;  %v2612_v23 = vld [vmem:[#allocation3 + $0x9b8] sm:$0xff]  ;;  %v2609_v61 = vld [vmem:[#allocation3 + $0x9a0] sm:$0xff] }
 0x78c   :  { %3251 = vmatpush1.bf16.msra.mxu0 %v2505_v26  ;;  %3415 = vmatpush1.bf16.msra.mxu1 %v2507_v27  ;;  %v2611_v26 = vld [vmem:[#allocation3 + $0x9b0] sm:$0xff]  ;;  %v2618_v27 = vld [vmem:[#allocation3 + $0x9e8] sm:$0xff] }
 0x78d   :  { %3252 = vmatprep.subr.bf16.mxu0 %v2514_v30  ;;  %3416 = vmatprep.subr.bf16.mxu1 %v2516_v5  ;;  %v2620_v30 = vld [vmem:[#allocation3 + $0x9f8] sm:$0xff]  ;;  %v2617_v5 = vld [vmem:[#allocation3 + $0x9e0] sm:$0xff] }
 0x790   :  { %3253 = vmatpush1.bf16.msra.mxu0 %v2513_v48  ;;  %3417 = vmatpush1.bf16.msra.mxu1 %v2515_v31  ;;  %v2619_v48 = vld [vmem:[#allocation3 + $0x9f0] sm:$0xff]  ;;  %v2626_v31 = vld [vmem:[#allocation3 + $0xa28] sm:$0xff] }
 0x791   :  { %3254 = vmatprep.subr.bf16.mxu0 %v2522_v13  ;;  %3418 = vmatprep.subr.bf16.mxu1 %v2524_v6  ;;  %v2628_v13 = vld [vmem:[#allocation3 + $0xa38] sm:$0xff]  ;;  %v2625_v6 = vld [vmem:[#allocation3 + $0xa20] sm:$0xff] }
 0x794   :  { %3255 = vmatpush1.bf16.msra.mxu0 %v2521_v11  ;;  %3419 = vmatpush1.bf16.msra.mxu1 %v2523_v45  ;;  %v2627_v11 = vld [vmem:[#allocation3 + $0xa30] sm:$0xff]  ;;  %v2634_v45 = vld [vmem:[#allocation3 + $0xa68] sm:$0xff] }
 0x795   :  { %3256 = vmatprep.subr.bf16.mxu0 %v2530_v49  ;;  %3420 = vmatprep.subr.bf16.mxu1 %v2532_v35  ;;  %v2636_v49 = vld [vmem:[#allocation3 + $0xa78] sm:$0xff]  ;;  %v2633_v35 = vld [vmem:[#allocation3 + $0xa60] sm:$0xff] }
 0x798   :  { %3257 = vmatpush1.bf16.msra.mxu0 %v2529_v36  ;;  %3421 = vmatpush1.bf16.msra.mxu1 %v2531_v22  ;;  %v2635_v36 = vld [vmem:[#allocation3 + $0xa70] sm:$0xff]  ;;  %v2642_v22 = vld [vmem:[#allocation3 + $0xaa8] sm:$0xff] }
 0x799   :  { %3258 = vmatprep.subr.bf16.mxu0 %v2538_v46  ;;  %3422 = vmatprep.subr.bf16.mxu1 %v2540_v47  ;;  %v2644_v46 = vld [vmem:[#allocation3 + $0xab8] sm:$0xff]  ;;  %v2641_v47 = vld [vmem:[#allocation3 + $0xaa0] sm:$0xff] }
 0x79c   :  { %3259 = vmatpush1.bf16.msra.mxu0 %v2537_v15  ;;  %3423 = vmatpush1.bf16.msra.mxu1 %v2539_v8  ;;  %v2643_v15 = vld [vmem:[#allocation3 + $0xab0] sm:$0xff]  ;;  %v2650_v8 = vld [vmem:[#allocation3 + $0xae8] sm:$0xff] }
 0x79d   :  { %3260 = vmatprep.subr.bf16.mxu0 %v2546_v51  ;;  %3424 = vmatprep.subr.bf16.mxu1 %v2548_v52  ;;  %v2652_v51 = vld [vmem:[#allocation3 + $0xaf8] sm:$0xff]  ;;  %v2649_v52 = vld [vmem:[#allocation3 + $0xae0] sm:$0xff] }
 0x7a0   :  { %3261 = vmatpush1.bf16.msra.mxu0 %v2545_v40  ;;  %3425 = vmatpush1.bf16.msra.mxu1 %v2547_v7  ;;  %v2651_v40 = vld [vmem:[#allocation3 + $0xaf0] sm:$0xff]  ;;  %v2658_v7 = vld [vmem:[#allocation3 + $0xb28] sm:$0xff] }
 0x7a1   :  { %3262 = vmatprep.subr.bf16.mxu0 %v2554_v37  ;;  %3426 = vmatprep.subr.bf16.mxu1 %v2556_v9  ;;  %v2660_v37 = vld [vmem:[#allocation3 + $0xb38] sm:$0xff]  ;;  %v2657_v9 = vld [vmem:[#allocation3 + $0xb20] sm:$0xff] }
 0x7a4   :  { %3263 = vmatpush1.bf16.msra.mxu0 %v2553_v41  ;;  %3427 = vmatpush1.bf16.msra.mxu1 %v2555_v12  ;;  %v2659_v41 = vld [vmem:[#allocation3 + $0xb30] sm:$0xff]  ;;  %v2666_v12 = vld [vmem:[#allocation3 + $0xb68] sm:$0xff] }
 0x7a5   :  { %3273 = vmatprep.subr.bf16.mxu0 %v2562_v25  ;;  %3437 = vmatprep.subr.bf16.mxu1 %v2564_v60  ;;  %v2668_v25 = vld [vmem:[#allocation3 + $0xb78] sm:$0xff]  ;;  %v2665_v60 = vld [vmem:[#allocation3 + $0xb60] sm:$0xff] }
 0x7a7   :  { %3265 = vmatmul.mubr.bf16.vlgmr.msra.gmra.mrb[20].mxu0 %v4736_v50  ;;  %3429 = vmatmul.mubr.bf16.vlgmr.msra.gmra.mrb[20].mxu1 %v4736_v50  ;;  %v2588_v50 = vld [vmem:[#allocation3 + $0x8f8] sm:$0xff] }
 0x7a8   :  { %3274 = vmatpush1.bf16.msra.mxu0 %v2561_v57  ;;  %3438 = vmatpush1.bf16.msra.mxu1 %v2563_v62  ;;  %v2667_v57 = vld [vmem:[#allocation3 + $0xb70] sm:$0xff]  ;;  %v2674_v62 = vld [vmem:[#allocation3 + $0xba8] sm:$0xff] }
 0x7a9   :  { %3275 = vmatprep.subr.bf16.mxu0 %v2570_v2  ;;  %3439 = vmatprep.subr.bf16.mxu1 %v2572_v43  ;;  %v2676_v2 = vld [vmem:[#allocation3 + $0xbb8] sm:$0xff]  ;;  %v2673_v43 = vld [vmem:[#allocation3 + $0xba0] sm:$0xff] }
 0x7aa   :  { %3305 = vmatprep.mubr.bf16.mxu0 %v4740_v56  ;;  %3469 = vmatprep.mubr.bf16.mxu1 %v4740_v56  ;;  %v2593_v56 = vld [vmem:[#allocation3 + $0x920] sm:$0xff] }
 0x7ac   :  { %3276 = vmatpush1.bf16.msra.mxu0 %v2569_v38  ;;  %3440 = vmatpush1.bf16.msra.mxu1 %v2571_v16  ;;  %v2675_v38 = vld [vmem:[#allocation3 + $0xbb0] sm:$0xff]  ;;  %v2682_v16 = vld [vmem:[#allocation3 + $0xbe8] sm:$0xff] }
 0x7ad   :  { %3277 = vmatprep.subr.bf16.mxu0 %v2578_v17  ;;  %3441 = vmatprep.subr.bf16.mxu1 %v2580_v19  ;;  %v2684_v17 = vld [vmem:[#allocation3 + $0xbf8] sm:$0xff]  ;;  %v2681_v19 = vld [vmem:[#allocation3 + $0xbe0] sm:$0xff] }
 0x7b0   :  { %3278 = vmatpush1.bf16.msra.mxu0 %v2577_v20  ;;  %3442 = vmatpush1.bf16.msra.mxu1 %v2579_v21  ;;  %v2683_v20 = vld [vmem:[#allocation3 + $0xbf0] sm:$0xff]  ;;  %v2690_v21 = vld [vmem:[#allocation3 + $0xc28] sm:$0xff] }
 0x7b1   :  { %3279 = vmatprep.subr.bf16.mxu0 %v2586_v44  ;;  %3443 = vmatprep.subr.bf16.mxu1 %v2588_v50  ;;  %v2692_v44 = vld [vmem:[#allocation3 + $0xc38] sm:$0xff]  ;;  %v2689_v50 = vld [vmem:[#allocation3 + $0xc20] sm:$0xff] }
 0x7b4   :  { %3280 = vmatpush1.bf16.msra.mxu0 %v2585_v39  ;;  %3444 = vmatpush1.bf16.msra.mxu1 %v2587_v63  ;;  %v2691_v39 = vld [vmem:[#allocation3 + $0xc30] sm:$0xff]  ;;  %v2698_v63 = vld [vmem:[#allocation3 + $0xc68] sm:$0xff] }
 0x7b5   :  { %3281 = vmatprep.subr.bf16.mxu0 %v2594_v3  ;;  %3445 = vmatprep.subr.bf16.mxu1 %v2596_v54  ;;  %v2700_v3 = vld [vmem:[#allocation3 + $0xc78] sm:$0xff]  ;;  %v2697_v54 = vld [vmem:[#allocation3 + $0xc60] sm:$0xff] }
 0x7b8   :  { %3282 = vmatpush1.bf16.msra.mxu0 %v2593_v56  ;;  %3446 = vmatpush1.bf16.msra.mxu1 %v2595_v14  ;;  %v2699_v56 = vld [vmem:[#allocation3 + $0xc70] sm:$0xff]  ;;  %v2706_v14 = vld [vmem:[#allocation3 + $0xca8] sm:$0xff] }
 0x7b9   :  { %3283 = vmatprep.subr.bf16.mxu0 %v2602_v58  ;;  %3447 = vmatprep.subr.bf16.mxu1 %v2604_v1  ;;  %v2708_v58 = vld [vmem:[#allocation3 + $0xcb8] sm:$0xff]  ;;  %v2705_v1 = vld [vmem:[#allocation3 + $0xca0] sm:$0xff] }
 0x7bc   :  { %3284 = vmatpush1.bf16.msra.mxu0 %v2601_v10  ;;  %3448 = vmatpush1.bf16.msra.mxu1 %v2603_v55  ;;  %v2707_v10 = vld [vmem:[#allocation3 + $0xcb0] sm:$0xff]  ;;  %v2714_v55 = vld [vmem:[#allocation3 + $0xce8] sm:$0xff] }
 0x7bd   :  { %3285 = vmatprep.subr.bf16.mxu0 %v2610_v4  ;;  %3449 = vmatprep.subr.bf16.mxu1 %v2612_v23  ;;  %v2713_v4 = vld [vmem:[#allocation3 + $0xce0] sm:$0xff]  ;;  %v2715_v23 = vld [vmem:[#allocation3 + $0xcf0] sm:$0xff] }
 0x7c0   :  { %3286 = vmatpush1.bf16.msra.mxu0 %v2609_v61  ;;  %3450 = vmatpush1.bf16.msra.mxu1 %v2611_v26  ;;  %v2722_v61 = vld [vmem:[#allocation3 + $0xd28] sm:$0xff]  ;;  %v2724_v26 = vld [vmem:[#allocation3 + $0xd38] sm:$0xff] }
 0x7c1   :  { %3287 = vmatprep.subr.bf16.mxu0 %v2618_v27  ;;  %3451 = vmatprep.subr.bf16.mxu1 %v2620_v30  ;;  %v4778_v27 = vld [vmem:[#allocation21] sm:$0xff]  ;;  %v2723_v30 = vld [vmem:[#allocation3 + $0xd30] sm:$0xff] }
 0x7c4   :  { %3288 = vmatpush1.bf16.msra.mxu0 %v2617_v5  ;;  %3452 = vmatpush1.bf16.msra.mxu1 %v2619_v48  ;;  %v2730_v5 = vld [vmem:[#allocation3 + $0xd68] sm:$0xff]  ;;  %v2732_v48 = vld [vmem:[#allocation3 + $0xd78] sm:$0xff] }
 0x7c5   :  { %3289 = vmatprep.subr.bf16.mxu0 %v2626_v31  ;;  %3453 = vmatprep.subr.bf16.mxu1 %v2628_v13  ;;  %v2826_v31 = vrot.slane %v4778_v27, %v4500_v28  ;;  %v2834_v13 = vrot.slane %v4778_v27, %v4531_v33 }
 0x7c8   :  { %3290 = vmatpush1.bf16.msra.mxu0 %v2625_v6  ;;  %3454 = vmatpush1.bf16.msra.mxu1 %v2627_v11  ;;  %v2830_v6 = vrot.slane %v4778_v27, %v4503_v29  ;;  %v2838_v11 = vrot.slane %v4778_v27, %v4534_v34 }
 0x7c9   :  { %3291 = vmatprep.subr.bf16.mxu0 %v2634_v45  ;;  %3455 = vmatprep.subr.bf16.mxu1 %v2636_v49  ;;  %v2729_v45 = vld [vmem:[#allocation3 + $0xd60] sm:$0xff]  ;;  %v2731_v49 = vld [vmem:[#allocation3 + $0xd70] sm:$0xff] }
 0x7cc   :  { %3292 = vmatpush1.bf16.msra.mxu0 %v2633_v35  ;;  %3456 = vmatpush1.bf16.msra.mxu1 %v2635_v36 }
 0x7cd   :  { %3293 = vmatprep.subr.bf16.mxu0 %v2642_v22  ;;  %3457 = vmatprep.subr.bf16.mxu1 %v2644_v46  ;;  %v2738_v22 = vld [vmem:[#allocation3 + $0xda8] sm:$0xff]  ;;  %v2740_v46 = vld [vmem:[#allocation3 + $0xdb8] sm:$0xff] }
 0x7d0   :  { %3294 = vmatpush1.bf16.msra.mxu0 %v2641_v47  ;;  %3458 = vmatpush1.bf16.msra.mxu1 %v2643_v15 }
 0x7d1   :  { %3295 = vmatprep.subr.bf16.mxu0 %v2650_v8  ;;  %3459 = vmatprep.subr.bf16.mxu1 %v2652_v51 }
 0x7d4   :  { %3296 = vmatpush1.bf16.msra.mxu0 %v2649_v52  ;;  %3460 = vmatpush1.bf16.msra.mxu1 %v2651_v40 }
 0x7d5   :  { %3297 = vmatprep.subr.bf16.mxu0 %v2658_v7  ;;  %3461 = vmatprep.subr.bf16.mxu1 %v2660_v37  ;;  %v2737_v7 = vld [vmem:[#allocation3 + $0xda0] sm:$0xff]  ;;  %v2739_v37 = vld [vmem:[#allocation3 + $0xdb0] sm:$0xff] }
 0x7d8   :  { %3298 = vmatpush1.bf16.msra.mxu0 %v2657_v9  ;;  %3462 = vmatpush1.bf16.msra.mxu1 %v2659_v41  ;;  %v2746_v9 = vld [vmem:[#allocation3 + $0xde8] sm:$0xff]  ;;  %v2748_v41 = vld [vmem:[#allocation3 + $0xdf8] sm:$0xff] }
 0x7d9   :  { %3299 = vmatprep.subr.bf16.mxu0 %v2666_v12  ;;  %3463 = vmatprep.subr.bf16.mxu1 %v2668_v25  ;;  %v2745_v12 = vld [vmem:[#allocation3 + $0xde0] sm:$0xff]  ;;  %v2747_v25 = vld [vmem:[#allocation3 + $0xdf0] sm:$0xff] }
 0x7dc   :  { %3300 = vmatpush1.bf16.msra.mxu0 %v2665_v60  ;;  %3464 = vmatpush1.bf16.msra.mxu1 %v2667_v57  ;;  %v2754_v60 = vld [vmem:[#allocation3 + $0xe28] sm:$0xff]  ;;  %v2756_v57 = vld [vmem:[#allocation3 + $0xe38] sm:$0xff] }
 0x7dd   :  { %3301 = vmatprep.subr.bf16.mxu0 %v2674_v62  ;;  %3465 = vmatprep.subr.bf16.mxu1 %v2676_v2  ;;  %v2753_v62 = vld [vmem:[#allocation3 + $0xe20] sm:$0xff]  ;;  %v2755_v2 = vld [vmem:[#allocation3 + $0xe30] sm:$0xff] }
 0x7e0   :  { %3302 = vmatpush1.bf16.msra.mxu0 %v2673_v43  ;;  %3466 = vmatpush1.bf16.msra.mxu1 %v2675_v38  ;;  %v2762_v43 = vld [vmem:[#allocation3 + $0xe68] sm:$0xff]  ;;  %v2764_v38 = vld [vmem:[#allocation3 + $0xe78] sm:$0xff] }
 0x7e1   :  { %3303 = vmatprep.subr.bf16.mxu0 %v2682_v16  ;;  %3467 = vmatprep.subr.bf16.mxu1 %v2684_v17 }
 0x7e4   :  { %3304 = vmatpush1.bf16.msra.mxu0 %v2681_v19  ;;  %3468 = vmatpush1.bf16.msra.mxu1 %v2683_v20  ;;  %v2761_v20 = vld [vmem:[#allocation3 + $0xe60] sm:$0xff] }
 0x7e5   :  { %3314 = vmatprep.subr.bf16.mxu0 %v2690_v21  ;;  %3478 = vmatprep.subr.bf16.mxu1 %v2692_v44  ;;  %v2763_v21 = vld [vmem:[#allocation3 + $0xe70] sm:$0xff] }
 0x7e7   :  { %3306 = vmatmul.mubr.bf16.vlgmr.msra.gmra.mrb[20].mxu0 %v4748_v18  ;;  %3470 = vmatmul.mubr.bf16.vlgmr.msra.gmra.mrb[20].mxu1 %v4748_v18  ;;  %v2716_v18 = vld [vmem:[#allocation3 + $0xcf8] sm:$0xff] }
 0x7e8   :  { %3315 = vmatpush1.bf16.msra.mxu0 %v2689_v50  ;;  %3479 = vmatpush1.bf16.msra.mxu1 %v2691_v39  ;;  %v2770_v50 = vld [vmem:[#allocation3 + $0xea8] sm:$0xff]  ;;  %v2772_v39 = vld [vmem:[#allocation3 + $0xeb8] sm:$0xff] }
 0x7e9   :  { %3316 = vmatprep.subr.bf16.mxu0 %v2698_v63  ;;  %3480 = vmatprep.subr.bf16.mxu1 %v2700_v3  ;;  %v2769_v63 = vld [vmem:[#allocation3 + $0xea0] sm:$0xff]  ;;  %v2771_v3 = vld [vmem:[#allocation3 + $0xeb0] sm:$0xff] }
 0x7ea   :  { %3346 = vmatprep.mubr.bf16.mxu0 %v4752_v32  ;;  %3510 = vmatprep.mubr.bf16.mxu1 %v4752_v32  ;;  %v2721_v32 = vld [vmem:[#allocation3 + $0xd20] sm:$0xff] }
 0x7ec   :  { %3317 = vmatpush1.bf16.msra.mxu0 %v2697_v54  ;;  %3481 = vmatpush1.bf16.msra.mxu1 %v2699_v56  ;;  %v2778_v54 = vld [vmem:[#allocation3 + $0xee8] sm:$0xff]  ;;  %v2780_v56 = vld [vmem:[#allocation3 + $0xef8] sm:$0xff] }
 0x7ed   :  { %3318 = vmatprep.subr.bf16.mxu0 %v2706_v14  ;;  %3482 = vmatprep.subr.bf16.mxu1 %v2708_v58  ;;  %v2777_v14 = vld [vmem:[#allocation3 + $0xee0] sm:$0xff]  ;;  %v2779_v58 = vld [vmem:[#allocation3 + $0xef0] sm:$0xff] }
 0x7f0   :  { %3319 = vmatpush1.bf16.msra.mxu0 %v2705_v1  ;;  %3483 = vmatpush1.bf16.msra.mxu1 %v2707_v10  ;;  %v2786_v1 = vld [vmem:[#allocation3 + $0xf28] sm:$0xff]  ;;  %v2788_v10 = vld [vmem:[#allocation3 + $0xf38] sm:$0xff] }
 0x7f1   :  { %3320 = vmatprep.subr.bf16.mxu0 %v2714_v55  ;;  %3484 = vmatprep.subr.bf16.mxu1 %v2716_v18  ;;  %v2785_v55 = vld [vmem:[#allocation3 + $0xf20] sm:$0xff]  ;;  %v2787_v18 = vld [vmem:[#allocation3 + $0xf30] sm:$0xff] }
 0x7f4   :  { %3321 = vmatpush1.bf16.msra.mxu0 %v2713_v4  ;;  %3485 = vmatpush1.bf16.msra.mxu1 %v2715_v23  ;;  %v2794_v4 = vld [vmem:[#allocation3 + $0xf68] sm:$0xff]  ;;  %v2796_v23 = vld [vmem:[#allocation3 + $0xf78] sm:$0xff] }
 0x7f5   :  { %3322 = vmatprep.subr.bf16.mxu0 %v2722_v61  ;;  %3486 = vmatprep.subr.bf16.mxu1 %v2724_v26  ;;  %v2793_v61 = vld [vmem:[#allocation3 + $0xf60] sm:$0xff]  ;;  %v2795_v26 = vld [vmem:[#allocation3 + $0xf70] sm:$0xff] }
 0x7f8   :  { %3323 = vmatpush1.bf16.msra.mxu0 %v2721_v32  ;;  %3487 = vmatpush1.bf16.msra.mxu1 %v2723_v30  ;;  %v2802_v32 = vld [vmem:[#allocation3 + $0xfa8] sm:$0xff]  ;;  %v2804_v30 = vld [vmem:[#allocation3 + $0xfb8] sm:$0xff] }
 0x7f9   :  { %3324 = vmatprep.subr.bf16.mxu0 %v2730_v5  ;;  %3488 = vmatprep.subr.bf16.mxu1 %v2732_v48  ;;  %v2801_v5 = vld [vmem:[#allocation3 + $0xfa0] sm:$0xff]  ;;  %v2803_v48 = vld [vmem:[#allocation3 + $0xfb0] sm:$0xff] }
 0x7fa   :  { %v3020_v35 = vpop.f32.mrb[16].mxu0  ;;  %v3184_v36 = vpop.f32.mrb[16].mxu1 }
 0x7fb   :  { %v3683_v28 = vadd.f32 %v3020_v35, %v2826_v31  ;;  %v3685_v47 = vadd.f32 %v3184_v36, %v2834_v13  ;;  %v3022_v15 = vpop.f32.mrb[17].mxu0  ;;  %v3186_v33 = vpop.f32.mrb[17].mxu1  ;;  %v2810_v31 = vld [vmem:[#allocation3 + $0xfe8] sm:$0xff]  ;;  %v2812_v13 = vld [vmem:[#allocation3 + $0xff8] sm:$0xff]  ;;  %v2846_v35 = vrot.slane %v4778_v27, %v4654_v53  ;;  %v2854_v36 = vrot.slane %v4778_v27, %v4660_v59 }
 0x7fc   :  { %v3684_v8 = vadd.f32 %v3022_v15, %v2830_v6  ;;  %v3686_v51 = vadd.f32 %v3186_v33, %v2838_v11  ;;  %v3024_v52 = vpop.f32.mrb[18].mxu0  ;;  %v3188_v40 = vpop.f32.mrb[18].mxu1  ;;  %3325 = vmatpush1.bf16.msra.mxu0 %v2729_v45  ;;  %3489 = vmatpush1.bf16.msra.mxu1 %v2731_v49  ;;  %v2809_v6 = vld [vmem:[#allocation3 + $0xfe0] sm:$0xff]  ;;  %v2811_v11 = vld [vmem:[#allocation3 + $0xff0] sm:$0xff]  ;;  %v2842_v45 = vrot.slane %v4778_v27, %v4651_v42 }
 0x7fd   :  { %3941 = vtanh.f32 %v3683_v28  ;;  %v3025_v29 = vpop.f32.mrb[19].mxu0  ;;  %v3189_v34 = vpop.f32.mrb[19].mxu1  ;;  %3326 = vmatprep.subr.bf16.mxu0 %v2738_v22  ;;  %3490 = vmatprep.subr.bf16.mxu1 %v2740_v46  ;;  %v2850_v49 = vrot.slane %v4778_v27, %v4657_v0 }
 0x7fe   :  { %3943 = vtanh.f32 %v3685_v47 }
 0x7ff   :  { %3945 = vtanh.f32 %v3684_v8 }
 0x800   :  { %3947 = vtanh.f32 %v3686_v51  ;;  %3327 = vmatpush1.bf16.msra.mxu0 %v2737_v7  ;;  %3491 = vmatpush1.bf16.msra.mxu1 %v2739_v37 }
 0x801   :  { %3328 = vmatprep.subr.bf16.mxu0 %v2746_v9  ;;  %3492 = vmatprep.subr.bf16.mxu1 %v2748_v41 }
 0x804   :  { %3329 = vmatpush1.bf16.msra.mxu0 %v2745_v12  ;;  %3493 = vmatpush1.bf16.msra.mxu1 %v2747_v25 }
 0x805   :  { %3330 = vmatprep.subr.bf16.mxu0 %v2754_v60  ;;  %3494 = vmatprep.subr.bf16.mxu1 %v2756_v57 }
 0x807   :  { %v3942_v16 = vpop.eup %3941 }
 0x808   :  { %v3944_v17 = vpop.eup %3943  ;;  %3527 = vst [vmem:[%s4836_s14] sm:$0xff] %v3942_v16  ;;  %3331 = vmatpush1.bf16.msra.mxu0 %v2753_v62  ;;  %3495 = vmatpush1.bf16.msra.mxu1 %v2755_v2 }
 0x809   :  { %v3946_v19 = vpop.eup %3945  ;;  %3529 = vst [vmem:[%s4836_s14 + $0x10] sm:$0xff] %v3944_v17  ;;  %3332 = vmatprep.subr.bf16.mxu0 %v2762_v43  ;;  %3496 = vmatprep.subr.bf16.mxu1 %v2764_v38 }
 0x80a   :  { %v3948_v44 = vpop.eup %3947  ;;  %3528 = vst [vmem:[%s4836_s14 + $0x8] sm:$0xff] %v3946_v19 }
 0x80b   :  { %3530 = vst [vmem:[%s4836_s14 + $0x18] sm:$0xff] %v3948_v44 }
 0x80c   :  { %3333 = vmatpush1.bf16.msra.mxu0 %v2761_v20  ;;  %3497 = vmatpush1.bf16.msra.mxu1 %v2763_v21 }
 0x80d   :  { %3334 = vmatprep.subr.bf16.mxu0 %v2770_v50  ;;  %3498 = vmatprep.subr.bf16.mxu1 %v2772_v39 }
 0x810   :  { %3335 = vmatpush1.bf16.msra.mxu0 %v2769_v63  ;;  %3499 = vmatpush1.bf16.msra.mxu1 %v2771_v3 }
 0x811   :  { %3336 = vmatprep.subr.bf16.mxu0 %v2778_v54  ;;  %3500 = vmatprep.subr.bf16.mxu1 %v2780_v56 }
 0x814   :  { %3337 = vmatpush1.bf16.msra.mxu0 %v2777_v14  ;;  %3501 = vmatpush1.bf16.msra.mxu1 %v2779_v58 }
 0x815   :  { %3338 = vmatprep.subr.bf16.mxu0 %v2786_v1  ;;  %3502 = vmatprep.subr.bf16.mxu1 %v2788_v10 }
 0x818   :  { %3339 = vmatpush1.bf16.msra.mxu0 %v2785_v55  ;;  %3503 = vmatpush1.bf16.msra.mxu1 %v2787_v18 }
 0x819   :  { %3340 = vmatprep.subr.bf16.mxu0 %v2794_v4  ;;  %3504 = vmatprep.subr.bf16.mxu1 %v2796_v23 }
 0x81c   :  { %3341 = vmatpush1.bf16.msra.mxu0 %v2793_v61  ;;  %3505 = vmatpush1.bf16.msra.mxu1 %v2795_v26 }
 0x81d   :  { %3342 = vmatprep.subr.bf16.mxu0 %v2802_v32  ;;  %3506 = vmatprep.subr.bf16.mxu1 %v2804_v30 }
 0x820   :  { %3343 = vmatpush1.bf16.msra.mxu0 %v2801_v5  ;;  %3507 = vmatpush1.bf16.msra.mxu1 %v2803_v48 }
 0x821   :  { %3344 = vmatprep.subr.bf16.mxu0 %v2810_v31  ;;  %3508 = vmatprep.subr.bf16.mxu1 %v2812_v13 }
 0x824   :  { %3345 = vmatpush1.bf16.msra.mxu0 %v2809_v6  ;;  %3509 = vmatpush1.bf16.msra.mxu1 %v2811_v11 }
 0x827   :  { %3347 = vmatmul.mubr.bf16.vlgmr.msra.gmra.mrb[20].mxu0 %v4760_v24  ;;  %3511 = vmatmul.mubr.bf16.vlgmr.msra.gmra.mrb[20].mxu1 %v4760_v24 }
 0x8fa   :  { %v3348_v22 = vpop.f32.mrb[20].mxu0  ;;  %v3512_v46 = vpop.f32.mrb[20].mxu1 }
 0x8fb   :  { %v3687_v28 = vadd.f32 %v3348_v22, %v2842_v45  ;;  %v3689_v47 = vadd.f32 %v3512_v46, %v2850_v49  ;;  %v3350_v15 = vpop.f32.mrb[21].mxu0  ;;  %v3514_v33 = vpop.f32.mrb[21].mxu1 }
 0x8fc   :  { %v3688_v8 = vadd.f32 %v3350_v15, %v2846_v35  ;;  %v3690_v24 = vadd.f32 %v3514_v33, %v2854_v36  ;;  %v3352_v51 = vpop.f32.mrb[22].mxu0  ;;  %v3516_v52 = vpop.f32.mrb[22].mxu1 }
 0x8fd   :  { %3949 = vtanh.f32 %v3687_v28  ;;  %v3353_v42 = vpop.f32.mrb[23].mxu0  ;;  %v3517_v40 = vpop.f32.mrb[23].mxu1 }
 0x8fe   :  { %3951 = vtanh.f32 %v3689_v47 }
 0x8ff   :  { %3953 = vtanh.f32 %v3688_v8 }
 0x900   :  { %3955 = vtanh.f32 %v3690_v24 }
 0x907   :  { %v3950_v53 = vpop.eup %3949 }
 0x908   :  { %v3952_v0 = vpop.eup %3951  ;;  %3531 = vst [vmem:[%s4836_s14 + $0x20] sm:$0xff] %v3950_v53 }
 0x909   :  { %v3954_v59 = vpop.eup %3953  ;;  %3533 = vst [vmem:[%s4836_s14 + $0x30] sm:$0xff] %v3952_v0 }
 0x90a   :  { %v3956_v27 = vpop.eup %3955  ;;  %3532 = vst [vmem:[%s4836_s14 + $0x28] sm:$0xff] %v3954_v59 }
 0x90b   :  { %3534 = vst [vmem:[%s4836_s14 + $0x38] sm:$0xff] %v3956_v27 }
 0x90c   :  { %3539 = vsyncpa [#allocation6], 1 }
 0x90d   :  { %3540 = vsyncpa [#allocation8], 1 }
 0x90e   :  { %3541 = vsyncpa [#allocation11], 1 }
 0x90f   :  { %3542 = vsyncpa [#allocation14], 1 }
 0x910   :  { %3543 = vsyncpa [#allocation17], 1 }
 0x911   :  { %3544 = vsyncpa [#allocation20], 1 }
 0x912   :  { %3545 = vsyncmov [#allocation4] }
 0x915   :  { %s3546_s19 = vpop.sfrf %3545 }
 0x916   :  { %p3652_p4 = scmp.ne.s32.totalorder %s3546_s19, 0 }
 0x918   :  { %3550 = shalt.err (%p3652_p4)  }
 0x919   :  { %3552 = vsyncmov [#allocation4 + $0x1] }
 0x91c   :  { %s3553_s21 = vpop.sfrf %3552 }
 0x91d   :  { %p3653_p5 = scmp.ne.s32.totalorder %s3553_s21, 0 }
 0x91f   :  { %3557 = shalt.err (%p3653_p5)  }

</bundles_post_ra>
